<compile_context>
chip_gen: v7x
topology: tpu7x:2x2x1
jax: 0.10.0
libtpu: 0.0.40
codegen_flags: <defaults>
</compile_context>

<pallas_src>
import jax
import jax.numpy as jnp
from jax.experimental import pallas as pl
from jax.experimental.pallas import tpu as pltpu

L = 60                 # sequence length implied by dense1: 17 * L = 1020
LPAD = 64              # padded xi width (contraction dim of the embedding matmul)
C = 16                 # conv output channels
NCONV = C * L          # 960 conv features
FEAT = NCONV + L       # 1020 (conv features ++ xi)
FEAT_PAD = 1024        # padded feature width (lane-aligned)
OUT_PAD = 128          # padded output lanes for the final layer
NEG_SLOPE = 0.01       # F.leaky_relu default


def leaky(x):
    return jnp.where(x >= 0, x, NEG_SLOPE * x)


def _round_up(n, m):
    return (n + m - 1) // m * m


# --------------------------------------------------------------------------- kernel
def net_kernel(x_ref,                       # (TB, 64)  bf16 : xi padded to 64 lanes
               m_ref, cb_ref,               # (64, 1024) bf16, (1, 1024) f32
               w1_ref, b1_ref, w2_ref, b2_ref,
               w3_ref, b3_ref, w4_ref, b4_ref,
               w5_ref, b5_ref,              # dense weights bf16 (in, out), biases f32 (1, out)
               out_ref):                    # (TB, 128) f32
    # Conv1d(1,16,k=3,pad=1) + flatten + cat(xi) as a single bf16 MXU matmul into a
    # lane-dense 1024-wide feature block (f32 accumulation).
    pre = jnp.dot(x_ref[...], m_ref[...],
                  preferred_element_type=jnp.float32) + cb_ref[...]
    col = jax.lax.broadcasted_iota(jnp.int32, (1, FEAT_PAD), 1)
    feat = jnp.where(col < NCONV, leaky(pre), pre)   # leaky only on conv columns

    def dense(h, w_ref, b_ref):
        return jnp.dot(h.astype(jnp.bfloat16), w_ref[...],
                       preferred_element_type=jnp.float32) + b_ref[...]

    h = leaky(dense(feat, w1_ref, b1_ref))
    h = leaky(dense(h, w2_ref, b2_ref))
    h = leaky(dense(h, w3_ref, b3_ref))
    h = leaky(dense(h, w4_ref, b4_ref))
    out_ref[...] = dense(h, w5_ref, b5_ref)


# --------------------------------------------------------------------------- glue
def prepare_kernel_params(params):
    """Pack the raw Net parameters into the padded / bf16 kernel operands."""
    conv_w, conv_b, w1, b1, w2, b2, w3, b3, w4, b4, w5, b5 = params

    # Banded embedding matrix built directly on xi (conv is linear in xi; the
    # zero padding at the boundaries is simply absent band entries):
    #   M_conv[s, c*L + t] = conv_w[c, s - t + 1]   when |s - t| <= 1
    s = jnp.arange(L)[:, None]      # source xi index
    t = jnp.arange(L)[None, :]      # conv output position
    taps = jnp.stack([(s - t == k - 1).astype(jnp.float32) for k in range(3)],
                     axis=-1)                                  # (L, L, 3)
    m_conv = jnp.einsum('stk,ck->sct', taps, conv_w).reshape(L, NCONV)
    m_id = jnp.eye(L, dtype=jnp.float32)                       # xi passthrough
    m = jnp.concatenate(
        [m_conv, m_id, jnp.zeros((L, FEAT_PAD - FEAT), jnp.float32)], axis=1)
    m = jnp.zeros((LPAD, FEAT_PAD), jnp.float32).at[:L, :].set(m)

    # conv bias broadcast per channel into the conv columns, zero elsewhere
    cbias = jnp.concatenate(
        [jnp.repeat(conv_b, L), jnp.zeros((FEAT_PAD - NCONV,), jnp.float32)])[None, :]

    # pad dense1 input rows 1020 -> 1024 with zeros
    w1p = jnp.zeros((FEAT_PAD, w1.shape[1]), jnp.float32).at[:FEAT, :].set(w1)
    # pad the last layer to 128 lane-dense output columns
    w5p = jnp.zeros((w5.shape[0], OUT_PAD), jnp.float32).at[:, :1].set(w5)
    b5p = jnp.zeros((1, OUT_PAD), jnp.float32).at[:, :1].set(b5)

    bf = lambda a: a.astype(jnp.bfloat16)
    return (bf(m), cbias,
            bf(w1p), b1, bf(w2), b2, bf(w3), b3, bf(w4), b4, bf(w5p), b5p)


def net_forward(xi, params, *, block_b=512):
    B = xi.shape[0]
    kp = prepare_kernel_params(params)

    # Batch tiling: multiple of 16 (bf16 sublane packing), capped at block_b
    # (512 = 2x the 256-row MXU on v6e/v7x, comfortably within 32 MiB VMEM).
    tb = min(block_b, _round_up(B, 16))
    b_pad = _round_up(B, tb)
    grid = (b_pad // tb,)

    # xi -> (b_pad, 64) bf16 lane-dense operand of the fused embedding matmul.
    x_in = jnp.pad(xi, ((0, b_pad - B), (0, LPAD - L))).astype(jnp.bfloat16)

    # Weights are fully VMEM-resident, fetched once, single-buffered.
    const_spec = lambda: pl.BlockSpec(memory_space=pltpu.MemorySpace.VMEM)
    in_specs = [pl.BlockSpec((tb, LPAD), lambda i: (i, 0))]
    in_specs += [const_spec() for _ in kp]

    out = pl.pallas_call(
        net_kernel,
        out_shape=jax.ShapeDtypeStruct((b_pad, OUT_PAD), jnp.float32),
        grid=grid,
        in_specs=in_specs,
        out_specs=pl.BlockSpec((tb, OUT_PAD), lambda i: (i, 0)),
        compiler_params=pltpu.CompilerParams(
            dimension_semantics=("parallel",),
            vmem_limit_bytes=32 * 1024 * 1024,
        ),
    )(x_in, *kp)
    return out[:B, :1]


# --------------------------------------------------------------------------- params
def init_params(key):
    """Deterministic PyTorch-default-style uniform init (fan_in based)."""
    ks = jax.random.split(key, 12)

    def lin(kw, kb, fan_in, fan_out):
        bound = 1.0 / (fan_in ** 0.5)
        w = jax.random.uniform(kw, (fan_in, fan_out), jnp.float32, -bound, bound)  # (in, out)
        b = jax.random.uniform(kb, (1, fan_out), jnp.float32, -bound, bound)
        return w, b

    cbound = 1.0 / (3.0 ** 0.5)   # conv fan_in = in_ch * k = 3
    conv_w = jax.random.uniform(ks[0], (C, 3), jnp.float32, -cbound, cbound)
    conv_b = jax.random.uniform(ks[1], (C,), jnp.float32, -cbound, cbound)
    w1, b1 = lin(ks[2], ks[3], FEAT, 1024)
    w2, b2 = lin(ks[4], ks[5], 1024, 512)
    w3, b3 = lin(ks[6], ks[7], 512, 256)
    w4, b4 = lin(ks[8], ks[9], 256, 128)
    w5, b5 = lin(ks[10], ks[11], 128, 1)
    return (conv_w, conv_b, w1, b1, w2, b2, w3, b3, w4, b4, w5, b5)


def round_weights_to_bf16(params):
    """Round weight matrices through bf16 (the kernel's storage dtype); biases stay f32."""
    conv_w, conv_b, w1, b1, w2, b2, w3, b3, w4, b4, w5, b5 = params
    rt = lambda a: a.astype(jnp.bfloat16).astype(jnp.float32)
    return (rt(conv_w), conv_b, rt(w1), b1, rt(w2), b2, rt(w3), b3, rt(w4), b4, rt(w5), b5)


# --------------------------------------------------------------------------- reference
def net_reference(xi, params):
    """Pure-JAX reference replicating the PyTorch forward semantics."""
    conv_w, conv_b, w1, b1, w2, b2, w3, b3, w4, b4, w5, b5 = params
    B = xi.shape[0]
    hp = jax.lax.Precision.HIGHEST
    xpad = jnp.pad(xi, ((0, 0), (1, 1)))
    windows = jnp.stack([xpad[:, 0:L], xpad[:, 1:L + 1], xpad[:, 2:L + 2]], axis=-1)  # (B, L, 3)
    conv = jnp.einsum('blk,ck->bcl', windows, conv_w, precision=hp) + conv_b[None, :, None]
    conv = leaky(conv).reshape(B, C * L)
    feat = jnp.concatenate([conv, xi], axis=1)
    h = leaky(jnp.dot(feat, w1, precision=hp) + b1)
    h = leaky(jnp.dot(h, w2, precision=hp) + b2)
    h = leaky(jnp.dot(h, w3, precision=hp) + b3)
    h = leaky(jnp.dot(h, w4, precision=hp) + b4)
    return jnp.dot(h, w5, precision=hp) + b5


if __name__ == "__main__":
    key = jax.random.PRNGKey(0)
    pkey, xkey = jax.random.split(key)
    params = round_weights_to_bf16(init_params(pkey))

    B = 8
    xi = jax.random.normal(xkey, (B, L), jnp.float32)

    out = net_forward(xi, params)
    out = jax.block_until_ready(out)

    ref = net_reference(xi, params)
    assert out.shape == (B, 1), out.shape
    # Weights are bf16-rounded in both paths; remaining delta is bf16 activation
    # quantization through 6 matmuls (measured ~1e-3 at this init).
    max_err = float(jnp.max(jnp.abs(out - ref)))
    if not max_err < 2e-2:
        raise AssertionError(f"Pallas kernel mismatch vs reference, max abs err = {max_err}")

    print("KERNEL_OK")
</pallas_src>

<mosaic_0001>
module attributes {stable_mosaic.version = 11 : i64} {
  func.func @net_kernel(%arg0: i32, %arg1: memref<16x64xbf16, #tpu.memory_space<vmem>>, %arg2: memref<64x1024xbf16, #tpu.memory_space<vmem>>, %arg3: memref<1x1024xf32, #tpu.memory_space<vmem>>, %arg4: memref<1024x1024xbf16, #tpu.memory_space<vmem>>, %arg5: memref<1x1024xf32, #tpu.memory_space<vmem>>, %arg6: memref<1024x512xbf16, #tpu.memory_space<vmem>>, %arg7: memref<1x512xf32, #tpu.memory_space<vmem>>, %arg8: memref<512x256xbf16, #tpu.memory_space<vmem>>, %arg9: memref<1x256xf32, #tpu.memory_space<vmem>>, %arg10: memref<256x128xbf16, #tpu.memory_space<vmem>>, %arg11: memref<1x128xf32, #tpu.memory_space<vmem>>, %arg12: memref<128x128xbf16, #tpu.memory_space<vmem>>, %arg13: memref<1x128xf32, #tpu.memory_space<vmem>>, %arg14: memref<16x128xf32, #tpu.memory_space<vmem>>) attributes {dimension_semantics = [#tpu.dimension_semantics<parallel>], iteration_bounds = array<i64: 1>, scalar_prefetch = 0 : i64, scratch_operands = 0 : i64, tpu.core_type = #tpu.core_type<tc>, window_params = [{transform_indices = @transform_0, window_bounds = array<i64: 16, 64>}, {pipeline_mode = #tpu.pipeline_mode<synchronous>, transform_indices = @transform_1, window_bounds = array<i64: 64, 1024>}, {pipeline_mode = #tpu.pipeline_mode<synchronous>, transform_indices = @transform_2, window_bounds = array<i64: 1, 1024>}, {pipeline_mode = #tpu.pipeline_mode<synchronous>, transform_indices = @transform_3, window_bounds = array<i64: 1024, 1024>}, {pipeline_mode = #tpu.pipeline_mode<synchronous>, transform_indices = @transform_4, window_bounds = array<i64: 1, 1024>}, {pipeline_mode = #tpu.pipeline_mode<synchronous>, transform_indices = @transform_5, window_bounds = array<i64: 1024, 512>}, {pipeline_mode = #tpu.pipeline_mode<synchronous>, transform_indices = @transform_6, window_bounds = array<i64: 1, 512>}, {pipeline_mode = #tpu.pipeline_mode<synchronous>, transform_indices = @transform_7, window_bounds = array<i64: 512, 256>}, {pipeline_mode = #tpu.pipeline_mode<synchronous>, transform_indices = @transform_8, window_bounds = array<i64: 1, 256>}, {pipeline_mode = #tpu.pipeline_mode<synchronous>, transform_indices = @transform_9, window_bounds = array<i64: 256, 128>}, {pipeline_mode = #tpu.pipeline_mode<synchronous>, transform_indices = @transform_10, window_bounds = array<i64: 1, 128>}, {pipeline_mode = #tpu.pipeline_mode<synchronous>, transform_indices = @transform_11, window_bounds = array<i64: 128, 128>}, {pipeline_mode = #tpu.pipeline_mode<synchronous>, transform_indices = @transform_12, window_bounds = array<i64: 1, 128>}, {transform_indices = @transform_13, window_bounds = array<i64: 16, 128>}]} {
    %c0 = arith.constant 0 : index
    %c0_0 = arith.constant 0 : index
    %0 = vector.load %arg1[%c0, %c0_0] : memref<16x64xbf16, #tpu.memory_space<vmem>>, vector<16x64xbf16>
    %c0_1 = arith.constant 0 : index
    %c0_2 = arith.constant 0 : index
    %1 = vector.load %arg2[%c0_1, %c0_2] : memref<64x1024xbf16, #tpu.memory_space<vmem>>, vector<64x1024xbf16>
    %cst = arith.constant dense<0.000000e+00> : vector<16x1024xf32>
    %2 = tpu.matmul %0, %1, %cst {dimension_numbers = #tpu.dot_dimension_numbers<[1], [0], [0], [1], [0, 0, 1, 1], [], []>} : vector<16x64xbf16>, vector<64x1024xbf16>, vector<16x1024xf32> -> vector<16x1024xf32>
    %c0_3 = arith.constant 0 : index
    %c0_4 = arith.constant 0 : index
    %3 = vector.load %arg3[%c0_3, %c0_4] : memref<1x1024xf32, #tpu.memory_space<vmem>>, vector<1x1024xf32>
    %4 = vector.broadcast %3 : vector<1x1024xf32> to vector<16x1024xf32>
    %5 = arith.addf %2, %4 : vector<16x1024xf32>
    %6 = tpu.iota {dimensions = array<i32: 1>} : vector<1x1024xi32>
    %c960_i32 = arith.constant 960 : i32
    %7 = vector.broadcast %c960_i32 : i32 to vector<1x1024xi32>
    %8 = arith.cmpi slt, %6, %7 : vector<1x1024xi32>
    %cst_5 = arith.constant 0.000000e+00 : f32
    %9 = vector.broadcast %cst_5 : f32 to vector<16x1024xf32>
    %10 = arith.cmpf oge, %5, %9 : vector<16x1024xf32>
    %cst_6 = arith.constant 0.00999999977 : f32
    %11 = vector.broadcast %cst_6 : f32 to vector<16x1024xf32>
    %12 = arith.mulf %11, %5 : vector<16x1024xf32>
    %13 = arith.select %10, %5, %12 : vector<16x1024xi1>, vector<16x1024xf32>
    %14 = vector.shape_cast %8 : vector<1x1024xi1> to vector<1x1024xi1>
    %15 = vector.broadcast %14 : vector<1x1024xi1> to vector<16x1024xi1>
    %16 = arith.select %15, %13, %5 : vector<16x1024xi1>, vector<16x1024xf32>
    %17 = arith.truncf %16 : vector<16x1024xf32> to vector<16x1024xbf16>
    %c0_7 = arith.constant 0 : index
    %c0_8 = arith.constant 0 : index
    %18 = vector.load %arg4[%c0_7, %c0_8] : memref<1024x1024xbf16, #tpu.memory_space<vmem>>, vector<1024x1024xbf16>
    %cst_9 = arith.constant dense<0.000000e+00> : vector<16x1024xf32>
    %19 = tpu.matmul %17, %18, %cst_9 {dimension_numbers = #tpu.dot_dimension_numbers<[1], [0], [0], [1], [0, 0, 1, 1], [], []>} : vector<16x1024xbf16>, vector<1024x1024xbf16>, vector<16x1024xf32> -> vector<16x1024xf32>
    %c0_10 = arith.constant 0 : index
    %c0_11 = arith.constant 0 : index
    %20 = vector.load %arg5[%c0_10, %c0_11] : memref<1x1024xf32, #tpu.memory_space<vmem>>, vector<1x1024xf32>
    %21 = vector.broadcast %20 : vector<1x1024xf32> to vector<16x1024xf32>
    %22 = arith.addf %19, %21 : vector<16x1024xf32>
    %cst_12 = arith.constant 0.000000e+00 : f32
    %23 = vector.broadcast %cst_12 : f32 to vector<16x1024xf32>
    %24 = arith.cmpf oge, %22, %23 : vector<16x1024xf32>
    %cst_13 = arith.constant 0.00999999977 : f32
    %25 = vector.broadcast %cst_13 : f32 to vector<16x1024xf32>
    %26 = arith.mulf %25, %22 : vector<16x1024xf32>
    %27 = arith.select %24, %22, %26 : vector<16x1024xi1>, vector<16x1024xf32>
    %28 = arith.truncf %27 : vector<16x1024xf32> to vector<16x1024xbf16>
    %c0_14 = arith.constant 0 : index
    %c0_15 = arith.constant 0 : index
    %29 = vector.load %arg6[%c0_14, %c0_15] : memref<1024x512xbf16, #tpu.memory_space<vmem>>, vector<1024x512xbf16>
    %cst_16 = arith.constant dense<0.000000e+00> : vector<16x512xf32>
    %30 = tpu.matmul %28, %29, %cst_16 {dimension_numbers = #tpu.dot_dimension_numbers<[1], [0], [0], [1], [0, 0, 1, 1], [], []>} : vector<16x1024xbf16>, vector<1024x512xbf16>, vector<16x512xf32> -> vector<16x512xf32>
    %c0_17 = arith.constant 0 : index
    %c0_18 = arith.constant 0 : index
    %31 = vector.load %arg7[%c0_17, %c0_18] : memref<1x512xf32, #tpu.memory_space<vmem>>, vector<1x512xf32>
    %32 = vector.broadcast %31 : vector<1x512xf32> to vector<16x512xf32>
    %33 = arith.addf %30, %32 : vector<16x512xf32>
    %cst_19 = arith.constant 0.000000e+00 : f32
    %34 = vector.broadcast %cst_19 : f32 to vector<16x512xf32>
    %35 = arith.cmpf oge, %33, %34 : vector<16x512xf32>
    %cst_20 = arith.constant 0.00999999977 : f32
    %36 = vector.broadcast %cst_20 : f32 to vector<16x512xf32>
    %37 = arith.mulf %36, %33 : vector<16x512xf32>
    %38 = arith.select %35, %33, %37 : vector<16x512xi1>, vector<16x512xf32>
    %39 = arith.truncf %38 : vector<16x512xf32> to vector<16x512xbf16>
    %c0_21 = arith.constant 0 : index
    %c0_22 = arith.constant 0 : index
    %40 = vector.load %arg8[%c0_21, %c0_22] : memref<512x256xbf16, #tpu.memory_space<vmem>>, vector<512x256xbf16>
    %cst_23 = arith.constant dense<0.000000e+00> : vector<16x256xf32>
    %41 = tpu.matmul %39, %40, %cst_23 {dimension_numbers = #tpu.dot_dimension_numbers<[1], [0], [0], [1], [0, 0, 1, 1], [], []>} : vector<16x512xbf16>, vector<512x256xbf16>, vector<16x256xf32> -> vector<16x256xf32>
    %c0_24 = arith.constant 0 : index
    %c0_25 = arith.constant 0 : index
    %42 = vector.load %arg9[%c0_24, %c0_25] : memref<1x256xf32, #tpu.memory_space<vmem>>, vector<1x256xf32>
    %43 = vector.broadcast %42 : vector<1x256xf32> to vector<16x256xf32>
    %44 = arith.addf %41, %43 : vector<16x256xf32>
    %cst_26 = arith.constant 0.000000e+00 : f32
    %45 = vector.broadcast %cst_26 : f32 to vector<16x256xf32>
    %46 = arith.cmpf oge, %44, %45 : vector<16x256xf32>
    %cst_27 = arith.constant 0.00999999977 : f32
    %47 = vector.broadcast %cst_27 : f32 to vector<16x256xf32>
    %48 = arith.mulf %47, %44 : vector<16x256xf32>
    %49 = arith.select %46, %44, %48 : vector<16x256xi1>, vector<16x256xf32>
    %50 = arith.truncf %49 : vector<16x256xf32> to vector<16x256xbf16>
    %c0_28 = arith.constant 0 : index
    %c0_29 = arith.constant 0 : index
    %51 = vector.load %arg10[%c0_28, %c0_29] : memref<256x128xbf16, #tpu.memory_space<vmem>>, vector<256x128xbf16>
    %cst_30 = arith.constant dense<0.000000e+00> : vector<16x128xf32>
    %52 = tpu.matmul %50, %51, %cst_30 {dimension_numbers = #tpu.dot_dimension_numbers<[1], [0], [0], [1], [0, 0, 1, 1], [], []>} : vector<16x256xbf16>, vector<256x128xbf16>, vector<16x128xf32> -> vector<16x128xf32>
    %c0_31 = arith.constant 0 : index
    %c0_32 = arith.constant 0 : index
    %53 = vector.load %arg11[%c0_31, %c0_32] : memref<1x128xf32, #tpu.memory_space<vmem>>, vector<1x128xf32>
    %54 = vector.broadcast %53 : vector<1x128xf32> to vector<16x128xf32>
    %55 = arith.addf %52, %54 : vector<16x128xf32>
    %cst_33 = arith.constant 0.000000e+00 : f32
    %56 = vector.broadcast %cst_33 : f32 to vector<16x128xf32>
    %57 = arith.cmpf oge, %55, %56 : vector<16x128xf32>
    %cst_34 = arith.constant 0.00999999977 : f32
    %58 = vector.broadcast %cst_34 : f32 to vector<16x128xf32>
    %59 = arith.mulf %58, %55 : vector<16x128xf32>
    %60 = arith.select %57, %55, %59 : vector<16x128xi1>, vector<16x128xf32>
    %61 = arith.truncf %60 : vector<16x128xf32> to vector<16x128xbf16>
    %c0_35 = arith.constant 0 : index
    %c0_36 = arith.constant 0 : index
    %62 = vector.load %arg12[%c0_35, %c0_36] : memref<128x128xbf16, #tpu.memory_space<vmem>>, vector<128x128xbf16>
    %cst_37 = arith.constant dense<0.000000e+00> : vector<16x128xf32>
    %63 = tpu.matmul %61, %62, %cst_37 {dimension_numbers = #tpu.dot_dimension_numbers<[1], [0], [0], [1], [0, 0, 1, 1], [], []>} : vector<16x128xbf16>, vector<128x128xbf16>, vector<16x128xf32> -> vector<16x128xf32>
    %c0_38 = arith.constant 0 : index
    %c0_39 = arith.constant 0 : index
    %64 = vector.load %arg13[%c0_38, %c0_39] : memref<1x128xf32, #tpu.memory_space<vmem>>, vector<1x128xf32>
    %65 = vector.broadcast %64 : vector<1x128xf32> to vector<16x128xf32>
    %66 = arith.addf %63, %65 : vector<16x128xf32>
    %c0_40 = arith.constant 0 : index
    %c0_41 = arith.constant 0 : index
    %67 = vector.load %arg14[%c0_40, %c0_41] : memref<16x128xf32, #tpu.memory_space<vmem>>, vector<16x128xf32>
    tpu.vector_store %arg14[%c0_40, %c0_41], %66 {strides = array<i32>} : memref<16x128xf32, #tpu.memory_space<vmem>>, vector<16x128xf32>,
    return
  }
  func.func @transform_0(%arg0: i32) -> (i32, i32) {
    %c0_i32 = arith.constant 0 : i32
    %c0_i32_0 = arith.constant 0 : i32
    return %arg0, %c0_i32 : i32, i32
  }
  func.func @transform_1(%arg0: i32) -> (i32, i32) {
    %c0_i32 = arith.constant 0 : i32
    %c0_i32_0 = arith.constant 0 : i32
    %c0_i32_1 = arith.constant 0 : i32
    return %c0_i32, %c0_i32_0 : i32, i32
  }
  func.func @transform_2(%arg0: i32) -> (i32, i32) {
    %c0_i32 = arith.constant 0 : i32
    %c0_i32_0 = arith.constant 0 : i32
    %c0_i32_1 = arith.constant 0 : i32
    return %c0_i32, %c0_i32_0 : i32, i32
  }
  func.func @transform_3(%arg0: i32) -> (i32, i32) {
    %c0_i32 = arith.constant 0 : i32
    %c0_i32_0 = arith.constant 0 : i32
    %c0_i32_1 = arith.constant 0 : i32
    return %c0_i32, %c0_i32_0 : i32, i32
  }
  func.func @transform_4(%arg0: i32) -> (i32, i32) {
    %c0_i32 = arith.constant 0 : i32
    %c0_i32_0 = arith.constant 0 : i32
    %c0_i32_1 = arith.constant 0 : i32
    return %c0_i32, %c0_i32_0 : i32, i32
  }
  func.func @transform_5(%arg0: i32) -> (i32, i32) {
    %c0_i32 = arith.constant 0 : i32
    %c0_i32_0 = arith.constant 0 : i32
    %c0_i32_1 = arith.constant 0 : i32
    return %c0_i32, %c0_i32_0 : i32, i32
  }
  func.func @transform_6(%arg0: i32) -> (i32, i32) {
    %c0_i32 = arith.constant 0 : i32
    %c0_i32_0 = arith.constant 0 : i32
    %c0_i32_1 = arith.constant 0 : i32
    return %c0_i32, %c0_i32_0 : i32, i32
  }
  func.func @transform_7(%arg0: i32) -> (i32, i32) {
    %c0_i32 = arith.constant 0 : i32
    %c0_i32_0 = arith.constant 0 : i32
    %c0_i32_1 = arith.constant 0 : i32
    return %c0_i32, %c0_i32_0 : i32, i32
  }
  func.func @transform_8(%arg0: i32) -> (i32, i32) {
    %c0_i32 = arith.constant 0 : i32
    %c0_i32_0 = arith.constant 0 : i32
    %c0_i32_1 = arith.constant 0 : i32
    return %c0_i32, %c0_i32_0 : i32, i32
  }
  func.func @transform_9(%arg0: i32) -> (i32, i32) {
    %c0_i32 = arith.constant 0 : i32
    %c0_i32_0 = arith.constant 0 : i32
    %c0_i32_1 = arith.constant 0 : i32
    return %c0_i32, %c0_i32_0 : i32, i32
  }
  func.func @transform_10(%arg0: i32) -> (i32, i32) {
    %c0_i32 = arith.constant 0 : i32
    %c0_i32_0 = arith.constant 0 : i32
    %c0_i32_1 = arith.constant 0 : i32
    return %c0_i32, %c0_i32_0 : i32, i32
  }
  func.func @transform_11(%arg0: i32) -> (i32, i32) {
    %c0_i32 = arith.constant 0 : i32
    %c0_i32_0 = arith.constant 0 : i32
    %c0_i32_1 = arith.constant 0 : i32
    return %c0_i32, %c0_i32_0 : i32, i32
  }
  func.func @transform_12(%arg0: i32) -> (i32, i32) {
    %c0_i32 = arith.constant 0 : i32
    %c0_i32_0 = arith.constant 0 : i32
    %c0_i32_1 = arith.constant 0 : i32
    return %c0_i32, %c0_i32_0 : i32, i32
  }
  func.func @transform_13(%arg0: i32) -> (i32, i32) {
    %c0_i32 = arith.constant 0 : i32
    %c0_i32_0 = arith.constant 0 : i32
    return %arg0, %c0_i32 : i32, i32
  }
}

</mosaic_0001>

<bundles_post_ra>
// kernel: tpu_custom_call.1
= control target key start
LH: loop header
LB: loop body
LE: loop exit
PB: predicated region body
PF: predicated region fallthrough
CT: control target
= control target key end

     0   :  { %18 = vsyncpa [#allocation3], 0  ;;  %s9764_s0 = inlined_call_operand.hbm [shape: bf16[16,64], index: 0, kind: input, shape index: {}]   ;;  %s9765_s1 = inlined_call_operand.hbm [shape: bf16[64,1024], index: 1, kind: input, shape index: {}]   ;;  %s9766_s2 = inlined_call_operand.hbm [shape: f32[1,1024], index: 2, kind: input, shape index: {}]   ;;  %s9767_s3 = inlined_call_operand.hbm [shape: bf16[1024,1024], index: 3, kind: input, shape index: {}]   ;;  %s9768_s4 = inlined_call_operand.hbm [shape: f32[1,1024], index: 4, kind: input, shape index: {}]   ;;  %s9769_s5 = inlined_call_operand.hbm [shape: bf16[1024,512], index: 5, kind: input, shape index: {}]   ;;  %s9770_s6 = inlined_call_operand.hbm [shape: f32[1,512], index: 6, kind: input, shape index: {}]   ;;  %s9771_s7 = inlined_call_operand.hbm [shape: bf16[512,256], index: 7, kind: input, shape index: {}]   ;;  %s9772_s8 = inlined_call_operand.hbm [shape: f32[1,256], index: 8, kind: input, shape index: {}]   ;;  %s9773_s9 = inlined_call_operand.hbm [shape: bf16[256,128], index: 9, kind: input, shape index: {}]   ;;  %s9774_s10 = inlined_call_operand.hbm [shape: f32[1,128], index: 10, kind: input, shape index: {}]   ;;  %s9775_s11 = inlined_call_operand.hbm [shape: bf16[128,128], index: 11, kind: input, shape index: {}]   ;;  %s9776_s12 = inlined_call_operand.hbm [shape: f32[1,128], index: 12, kind: input, shape index: {}]   ;;  %s9777_s13 = inlined_call_operand.hbm [shape: f32[16,128], index: 13, kind: output, shape index: {}]  }
   0x1   :  { %19 = vsyncpa [#allocation6], 0 }
   0x2   :  { %20 = vsyncpa [#allocation9], 0 }
   0x3   :  { %21 = vsyncpa [#allocation12], 0 }
   0x4   :  { %22 = vsyncpa [#allocation15], 0 }
   0x5   :  { %23 = vsyncpa [#allocation18], 0 }
   0x6   :  { %24 = vsyncpa [#allocation21], 0 }
   0x7   :  { %25 = vsyncpa [#allocation4], 0  ;;  %s9241_s25 = smov [#allocation5]   ;;  %s8917_s29 = scalar_lea.hbm %s9765_s1, 4096 }
   0x8   :  { %s43_s26 = sshll.u32 %s9241_s25, 4  ;;  %p8918_p0 = scmp.ne.s32.totalorder %s9765_s1, %s8917_s29  ;;  %s44_s26 = int_to_ptr.vmem [resolvable:$true] %s43_s26 }
   0x9   :  { %p8921_p1 = scmp.lt.u32.totalorder %s8917_s29, %s9765_s1 }
   0xb   :  { %p8923_p2 = pnand %p8921_p1, %p8918_p0 }
   0xd   :  { %8926 = shalt.err (!%p8923_p2)
}
   0xe   :  { %s8927_s17 = scalar_lea.vmem %s44_s26, 4096  ;;  %p8932_p4 = scmp.lt.s32.totalorder %s44_s26, %s44_s26 }
   0xf   :  { %p8928_p3 = scmp.ne.s32.totalorder %s44_s26, %s8927_s17  ;;  %p8933_p5 = scmp.lt.s32.totalorder %s8927_s17, %s8927_s17 }
  0x11   :  { %p8934_p6 = por %p8933_p5, %p8932_p4 }
  0x13   :  { %p8935_p7 = pnand %p8934_p6, %p8928_p3 }
  0x15   :  { %8938 = shalt.err (!%p8935_p7)
}
  0x16   :  { %s9242_s18 = smov 512   ;;  %s9243_s19 = smov 32  }
  0x17   :  { %49 = dma.hbm_to_vmem [thread:$0]  %s9765_s1, 4096, %s44_s26, [#allocation6], %s9242_s18, %s9242_s18, %s9243_s19  }
  0x18   :  { %s9244_s22 = smov [#allocation8]   ;;  %s9245_s24 = smov [#allocation11]  }
  0x19   :  { %s65_s23 = sshll.u32 %s9244_s22, 4  ;;  %s87_s25 = sshll.u32 %s9245_s24, 4  ;;  %s66_s23 = int_to_ptr.vmem [resolvable:$true] %s65_s23  ;;  %s88_s25 = int_to_ptr.vmem [resolvable:$true] %s87_s25 }
  0x1a   :  { %s8939_s29 = scalar_lea.hbm %s9767_s3, 65536 }
  0x1b   :  { %p8940_p8 = scmp.ne.s32.totalorder %s9767_s3, %s8939_s29  ;;  %p8943_p9 = scmp.lt.u32.totalorder %s8939_s29, %s9767_s3 }
  0x1d   :  { %p8945_p10 = pnand %p8943_p9, %p8940_p8 }
  0x1f   :  { %8948 = shalt.err (!%p8945_p10)
}
  0x20   :  { %s8949_s1 = scalar_lea.vmem %s66_s23, 65536  ;;  %p8954_p12 = scmp.lt.s32.totalorder %s66_s23, %s66_s23 }
  0x21   :  { %p8950_p11 = scmp.ne.s32.totalorder %s66_s23, %s8949_s1  ;;  %p8955_p13 = scmp.lt.s32.totalorder %s8949_s1, %s8949_s1 }
  0x23   :  { %p8956_p0 = por %p8955_p13, %p8954_p12 }
  0x25   :  { %p8957_p1 = pnand %p8956_p0, %p8950_p11 }
  0x27   :  { %8960 = shalt.err (!%p8957_p1)
}
  0x28   :  { %71 = dma.hbm_to_vmem [thread:$0]  %s9767_s3, 65536, %s66_s23, [#allocation9], %s9242_s18, %s9242_s18, %s9243_s19  }
  0x29   :  { %s8961_s22 = scalar_lea.hbm %s9769_s5, 32768 }
  0x2a   :  { %p8962_p2 = scmp.ne.s32.totalorder %s9769_s5, %s8961_s22  ;;  %p8965_p3 = scmp.lt.u32.totalorder %s8961_s22, %s9769_s5 }
  0x2c   :  { %p8967_p4 = pnand %p8965_p3, %p8962_p2 }
  0x2e   :  { %8970 = shalt.err (!%p8967_p4)
}
  0x2f   :  { %s8971_s30 = scalar_lea.vmem %s88_s25, 32768  ;;  %p8976_p6 = scmp.lt.s32.totalorder %s88_s25, %s88_s25 }
  0x30   :  { %p8972_p5 = scmp.ne.s32.totalorder %s88_s25, %s8971_s30  ;;  %p8977_p7 = scmp.lt.s32.totalorder %s8971_s30, %s8971_s30 }
  0x32   :  { %p8978_p8 = por %p8977_p7, %p8976_p6 }
  0x34   :  { %p8979_p9 = pnand %p8978_p8, %p8972_p5 }
  0x36   :  { %8982 = shalt.err (!%p8979_p9)
}
  0x37   :  { %s9246_s3 = smov 256   ;;  %s9247_s18 = smov 16  }
  0x38   :  { %93 = dma.hbm_to_vmem [thread:$0]  %s9769_s5, 32768, %s88_s25, [#allocation12], %s9246_s3, %s9246_s3, %s9247_s18  }
  0x39   :  { %s9248_s14 = smov [#allocation14]   ;;  %s8983_s26 = scalar_lea.hbm %s9771_s7, 8192 }
  0x3a   :  { %s109_s15 = sshll.u32 %s9248_s14, 4  ;;  %p8984_p10 = scmp.ne.s32.totalorder %s9771_s7, %s8983_s26  ;;  %s110_s15 = int_to_ptr.vmem [resolvable:$true] %s109_s15 }
  0x3b   :  { %p8987_p11 = scmp.lt.u32.totalorder %s8983_s26, %s9771_s7 }
  0x3d   :  { %p8989_p12 = pnand %p8987_p11, %p8984_p10 }
  0x3f   :  { %8992 = shalt.err (!%p8989_p12)
}
  0x40   :  { %s8993_s24 = scalar_lea.vmem %s110_s15, 8192  ;;  %p8998_p0 = scmp.lt.s32.totalorder %s110_s15, %s110_s15 }
  0x41   :  { %p8994_p13 = scmp.ne.s32.totalorder %s110_s15, %s8993_s24  ;;  %p8999_p1 = scmp.lt.s32.totalorder %s8993_s24, %s8993_s24 }
  0x43   :  { %p9000_p2 = por %p8999_p1, %p8998_p0 }
  0x45   :  { %p9001_p3 = pnand %p9000_p2, %p8994_p13 }
  0x47   :  { %9004 = shalt.err (!%p9001_p3)
}
  0x48   :  { %s9249_s5 = smov 128   ;;  %s9250_s25 = smov 8  }
  0x49   :  { %115 = dma.hbm_to_vmem [thread:$0]  %s9771_s7, 8192, %s110_s15, [#allocation15], %s9249_s5, %s9249_s5, %s9250_s25  }
  0x4a   :  { %s9251_s29 = smov [#allocation17]   ;;  %s9252_s3 = smov [#allocation20]  }
  0x4b   :  { %s131_s30 = sshll.u32 %s9251_s29, 4  ;;  %s153_s18 = sshll.u32 %s9252_s3, 4  ;;  %s132_s30 = int_to_ptr.vmem [resolvable:$true] %s131_s30  ;;  %s9387_s18 = int_to_ptr.vmem [resolvable:$true] %s153_s18 }
  0x4c   :  { %s9005_s14 = scalar_lea.hbm %s9773_s9, 2048 }
  0x4d   :  { %p9006_p4 = scmp.ne.s32.totalorder %s9773_s9, %s9005_s14  ;;  %p9009_p5 = scmp.lt.u32.totalorder %s9005_s14, %s9773_s9 }
  0x4f   :  { %p9011_p6 = pnand %p9009_p5, %p9006_p4 }
  0x51   :  { %9014 = shalt.err (!%p9011_p6)
}
  0x52   :  { %s9015_s7 = scalar_lea.vmem %s132_s30, 2048  ;;  %p9020_p8 = scmp.lt.s32.totalorder %s132_s30, %s132_s30 }
  0x53   :  { %p9016_p7 = scmp.ne.s32.totalorder %s132_s30, %s9015_s7  ;;  %p9021_p9 = scmp.lt.s32.totalorder %s9015_s7, %s9015_s7 }
  0x55   :  { %p9022_p10 = por %p9021_p9, %p9020_p8 }
  0x57   :  { %p9023_p11 = pnand %p9022_p10, %p9016_p7 }
  0x59   :  { %9026 = shalt.err (!%p9023_p11)
}
  0x5a   :  { %s9253_s15 = smov 64   ;;  %s9254_s20 = smov 4  }
  0x5b   :  { %137 = dma.hbm_to_vmem [thread:$0]  %s9773_s9, 2048, %s132_s30, [#allocation18], %s9253_s15, %s9253_s15, %s9254_s20  }
  0x5c   :  { %s9027_s28 = scalar_lea.hbm %s9775_s11, 1024 }
  0x5d   :  { %p9028_p12 = scmp.ne.s32.totalorder %s9775_s11, %s9027_s28  ;;  %p9031_p13 = scmp.lt.u32.totalorder %s9027_s28, %s9775_s11 }
  0x5f   :  { %p9033_p0 = pnand %p9031_p13, %p9028_p12 }
  0x61   :  { %9036 = shalt.err (!%p9033_p0)
}
  0x62   :  { %s9037_s14 = scalar_lea.vmem %s9387_s18, 1024  ;;  %p9042_p2 = scmp.lt.s32.totalorder %s9387_s18, %s9387_s18 }
  0x63   :  { %p9038_p1 = scmp.ne.s32.totalorder %s9387_s18, %s9037_s14  ;;  %p9043_p3 = scmp.lt.s32.totalorder %s9037_s14, %s9037_s14 }
  0x65   :  { %p9044_p4 = por %p9043_p3, %p9042_p2 }
  0x67   :  { %p9045_p5 = pnand %p9044_p4, %p9038_p1 }
  0x69   :  { %9048 = shalt.err (!%p9045_p5)
}
  0x6a   :  { %159 = dma.hbm_to_vmem [thread:$0]  %s9775_s11, 1024, %s9387_s18, [#allocation21], %s9253_s15, %s9253_s15, %s9254_s20  }
  0x6b   :  { %s9255_s16 = smov [#allocation2]   ;;  %s9256_s26 = smov [#allocation7]  }
  0x6c   :  { %s31_s1 = sshll.u32 %s9255_s16, 4  ;;  %s56_s17 = sshll.u32 %s9256_s26, 4  ;;  %s32_s1 = int_to_ptr.vmem [resolvable:$true] %s31_s1  ;;  %s57_s17 = int_to_ptr.vmem [resolvable:$true] %s56_s17 }
  0x6d   :  { %s9049_s22 = scalar_lea.hbm %s9764_s0, 128 }
  0x6e   :  { %p9050_p6 = scmp.ne.s32.totalorder %s9764_s0, %s9049_s22  ;;  %p9053_p7 = scmp.lt.u32.totalorder %s9049_s22, %s9764_s0 }
  0x70   :  { %p9055_p8 = pnand %p9053_p7, %p9050_p6 }
  0x72   :  { %9058 = shalt.err (!%p9055_p8)
}
  0x73   :  { %s9059_s11 = scalar_lea.vmem %s32_s1, 128  ;;  %p9064_p10 = scmp.lt.s32.totalorder %s32_s1, %s32_s1 }
  0x74   :  { %p9060_p9 = scmp.ne.s32.totalorder %s32_s1, %s9059_s11  ;;  %p9065_p11 = scmp.lt.s32.totalorder %s9059_s11, %s9059_s11 }
  0x76   :  { %p9066_p12 = por %p9065_p11, %p9064_p10 }
  0x78   :  { %p9067_p13 = pnand %p9066_p12, %p9060_p9 }
  0x7a   :  { %9070 = shalt.err (!%p9067_p13)
}
  0x7b   :  { %37 = dma.hbm_to_vmem [thread:$0]  %s9764_s0, 128, %s32_s1, [#allocation3], %s9253_s15, %s9253_s15, %s9254_s20  }
  0x7c   :  { %s9071_s14 = scalar_lea.hbm %s9766_s2, 128 }
  0x7d   :  { %p9072_p0 = scmp.ne.s32.totalorder %s9766_s2, %s9071_s14  ;;  %p9075_p1 = scmp.lt.u32.totalorder %s9071_s14, %s9766_s2 }
  0x7f   :  { %p9077_p2 = pnand %p9075_p1, %p9072_p0 }
  0x81   :  { %9080 = shalt.err (!%p9077_p2)
}
  0x82   :  { %s9081_s7 = scalar_lea.vmem %s57_s17, 128  ;;  %p9086_p4 = scmp.lt.s32.totalorder %s57_s17, %s57_s17 }
  0x83   :  { %p9082_p3 = scmp.ne.s32.totalorder %s57_s17, %s9081_s7  ;;  %p9087_p5 = scmp.lt.s32.totalorder %s9081_s7, %s9081_s7 }
  0x85   :  { %p9088_p6 = por %p9087_p5, %p9086_p4 }
  0x87   :  { %p9089_p7 = pnand %p9088_p6, %p9082_p3 }
  0x89   :  { %9092 = shalt.err (!%p9089_p7)
}
  0x8a   :  { %59 = dma.hbm_to_vmem [thread:$0]  %s9766_s2, 128, %s57_s17, [#allocation6]  }
  0x8b   :  { %s9257_s20 = smov [#allocation10]   ;;  %s9258_s21 = smov [#allocation13]  }
  0x8c   :  { %s78_s1 = sshll.u32 %s9257_s20, 4  ;;  %s100_s22 = sshll.u32 %s9258_s21, 4  ;;  %s79_s1 = int_to_ptr.vmem [resolvable:$true] %s78_s1  ;;  %s101_s22 = int_to_ptr.vmem [resolvable:$true] %s100_s22 }
  0x8d   :  { %s9093_s28 = scalar_lea.hbm %s9768_s4, 128 }
  0x8e   :  { %p9094_p8 = scmp.ne.s32.totalorder %s9768_s4, %s9093_s28  ;;  %p9097_p9 = scmp.lt.u32.totalorder %s9093_s28, %s9768_s4 }
  0x90   :  { %p9099_p10 = pnand %p9097_p9, %p9094_p8 }
  0x92   :  { %9102 = shalt.err (!%p9099_p10)
}
  0x93   :  { %s9103_s2 = scalar_lea.vmem %s79_s1, 128  ;;  %p9108_p12 = scmp.lt.s32.totalorder %s79_s1, %s79_s1 }
  0x94   :  { %p9104_p11 = scmp.ne.s32.totalorder %s79_s1, %s9103_s2  ;;  %p9109_p13 = scmp.lt.s32.totalorder %s9103_s2, %s9103_s2 }
  0x96   :  { %p9110_p0 = por %p9109_p13, %p9108_p12 }
  0x98   :  { %p9111_p1 = pnand %p9110_p0, %p9104_p11 }
  0x9a   :  { %9114 = shalt.err (!%p9111_p1)
}
  0x9b   :  { %81 = dma.hbm_to_vmem [thread:$0]  %s9768_s4, 128, %s79_s1, [#allocation9]  }
  0x9c   :  { %s9115_s9 = scalar_lea.hbm %s9770_s6, 64 }
  0x9d   :  { %p9116_p2 = scmp.ne.s32.totalorder %s9770_s6, %s9115_s9  ;;  %p9119_p3 = scmp.lt.u32.totalorder %s9115_s9, %s9770_s6 }
  0x9f   :  { %p9121_p4 = pnand %p9119_p3, %p9116_p2 }
  0xa1   :  { %9124 = shalt.err (!%p9121_p4)
}
  0xa2   :  { %s9125_s0 = scalar_lea.vmem %s101_s22, 64  ;;  %p9130_p6 = scmp.lt.s32.totalorder %s101_s22, %s101_s22 }
  0xa3   :  { %p9126_p5 = scmp.ne.s32.totalorder %s101_s22, %s9125_s0  ;;  %p9131_p7 = scmp.lt.s32.totalorder %s9125_s0, %s9125_s0 }
  0xa5   :  { %p9132_p8 = por %p9131_p7, %p9130_p6 }
  0xa7   :  { %p9133_p9 = pnand %p9132_p8, %p9126_p5 }
  0xa9   :  { %9136 = shalt.err (!%p9133_p9)
}
  0xaa   :  { %103 = dma.hbm_to_vmem [thread:$0]  %s9770_s6, 64, %s101_s22, [#allocation12]  }
  0xab   :  { %s9259_s20 = smov [#allocation16]   ;;  %s9260_s21 = smov [#allocation19]  }
  0xac   :  { %s122_s1 = sshll.u32 %s9259_s20, 4  ;;  %s144_s24 = sshll.u32 %s9260_s21, 4  ;;  %s123_s1 = int_to_ptr.vmem [resolvable:$true] %s122_s1  ;;  %s145_s24 = int_to_ptr.vmem [resolvable:$true] %s144_s24 }
  0xad   :  { %s9137_s29 = scalar_lea.hbm %s9772_s8, 32 }
  0xae   :  { %p9138_p10 = scmp.ne.s32.totalorder %s9772_s8, %s9137_s29  ;;  %p9141_p11 = scmp.lt.u32.totalorder %s9137_s29, %s9772_s8 }
  0xb0   :  { %p9143_p12 = pnand %p9141_p11, %p9138_p10 }
  0xb2   :  { %9146 = shalt.err (!%p9143_p12)
}
  0xb3   :  { %s9147_s6 = scalar_lea.vmem %s123_s1, 32  ;;  %p9152_p0 = scmp.lt.s32.totalorder %s123_s1, %s123_s1 }
  0xb4   :  { %p9148_p13 = scmp.ne.s32.totalorder %s123_s1, %s9147_s6  ;;  %p9153_p1 = scmp.lt.s32.totalorder %s9147_s6, %s9147_s6 }
  0xb6   :  { %p9154_p2 = por %p9153_p1, %p9152_p0 }
  0xb8   :  { %p9155_p3 = pnand %p9154_p2, %p9148_p13 }
  0xba   :  { %9158 = shalt.err (!%p9155_p3)
}
  0xbb   :  { %125 = dma.hbm_to_vmem [thread:$0]  %s9772_s8, 32, %s123_s1, [#allocation15]  }
  0xbc   :  { %s9159_s14 = scalar_lea.hbm %s9774_s10, 16 }
  0xbd   :  { %p9160_p4 = scmp.ne.s32.totalorder %s9774_s10, %s9159_s14  ;;  %p9163_p5 = scmp.lt.u32.totalorder %s9159_s14, %s9774_s10 }
  0xbf   :  { %p9165_p6 = pnand %p9163_p5, %p9160_p4 }
  0xc1   :  { %9168 = shalt.err (!%p9165_p6)
}
  0xc2   :  { %s9169_s7 = scalar_lea.vmem %s145_s24, 16  ;;  %s9173_s0 = scalar_lea.vmem %s145_s24, 32 }
  0xc3   :  { %p9170_p7 = scmp.ne.s32.totalorder %s145_s24, %s9169_s7  ;;  %p9174_p8 = scmp.lt.s32.totalorder %s145_s24, %s145_s24 }
  0xc4   :  { %p9175_p9 = scmp.lt.s32.totalorder %s9173_s0, %s9169_s7 }
  0xc6   :  { %p9176_p10 = por %p9175_p9, %p9174_p8 }
  0xc8   :  { %p9177_p11 = pnand %p9176_p10, %p9170_p7 }
  0xca   :  { %9180 = shalt.err (!%p9177_p11)
}
  0xcb   :  { %147 = dma.hbm_to_vmem [thread:$0]  %s9774_s10, 16, %s145_s24, [#allocation18]  }
  0xcc   :  { %s9261_s15 = smov [#allocation22]   ;;  %s9181_s27 = scalar_lea.hbm %s9776_s12, 16 }
  0xcd   :  { %s166_s20 = sshll.u32 %s9261_s15, 4  ;;  %p9182_p12 = scmp.ne.s32.totalorder %s9776_s12, %s9181_s27  ;;  %s167_s20 = int_to_ptr.vmem [resolvable:$true] %s166_s20 }
  0xce   :  { %p9185_p13 = scmp.lt.u32.totalorder %s9181_s27, %s9776_s12 }
  0xd0   :  { %p9187_p0 = pnand %p9185_p13, %p9182_p12 }
  0xd2   :  { %9190 = shalt.err (!%p9187_p0)
}
  0xd3   :  { %s9191_s3 = scalar_lea.vmem %s167_s20, 16  ;;  %s9195_s10 = scalar_lea.vmem %s167_s20, 32 }
  0xd4   :  { %p9192_p1 = scmp.ne.s32.totalorder %s167_s20, %s9191_s3  ;;  %p9196_p2 = scmp.lt.s32.totalorder %s167_s20, %s167_s20 }
  0xd5   :  { %p9197_p3 = scmp.lt.s32.totalorder %s9195_s10, %s9191_s3 }
  0xd7   :  { %p9198_p4 = por %p9197_p3, %p9196_p2 }
  0xd9   :  { %p9199_p5 = pnand %p9198_p4, %p9192_p1 }
  0xdb   :  { %9202 = shalt.err (!%p9199_p5)
}
  0xdc   :  { %169 = dma.hbm_to_vmem [thread:$0]  %s9776_s12, 16, %s167_s20, [#allocation21]  }
  0xdd   :  { %9225 = dma.done.wait [#allocation3], 128  }
  0xde   :  { %9226 = vsyncadd [#allocation3], 4294967168 }
  0xdf   :  { %9227 = dma.done.wait [#allocation6], 4224  }
  0xe0   :  { %9228 = vsyncadd [#allocation6], 4294963072 }
  0xe1   :  { %9229 = dma.done.wait [#allocation9], 65664  }
  0xe2   :  { %9230 = vsyncadd [#allocation9], 4294901632 }
  0xe3   :  { %9231 = dma.done.wait [#allocation12], 32832  }
  0xe4   :  { %9232 = vsyncadd [#allocation12], 4294934464 }
  0xe5   :  { %9233 = dma.done.wait [#allocation15], 8224  }
  0xe6   :  { %9234 = vsyncadd [#allocation15], 4294959072 }
  0xe7   :  { %9235 = dma.done.wait [#allocation18], 2064  }
  0xe8   :  { %9236 = vsyncadd [#allocation18], 4294965232 }
  0xe9   :  { %9237 = dma.done.wait [#allocation21], 1040  }
  0xea   :  { %9238 = vsyncadd [#allocation21], 4294966256  ;;  %v9262_v0 = vmov 0   ;;  %v212_v1 = vld [vmem:[#allocation5] sm:$0xff]  ;;  %v213_v16 = vld [vmem:[#allocation5 + $0x8] sm:$0xff]  ;;  %vm451_vm0 = vcmask 523264  }
  0xeb   :  { %487 = vmatprep.mubr.bf16.mxu1 %v9262_v0  ;;  %v216_v2 = vld [vmem:[#allocation5 + $0x20] sm:$0xff]  ;;  %v217_v17 = vld [vmem:[#allocation5 + $0x28] sm:$0xff]  ;;  %v9512_v29 = vld [vmem:[#allocation2] sm:$0xff]   ;;  %s9265_s12 = smov [#allocation23]  }
  0xec   :  { %v220_v3 = vld [vmem:[#allocation5 + $0x40] sm:$0xff]  ;;  %v7338_v4 = vcombine.high %v212_v1, %v216_v2  ;;  %v7337_v5 = vcombine.low %v212_v1, %v216_v2  ;;  %v732_v18 = vld [vmem:[#allocation8] sm:$0xff]  ;;  %v7340_v21 = vcombine.high %v213_v16, %v217_v17  ;;  %v7339_v32 = vcombine.low %v213_v16, %v217_v17  ;;  %v214_v51 = vld [vmem:[#allocation5 + $0x10] sm:$0xff]  ;;  %s7318_s6 = sshll.u32 %s9265_s12, 4  ;;  %s7319_s6 = int_to_ptr.vmem [resolvable:$true] %s7318_s6 }
  0xed   :  { %v224_v6 = vld [vmem:[#allocation5 + $0x60] sm:$0xff]  ;;  %v736_v20 = vld [vmem:[#allocation8 + $0x20] sm:$0xff]  ;;  %v218_v52 = vld [vmem:[#allocation5 + $0x30] sm:$0xff]  ;;  %s9203_s22 = scalar_lea.vmem %s7319_s6, 256  ;;  %p9208_p7 = scmp.lt.s32.totalorder %s7319_s6, %s7319_s6 }
  0xee   :  { %v7346_v7 = vcombine.high %v220_v3, %v224_v6  ;;  %v228_v8 = vld [vmem:[#allocation5 + $0x80] sm:$0xff]  ;;  %455 = vmatprep.subr.bf16.mxu1 %v7338_v4  ;;  %v7345_v10 = vcombine.low %v220_v3, %v224_v6  ;;  %v7374_v22 = vcombine.high %v732_v18, %v736_v20  ;;  %v7373_v23 = vcombine.low %v732_v18, %v736_v20  ;;  %v740_v24 = vld [vmem:[#allocation8 + $0x40] sm:$0xff]  ;;  %v222_v58 = vld [vmem:[#allocation5 + $0x50] sm:$0xff]  ;;  %p9204_p6 = scmp.ne.s32.totalorder %s7319_s6, %s9203_s22  ;;  %p9209_p8 = scmp.lt.s32.totalorder %s9203_s22, %s9203_s22 }
  0xef   :  { %v232_v9 = vld [vmem:[#allocation5 + $0xa0] sm:$0xff]  ;;  %456 = vmatpush1.bf16.msra.mxu1 %v7337_v5  ;;  %v744_v25 = vld [vmem:[#allocation8 + $0x60] sm:$0xff]  ;;  %v7342_v57 = vcombine.high %v214_v51, %v218_v52  ;;  %v226_v59 = vld [vmem:[#allocation5 + $0x70] sm:$0xff]  ;;  %v7341_v1 = vcombine.low %v214_v51, %v218_v52 }
  0xf0   :  { %457 = vmatprep.subr.bf16.mxu1 %v7346_v7  ;;  %v7354_v11 = vcombine.high %v228_v8, %v232_v9  ;;  %v236_v12 = vld [vmem:[#allocation5 + $0xc0] sm:$0xff]  ;;  %v7353_v14 = vcombine.low %v228_v8, %v232_v9  ;;  %v221_v26 = vld [vmem:[#allocation5 + $0x48] sm:$0xff]  ;;  %v7382_v28 = vcombine.high %v740_v24, %v744_v25  ;;  %3846 = vmatprep.subr.bf16.mxu0 %v7374_v22  ;;  %v230_v2 = vld [vmem:[#allocation5 + $0x90] sm:$0xff]  ;;  %p9210_p9 = por %p9209_p8, %p9208_p7 }
  0xf1   :  { %v240_v13 = vld [vmem:[#allocation5 + $0xe0] sm:$0xff]  ;;  %v225_v27 = vld [vmem:[#allocation5 + $0x68] sm:$0xff]  ;;  %3847 = vmatpush1.bf16.msra.mxu0 %v7373_v23  ;;  %v7381_v34 = vcombine.low %v740_v24, %v744_v25  ;;  %v234_v3 = vld [vmem:[#allocation5 + $0xb0] sm:$0xff]  ;;  %v7350_v4 = vcombine.high %v222_v58, %v226_v59  ;;  %v7349_v9 = vcombine.low %v222_v58, %v226_v59 }
  0xf2   :  { %v7362_v15 = vcombine.high %v236_v12, %v240_v13  ;;  %v7361_v19 = vcombine.low %v236_v12, %v240_v13  ;;  %v748_v30 = vld [vmem:[#allocation8 + $0x80] sm:$0xff]  ;;  %v7348_v33 = vcombine.high %v221_v26, %v225_v27  ;;  %3848 = vmatprep.subr.bf16.mxu0 %v7382_v28  ;;  %v7347_v40 = vcombine.low %v221_v26, %v225_v27  ;;  %v215_v18 = vld [vmem:[#allocation5 + $0x18] sm:$0xff]  ;;  %v733_v51 = vld [vmem:[#allocation8 + $0x8] sm:$0xff]  ;;  %p9211_p10 = pnand %p9210_p9, %p9204_p6 }
  0xf3   :  { %458 = vmatpush1.bf16.msra.mxu1 %v7345_v10  ;;  %v752_v31 = vld [vmem:[#allocation8 + $0xa0] sm:$0xff]  ;;  %v238_v10 = vld [vmem:[#allocation5 + $0xd0] sm:$0xff]  ;;  %v7358_v12 = vcombine.high %v230_v2, %v234_v3  ;;  %v7357_v17 = vcombine.low %v230_v2, %v234_v3  ;;  %v223_v26 = vld [vmem:[#allocation5 + $0x58] sm:$0xff] }
  0xf4   :  { %459 = vmatprep.subr.bf16.mxu1 %v7354_v11  ;;  %v229_v35 = vld [vmem:[#allocation5 + $0x88] sm:$0xff]  ;;  %v7390_v37 = vcombine.high %v748_v30, %v752_v31  ;;  %v7389_v42 = vcombine.low %v748_v30, %v752_v31  ;;  %v242_v11 = vld [vmem:[#allocation5 + $0xf0] sm:$0xff]  ;;  %v227_v27 = vld [vmem:[#allocation5 + $0x78] sm:$0xff] }
  0xf5   :  { %v233_v36 = vld [vmem:[#allocation5 + $0xa8] sm:$0xff]  ;;  %3849 = vmatpush1.bf16.msra.mxu0 %v7381_v34  ;;  %v7366_v20 = vcombine.high %v238_v10, %v242_v11  ;;  %v7365_v25 = vcombine.low %v238_v10, %v242_v11  ;;  %v737_v52 = vld [vmem:[#allocation8 + $0x28] sm:$0xff] }
  0xf6   :  { %v756_v38 = vld [vmem:[#allocation8 + $0xc0] sm:$0xff]  ;;  %v7356_v41 = vcombine.high %v229_v35, %v233_v36  ;;  %3850 = vmatprep.subr.bf16.mxu0 %v7390_v37  ;;  %v7355_v48 = vcombine.low %v229_v35, %v233_v36  ;;  %v231_v35 = vld [vmem:[#allocation5 + $0x98] sm:$0xff]  ;;  %v7352_v37 = vcombine.high %v223_v26, %v227_v27  ;;  %v741_v58 = vld [vmem:[#allocation8 + $0x48] sm:$0xff] }
  0xf7   :  { %460 = vmatpush1.bf16.msra.mxu1 %v7353_v14  ;;  %v760_v39 = vld [vmem:[#allocation8 + $0xe0] sm:$0xff]  ;;  %v235_v36 = vld [vmem:[#allocation5 + $0xb8] sm:$0xff]  ;;  %v745_v59 = vld [vmem:[#allocation8 + $0x68] sm:$0xff] }
  0xf8   :  { %461 = vmatprep.subr.bf16.mxu1 %v7362_v15  ;;  %v237_v43 = vld [vmem:[#allocation5 + $0xc8] sm:$0xff]  ;;  %v7398_v45 = vcombine.high %v756_v38, %v760_v39  ;;  %v7397_v50 = vcombine.low %v756_v38, %v760_v39  ;;  %v753_v2 = vld [vmem:[#allocation8 + $0xa8] sm:$0xff]  ;;  %v7384_v3 = vcombine.high %v741_v58, %v745_v59 }
  0xf9   :  { %v241_v44 = vld [vmem:[#allocation5 + $0xe8] sm:$0xff]  ;;  %3851 = vmatpush1.bf16.msra.mxu0 %v7389_v42  ;;  %v7351_v42 = vcombine.low %v223_v26, %v227_v27  ;;  %v769_v10 = vld [vmem:[#allocation8 + $0x128] sm:$0xff] }
  0xfa   :  { %v764_v46 = vld [vmem:[#allocation8 + $0x100] sm:$0xff]  ;;  %v7364_v49 = vcombine.high %v237_v43, %v241_v44  ;;  %3852 = vmatprep.subr.bf16.mxu0 %v7398_v45  ;;  %v7363_v56 = vcombine.low %v237_v43, %v241_v44  ;;  %v239_v43 = vld [vmem:[#allocation5 + $0xd8] sm:$0xff]  ;;  %v7360_v45 = vcombine.high %v231_v35, %v235_v36 }
  0xfb   :  { %462 = vmatpush1.bf16.msra.mxu1 %v7361_v19  ;;  %v768_v47 = vld [vmem:[#allocation8 + $0x120] sm:$0xff]  ;;  %v219_v19 = vld [vmem:[#allocation5 + $0x38] sm:$0xff] }
  0xfc   :  { %498 = vmatprep.subr.bf16.mxu1 %v7340_v21  ;;  %v7406_v53 = vcombine.high %v764_v46, %v768_v47  ;;  %v772_v54 = vld [vmem:[#allocation8 + $0x140] sm:$0xff]  ;;  %v7405_v60 = vcombine.low %v764_v46, %v768_v47  ;;  %v7344_v28 = vcombine.high %v215_v18, %v219_v19  ;;  %v7343_v34 = vcombine.low %v215_v18, %v219_v19  ;;  %v243_v44 = vld [vmem:[#allocation5 + $0xf8] sm:$0xff] }
  0xfd   :  { %v776_v55 = vld [vmem:[#allocation8 + $0x160] sm:$0xff]  ;;  %3853 = vmatpush1.bf16.msra.mxu0 %v7397_v50  ;;  %v7359_v50 = vcombine.low %v231_v35, %v235_v36 }
  0xfe   :  { %7369 = vmatmul.mubr.msk.bf16.vlgmr.msra.gmra.mrb[0].mxu1 %vm451_vm0, %v9512_v29  ;;  %3854 = vmatprep.subr.bf16.mxu0 %v7406_v53  ;;  %v7414_v61 = vcombine.high %v772_v54, %v776_v55  ;;  %v780_v62 = vld [vmem:[#allocation8 + $0x180] sm:$0xff]  ;;  %v7413_v5 = vcombine.low %v772_v54, %v776_v55  ;;  %v7368_v53 = vcombine.high %v239_v43, %v243_v44 }
  0xff   :  { %499 = vmatpush1.bf16.msra.mxu1 %v7339_v32  ;;  %530 = vmatprep.mubr.bf16.mxu1 %v9262_v0  ;;  %v784_v63 = vld [vmem:[#allocation8 + $0x1a0] sm:$0xff] }
 0x100   :  { %500 = vmatprep.subr.bf16.mxu1 %v7348_v33  ;;  %v788_v6 = vld [vmem:[#allocation8 + $0x1c0] sm:$0xff]  ;;  %v7422_v8 = vcombine.high %v780_v62, %v784_v63  ;;  %v7421_v13 = vcombine.low %v780_v62, %v784_v63  ;;  %v7375_v63 = vcombine.low %v733_v51, %v737_v52 }
 0x101   :  { %3855 = vmatpush1.bf16.msra.mxu0 %v7405_v60  ;;  %v792_v7 = vld [vmem:[#allocation8 + $0x1e0] sm:$0xff]  ;;  %v7376_v60 = vcombine.high %v733_v51, %v737_v52 }
 0x102   :  { %3856 = vmatprep.subr.bf16.mxu0 %v7414_v61  ;;  %v796_v14 = vld [vmem:[#allocation8 + $0x200] sm:$0xff]  ;;  %v7430_v16 = vcombine.high %v788_v6, %v792_v7  ;;  %v7429_v21 = vcombine.low %v788_v6, %v792_v7  ;;  %v761_v6 = vld [vmem:[#allocation8 + $0xe8] sm:$0xff] }
 0x103   :  { %501 = vmatpush1.bf16.msra.mxu1 %v7347_v40  ;;  %v800_v15 = vld [vmem:[#allocation8 + $0x220] sm:$0xff] }
 0x104   :  { %502 = vmatprep.subr.bf16.mxu1 %v7356_v41  ;;  %v804_v22 = vld [vmem:[#allocation8 + $0x240] sm:$0xff]  ;;  %v7438_v24 = vcombine.high %v796_v14, %v800_v15  ;;  %v7437_v30 = vcombine.low %v796_v14, %v800_v15  ;;  %v777_v14 = vld [vmem:[#allocation8 + $0x168] sm:$0xff] }
 0x105   :  { %3857 = vmatpush1.bf16.msra.mxu0 %v7413_v5  ;;  %v808_v23 = vld [vmem:[#allocation8 + $0x260] sm:$0xff]  ;;  %v757_v5 = vld [vmem:[#allocation8 + $0xc8] sm:$0xff] }
 0x106   :  { %3858 = vmatprep.subr.bf16.mxu0 %v7422_v8  ;;  %v812_v31 = vld [vmem:[#allocation8 + $0x280] sm:$0xff]  ;;  %v7446_v33 = vcombine.high %v804_v22, %v808_v23  ;;  %v7445_v38 = vcombine.low %v804_v22, %v808_v23  ;;  %v7400_v11 = vcombine.high %v757_v5, %v761_v6 }
 0x107   :  { %503 = vmatpush1.bf16.msra.mxu1 %v7355_v48  ;;  %v816_v32 = vld [vmem:[#allocation8 + $0x2a0] sm:$0xff] }
 0x108   :  { %504 = vmatprep.subr.bf16.mxu1 %v7364_v49  ;;  %v820_v39 = vld [vmem:[#allocation8 + $0x2c0] sm:$0xff]  ;;  %v7454_v41 = vcombine.high %v812_v31, %v816_v32  ;;  %v7453_v46 = vcombine.low %v812_v31, %v816_v32 }
 0x109   :  { %3859 = vmatpush1.bf16.msra.mxu0 %v7421_v13  ;;  %v824_v40 = vld [vmem:[#allocation8 + $0x2e0] sm:$0xff]  ;;  %v773_v13 = vld [vmem:[#allocation8 + $0x148] sm:$0xff] }
 0x10a   :  { %3860 = vmatprep.subr.bf16.mxu0 %v7430_v16  ;;  %v828_v47 = vld [vmem:[#allocation8 + $0x300] sm:$0xff]  ;;  %v7462_v49 = vcombine.high %v820_v39, %v824_v40  ;;  %v7461_v54 = vcombine.low %v820_v39, %v824_v40  ;;  %v781_v16 = vld [vmem:[#allocation8 + $0x188] sm:$0xff]  ;;  %v7416_v18 = vcombine.high %v773_v13, %v777_v14  ;;  %v7415_v19 = vcombine.low %v773_v13, %v777_v14 }
 0x10b   :  { %505 = vmatpush1.bf16.msra.mxu1 %v7363_v56  ;;  %v832_v48 = vld [vmem:[#allocation8 + $0x320] sm:$0xff]  ;;  %v825_v40 = vld [vmem:[#allocation8 + $0x2e8] sm:$0xff] }
 0x10c   :  { %541 = vmatprep.subr.bf16.mxu1 %v7342_v57  ;;  %v9523_v55 = vld [vmem:[#allocation8 + $0x340] sm:$0xff]  ;;  %v7367_v57 = vcombine.low %v239_v43, %v243_v44  ;;  %v7469_v61 = vcombine.low %v828_v47, %v832_v48 }
 0x10d   :  { %3861 = vmatpush1.bf16.msra.mxu0 %v7429_v21  ;;  %v9525_v56 = vld [vmem:[#allocation8 + $0x360] sm:$0xff]  ;;  %v793_v21 = vld [vmem:[#allocation8 + $0x1e8] sm:$0xff] }
 0x10e   :  { %7370 = vmatmul.mubr.msk.bf16.vlgmr.msra.gmra.mrb[4].mxu1 %vm451_vm0, %v9512_v29  ;;  %3862 = vmatprep.subr.bf16.mxu0 %v7438_v24  ;;  %v7478_v62 = vcombine.high %v9523_v55, %v9525_v56  ;;  %v797_v24 = vld [vmem:[#allocation8 + $0x208] sm:$0xff] }
 0x10f   :  { %542 = vmatpush1.bf16.msra.mxu1 %v7341_v1  ;;  %573 = vmatprep.mubr.bf16.mxu1 %v9262_v0  ;;  %v749_v1 = vld [vmem:[#allocation8 + $0x88] sm:$0xff] }
 0x110   :  { %543 = vmatprep.subr.bf16.mxu1 %v7350_v4  ;;  %v7383_v4 = vcombine.low %v741_v58, %v745_v59  ;;  %v7392_v7 = vcombine.high %v749_v1, %v753_v2  ;;  %v7391_v8 = vcombine.low %v749_v1, %v753_v2  ;;  %v9537_v58 = vld [vmem:[#allocation8 + $0x408] sm:$0xff] }
 0x111   :  { %3863 = vmatpush1.bf16.msra.mxu0 %v7437_v30  ;;  %v809_v30 = vld [vmem:[#allocation8 + $0x268] sm:$0xff] }
 0x112   :  { %3864 = vmatprep.subr.bf16.mxu0 %v7446_v33  ;;  %v813_v33 = vld [vmem:[#allocation8 + $0x288] sm:$0xff] }
 0x113   :  { %544 = vmatpush1.bf16.msra.mxu1 %v7349_v9  ;;  %v765_v9 = vld [vmem:[#allocation8 + $0x108] sm:$0xff] }
 0x114   :  { %545 = vmatprep.subr.bf16.mxu1 %v7358_v12  ;;  %v7399_v12 = vcombine.low %v757_v5, %v761_v6  ;;  %v7408_v15 = vcombine.high %v765_v9, %v769_v10  ;;  %v853_v5 = vld [vmem:[#allocation8 + $0x3c8] sm:$0xff] }
 0x115   :  { %3865 = vmatpush1.bf16.msra.mxu0 %v7445_v38  ;;  %v7477_v38 = vcombine.low %v9523_v55, %v9525_v56  ;;  %v857_v6 = vld [vmem:[#allocation8 + $0x3e8] sm:$0xff] }
 0x116   :  { %3866 = vmatprep.subr.bf16.mxu0 %v7454_v41  ;;  %v844_v41 = vld [vmem:[#allocation8 + $0x380] sm:$0xff] }
 0x117   :  { %546 = vmatpush1.bf16.msra.mxu1 %v7357_v17  ;;  %v785_v17 = vld [vmem:[#allocation8 + $0x1a8] sm:$0xff] }
 0x118   :  { %547 = vmatprep.subr.bf16.mxu1 %v7366_v20  ;;  %v789_v20 = vld [vmem:[#allocation8 + $0x1c8] sm:$0xff]  ;;  %v7424_v22 = vcombine.high %v781_v16, %v785_v17  ;;  %v7423_v23 = vcombine.low %v781_v16, %v785_v17 }
 0x119   :  { %3867 = vmatpush1.bf16.msra.mxu0 %v7453_v46  ;;  %v7432_v26 = vcombine.high %v789_v20, %v793_v21  ;;  %v7431_v27 = vcombine.low %v789_v20, %v793_v21 }
 0x11a   :  { %3868 = vmatprep.subr.bf16.mxu0 %v7462_v49  ;;  %v852_v49 = vld [vmem:[#allocation8 + $0x3c0] sm:$0xff] }
 0x11b   :  { %548 = vmatpush1.bf16.msra.mxu1 %v7365_v25  ;;  %v801_v25 = vld [vmem:[#allocation8 + $0x228] sm:$0xff] }
 0x11c   :  { %584 = vmatprep.subr.bf16.mxu1 %v7344_v28  ;;  %v805_v28 = vld [vmem:[#allocation8 + $0x248] sm:$0xff]  ;;  %v7440_v31 = vcombine.high %v797_v24, %v801_v25  ;;  %v7439_v32 = vcombine.low %v797_v24, %v801_v25 }
 0x11d   :  { %3869 = vmatpush1.bf16.msra.mxu0 %v7461_v54  ;;  %v7448_v35 = vcombine.high %v805_v28, %v809_v30  ;;  %v7447_v36 = vcombine.low %v805_v28, %v809_v30  ;;  %v841_v54 = vld [vmem:[#allocation8 + $0x368] sm:$0xff] }
 0x11e   :  { %7371 = vmatmul.mubr.msk.bf16.vlgmr.msra.gmra.mrb[8].mxu1 %vm451_vm0, %v9512_v29 }
 0x11f   :  { %585 = vmatpush1.bf16.msra.mxu1 %v7343_v34  ;;  %616 = vmatprep.mubr.bf16.mxu1 %v9262_v0  ;;  %v7470_v0 = vcombine.high %v828_v47, %v832_v48  ;;  %v817_v34 = vld [vmem:[#allocation8 + $0x2a8] sm:$0xff] }
 0x120   :  { %586 = vmatprep.subr.bf16.mxu1 %v7352_v37  ;;  %v821_v37 = vld [vmem:[#allocation8 + $0x2c8] sm:$0xff]  ;;  %v7456_v39 = vcombine.high %v813_v33, %v817_v34  ;;  %v7455_v44 = vcombine.low %v813_v33, %v817_v34  ;;  %v872_v34 = vld [vmem:[#allocation8 + $0x460] sm:$0xff] }
 0x121   :  { %3870 = vmatprep.subr.bf16.mxu0 %v7470_v0  ;;  %v7464_v47 = vcombine.high %v821_v37, %v825_v40  ;;  %v833_v48 = vld [vmem:[#allocation8 + $0x328] sm:$0xff]  ;;  %v7463_v52 = vcombine.low %v821_v37, %v825_v40  ;;  %v9533_v0 = vld [vmem:[#allocation8 + $0x400] sm:$0xff] }
 0x122   :  { %3871 = vmatpush1.bf16.msra.mxu0 %v7469_v61 }
 0x123   :  { %587 = vmatpush1.bf16.msra.mxu1 %v7351_v42  ;;  %3872 = vmatprep.subr.bf16.mxu0 %v7478_v62  ;;  %v848_v42 = vld [vmem:[#allocation8 + $0x3a0] sm:$0xff]  ;;  %v845_v62 = vld [vmem:[#allocation8 + $0x388] sm:$0xff] }
 0x124   :  { %588 = vmatprep.subr.bf16.mxu1 %v7360_v45  ;;  %v7486_v43 = vcombine.high %v844_v41, %v848_v42  ;;  %v829_v45 = vld [vmem:[#allocation8 + $0x308] sm:$0xff]  ;;  %v7485_v46 = vcombine.low %v844_v41, %v848_v42 }
 0x125   :  { %v7472_v56 = vcombine.high %v829_v45, %v833_v48  ;;  %v7471_v61 = vcombine.low %v829_v45, %v833_v48  ;;  %v881_v48 = vld [vmem:[#allocation8 + $0x4a8] sm:$0xff] }
 0x126   :  { %3873 = vmatpush1.bf16.msra.mxu0 %v7477_v38 }
 0x127   :  { %589 = vmatpush1.bf16.msra.mxu1 %v7359_v50  ;;  %3874 = vmatprep.subr.bf16.mxu0 %v7486_v43  ;;  %v856_v50 = vld [vmem:[#allocation8 + $0x3e0] sm:$0xff] }
 0x128   :  { %590 = vmatprep.subr.bf16.mxu1 %v7368_v53  ;;  %v7494_v51 = vcombine.high %v852_v49, %v856_v50  ;;  %v837_v53 = vld [vmem:[#allocation8 + $0x348] sm:$0xff]  ;;  %v7493_v55 = vcombine.low %v852_v49, %v856_v50 }
 0x12a   :  { %3875 = vmatpush1.bf16.msra.mxu0 %v7485_v46  ;;  %v880_v46 = vld [vmem:[#allocation8 + $0x4a0] sm:$0xff] }
 0x12b   :  { %591 = vmatpush1.bf16.msra.mxu1 %v7367_v57  ;;  %3876 = vmatprep.subr.bf16.mxu0 %v7494_v51  ;;  %v9535_v57 = vld [vmem:[#allocation8 + $0x420] sm:$0xff] }
 0x12c   :  { %4018 = vmatprep.subr.bf16.mxu1 %v7376_v60  ;;  %v7502_v59 = vcombine.high %v9533_v0, %v9535_v57  ;;  %v9541_v60 = vld [vmem:[#allocation8 + $0x428] sm:$0xff]  ;;  %v7501_v1 = vcombine.low %v9533_v0, %v9535_v57 }
 0x12d   :  { %v7503_v2 = vcombine.low %v9537_v58, %v9541_v60  ;;  %v885_v0 = vld [vmem:[#allocation8 + $0x4c8] sm:$0xff] }
 0x12e   :  { %7372 = vmatmul.mubr.msk.bf16.vlgmr.msra.gmra.mrb[12].mxu1 %vm451_vm0, %v9512_v29  ;;  %v7407_v29 = vcombine.low %v765_v9, %v769_v10  ;;  %3877 = vmatpush1.bf16.msra.mxu0 %v7493_v55  ;;  %v7496_v9 = vcombine.high %v853_v5, %v857_v6  ;;  %v7495_v10 = vcombine.low %v853_v5, %v857_v6  ;;  %v889_v57 = vld [vmem:[#allocation8 + $0x4e8] sm:$0xff] }
 0x12f   :  { %4019 = vmatpush1.bf16.msra.mxu1 %v7375_v63  ;;  %v849_v63 = vld [vmem:[#allocation8 + $0x3a8] sm:$0xff]  ;;  %3889 = vmatprep.subr.bf16.mxu0 %v7502_v59 }
 0x130   :  { %4020 = vmatprep.subr.bf16.mxu1 %v7384_v3  ;;  %v7480_v3 = vcombine.high %v837_v53, %v841_v54 }
 0x133   :  { %4021 = vmatpush1.bf16.msra.mxu1 %v7383_v4  ;;  %v7479_v4 = vcombine.low %v837_v53, %v841_v54  ;;  %v884_v54 = vld [vmem:[#allocation8 + $0x4c0] sm:$0xff] }
 0x134   :  { %4022 = vmatprep.subr.bf16.mxu1 %v7392_v7  ;;  %v7488_v7 = vcombine.high %v845_v62, %v849_v63 }
 0x137   :  { %4023 = vmatpush1.bf16.msra.mxu1 %v7391_v8  ;;  %v7487_v8 = vcombine.low %v845_v62, %v849_v63 }
 0x138   :  { %4024 = vmatprep.subr.bf16.mxu1 %v7400_v11  ;;  %v7504_v11 = vcombine.high %v9537_v58, %v9541_v60 }
 0x13b   :  { %4025 = vmatpush1.bf16.msra.mxu1 %v7399_v12  ;;  %v246_v12 = vlaneseq }
 0x13c   :  { %4026 = vmatprep.subr.bf16.mxu1 %v7408_v15  ;;  %v9555_v15 = vld [vmem:[#allocation7] sm:$0xff] }
 0x13d   :  { %v9550_v13 = vshrl.u32 %v246_v12, 7 }
 0x13f   :  { %4027 = vmatpush1.bf16.msra.mxu1 %v7407_v29  ;;  %v9553_v14 = vsub.s32 0, %v9550_v13  ;;  %v9558_v29 = vsub.s32 1, %v9550_v13  ;;  %v9569_v41 = vsub.s32 2, %v9550_v13  ;;  %v9572_v45 = vsub.s32 3, %v9550_v13 }
 0x140   :  { %4028 = vmatprep.subr.bf16.mxu1 %v7416_v18 }
 0x141   :  { %v249_v16 = vrot.slane %v9555_v15, %v9553_v14  ;;  %v253_v17 = vrot.slane %v9555_v15, %v9558_v29  ;;  %v257_v51 = vrot.slane %v9555_v15, %v9569_v41  ;;  %v261_v55 = vrot.slane %v9555_v15, %v9572_v45 }
 0x143   :  { %4029 = vmatpush1.bf16.msra.mxu1 %v7415_v19 }
 0x144   :  { %4030 = vmatprep.subr.bf16.mxu1 %v7424_v22 }
 0x147   :  { %4031 = vmatpush1.bf16.msra.mxu1 %v7423_v23 }
 0x148   :  { %4032 = vmatprep.subr.bf16.mxu1 %v7432_v26 }
 0x14b   :  { %4033 = vmatpush1.bf16.msra.mxu1 %v7431_v27 }
 0x14c   :  { %4034 = vmatprep.subr.bf16.mxu1 %v7440_v31  ;;  %v868_v31 = vld [vmem:[#allocation8 + $0x440] sm:$0xff] }
 0x14d   :  { %v7510_v42 = vcombine.high %v868_v31, %v872_v34  ;;  %v7509_v49 = vcombine.low %v868_v31, %v872_v34 }
 0x14f   :  { %4035 = vmatpush1.bf16.msra.mxu1 %v7439_v32 }
 0x150   :  { %4036 = vmatprep.subr.bf16.mxu1 %v7448_v35  ;;  %v869_v35 = vld [vmem:[#allocation8 + $0x448] sm:$0xff] }
 0x153   :  { %4037 = vmatpush1.bf16.msra.mxu1 %v7447_v36  ;;  %v873_v36 = vld [vmem:[#allocation8 + $0x468] sm:$0xff] }
 0x154   :  { %4038 = vmatprep.subr.bf16.mxu1 %v7456_v39  ;;  %v7512_v43 = vcombine.high %v869_v35, %v873_v36  ;;  %v7511_v50 = vcombine.low %v869_v35, %v873_v36  ;;  %v264_v36 = vsub.s32 4, %v9550_v13 }
 0x157   :  { %4039 = vmatpush1.bf16.msra.mxu1 %v7455_v44  ;;  %v876_v44 = vld [vmem:[#allocation8 + $0x480] sm:$0xff] }
 0x158   :  { %4040 = vmatprep.subr.bf16.mxu1 %v7464_v47  ;;  %v877_v47 = vld [vmem:[#allocation8 + $0x488] sm:$0xff]  ;;  %v7517_v58 = vcombine.low %v876_v44, %v880_v46 }
 0x159   :  { %v7520_v53 = vcombine.high %v877_v47, %v881_v48  ;;  %v7519_v60 = vcombine.low %v877_v47, %v881_v48  ;;  %v913_v47 = vld [vmem:[#allocation8 + $0x5a8] sm:$0xff] }
 0x15b   :  { %4041 = vmatpush1.bf16.msra.mxu1 %v7463_v52  ;;  %v7518_v52 = vcombine.high %v876_v44, %v880_v46  ;;  %v912_v44 = vld [vmem:[#allocation8 + $0x5a0] sm:$0xff]  ;;  %v909_v46 = vld [vmem:[#allocation8 + $0x588] sm:$0xff] }
 0x15c   :  { %4042 = vmatprep.subr.bf16.mxu1 %v7472_v56  ;;  %v888_v56 = vld [vmem:[#allocation8 + $0x4e0] sm:$0xff] }
 0x15d   :  { %v7526_v63 = vcombine.high %v884_v54, %v888_v56  ;;  %v7525_v6 = vcombine.low %v884_v54, %v888_v56  ;;  %v917_v56 = vld [vmem:[#allocation8 + $0x5c8] sm:$0xff] }
 0x15f   :  { %4043 = vmatpush1.bf16.msra.mxu1 %v7471_v61 }
 0x160   :  { %4044 = vmatprep.subr.bf16.mxu1 %v7480_v3  ;;  %v896_v3 = vld [vmem:[#allocation8 + $0x520] sm:$0xff] }
 0x163   :  { %4045 = vmatpush1.bf16.msra.mxu1 %v7479_v4 }
 0x164   :  { %4046 = vmatprep.subr.bf16.mxu1 %v7488_v7  ;;  %v893_v7 = vld [vmem:[#allocation8 + $0x508] sm:$0xff] }
 0x167   :  { %4047 = vmatpush1.bf16.msra.mxu1 %v7487_v8  ;;  %v897_v8 = vld [vmem:[#allocation8 + $0x528] sm:$0xff] }
 0x168   :  { %4048 = vmatprep.subr.bf16.mxu1 %v7496_v9  ;;  %v7535_v34 = vcombine.low %v893_v7, %v897_v8 }
 0x16b   :  { %4049 = vmatpush1.bf16.msra.mxu1 %v7495_v10 }
 0x16c   :  { %4061 = vmatprep.subr.bf16.mxu1 %v7504_v11 }
 0x1d1   :  { %v489_v18 = vpop.f32.mrb[0].mxu1 }
 0x1d2   :  { %v490_v19 = vadd.f32 %v489_v18, %v249_v16  ;;  %v491_v20 = vpop.f32.mrb[1].mxu1 }
 0x1d3   :  { %v492_v21 = vadd.f32 %v491_v20, %v253_v17  ;;  %v493_v22 = vpop.f32.mrb[2].mxu1 }
 0x1d4   :  { %v660_v23 = vmul.f32 0.01, %v490_v19  ;;  %v494_v24 = vadd.f32 %v493_v22, %v249_v16  ;;  %v495_v25 = vpop.f32.mrb[3].mxu1  ;;  %vm644_vm1 = vcmp.ge.f32.partialorder %v490_v19, 0.0  ;;  %v7527_v16 = vcombine.low %v885_v0, %v889_v57 }
 0x1d5   :  { %v661_v26 = vmul.f32 0.01, %v492_v21  ;;  %v496_v27 = vadd.f32 %v495_v25, %v253_v17  ;;  %vm645_vm2 = vcmp.ge.f32.partialorder %v492_v21, 0.0  ;;  %v7536_v22 = vcombine.high %v893_v7, %v897_v8  ;;  %v929_v7 = vld [vmem:[#allocation8 + $0x628] sm:$0xff] }
 0x1d6   :  { %vm652_vm3 = vcmp.ge.f32.partialorder %v494_v24, 0.0  ;;  %v668_v28 = vmul.f32 0.01, %v494_v24  ;;  %v676_v32 = vsel %vm644_vm1, %v490_v19, %v660_v23  ;;  %v900_v23 = vld [vmem:[#allocation8 + $0x540] sm:$0xff] }
 0x1d7   :  { %vm653_vm4 = vcmp.ge.f32.partialorder %v496_v27, 0.0  ;;  %v669_v30 = vmul.f32 0.01, %v496_v27  ;;  %v677_v37 = vsel %vm645_vm2, %v492_v21, %v661_v26  ;;  %v904_v26 = vld [vmem:[#allocation8 + $0x560] sm:$0xff] }
 0x1d8   :  { %v684_v33 = vsel %vm652_vm3, %v494_v24, %v668_v28  ;;  %v905_v28 = vld [vmem:[#allocation8 + $0x568] sm:$0xff]  ;;  %v7541_v48 = vcombine.low %v900_v23, %v904_v26 }
 0x1d9   :  { %v9564_v38 = vpack.c.bf16 %v684_v33, %v676_v32  ;;  %v685_v39 = vsel %vm653_vm4, %v496_v27, %v669_v30  ;;  %v901_v27 = vld [vmem:[#allocation8 + $0x548] sm:$0xff] }
 0x1da   :  { %v9566_v40 = vpack.c.bf16 %v685_v39, %v677_v37  ;;  %v7542_v37 = vcombine.high %v900_v23, %v904_v26  ;;  %v7544_v39 = vcombine.high %v901_v27, %v905_v28  ;;  %v933_v26 = vld [vmem:[#allocation8 + $0x648] sm:$0xff] }
 0x1dc   :  { %3878 = vmatprep.mubr.bf16.mxu0 %v9566_v40  ;;  %4050 = vmatprep.mubr.bf16.mxu1 %v9566_v40 }
 0x1dd   :  { %3879 = vmatmul.mubr.bf16.vlgmr.msra.gmra.mrb[0].mxu0 %v9564_v38  ;;  %4051 = vmatmul.mubr.bf16.vlgmr.msra.gmra.mrb[16].mxu1 %v9564_v38 }
 0x1de   :  { %3890 = vmatpush1.bf16.msra.mxu0 %v7501_v1  ;;  %4062 = vmatpush1.bf16.msra.mxu1 %v7503_v2  ;;  %v7528_v1 = vcombine.high %v885_v0, %v889_v57  ;;  %v892_v2 = vld [vmem:[#allocation8 + $0x500] sm:$0xff]  ;;  %v921_v0 = vld [vmem:[#allocation8 + $0x5e8] sm:$0xff] }
 0x1df   :  { %3891 = vmatprep.subr.bf16.mxu0 %v7510_v42  ;;  %4063 = vmatprep.subr.bf16.mxu1 %v7512_v43  ;;  %v7534_v19 = vcombine.high %v892_v2, %v896_v3  ;;  %v7533_v33 = vcombine.low %v892_v2, %v896_v3  ;;  %v908_v42 = vld [vmem:[#allocation8 + $0x580] sm:$0xff]  ;;  %v268_v43 = vsub.s32 5, %v9550_v13 }
 0x1e0   :  { %v928_v2 = vld [vmem:[#allocation8 + $0x620] sm:$0xff] }
 0x1e1   :  { %v532_v59 = vpop.f32.mrb[4].mxu1  ;;  %v269_v54 = vrot.slane %v9555_v15, %v268_v43 }
 0x1e2   :  { %3892 = vmatpush1.bf16.msra.mxu0 %v7509_v49  ;;  %4064 = vmatpush1.bf16.msra.mxu1 %v7511_v50  ;;  %v533_v61 = vadd.f32 %v532_v59, %v257_v51  ;;  %v534_v62 = vpop.f32.mrb[5].mxu1  ;;  %v7543_v49 = vcombine.low %v901_v27, %v905_v28  ;;  %v265_v50 = vrot.slane %v9555_v15, %v264_v36  ;;  %v937_v27 = vld [vmem:[#allocation8 + $0x668] sm:$0xff] }
 0x1e3   :  { %3893 = vmatprep.subr.bf16.mxu0 %v7518_v52  ;;  %4065 = vmatprep.subr.bf16.mxu1 %v7520_v53  ;;  %v535_v4 = vadd.f32 %v534_v62, %v261_v55  ;;  %v536_v5 = vpop.f32.mrb[6].mxu1  ;;  %v7552_v52 = vcombine.high %v909_v46, %v913_v47  ;;  %v916_v53 = vld [vmem:[#allocation8 + $0x5c0] sm:$0xff]  ;;  %v7549_v59 = vcombine.low %v908_v42, %v912_v44 }
 0x1e4   :  { %vm646_vm5 = vcmp.ge.f32.partialorder %v533_v61, 0.0  ;;  %v662_v9 = vmul.f32 0.01, %v533_v61  ;;  %v537_v10 = vadd.f32 %v536_v5, %v257_v51  ;;  %v538_v11 = vpop.f32.mrb[7].mxu1  ;;  %v7550_v51 = vcombine.high %v908_v42, %v912_v44  ;;  %v940_v44 = vld [vmem:[#allocation8 + $0x680] sm:$0xff] }
 0x1e5   :  { %vm647_vm6 = vcmp.ge.f32.partialorder %v535_v4, 0.0  ;;  %v663_v17 = vmul.f32 0.01, %v535_v4  ;;  %v539_v18 = vadd.f32 %v538_v11, %v261_v55  ;;  %v920_v55 = vld [vmem:[#allocation8 + $0x5e0] sm:$0xff]  ;;  %v7559_v11 = vcombine.low %v917_v56, %v921_v0 }
 0x1e6   :  { %3894 = vmatpush1.bf16.msra.mxu0 %v7517_v58  ;;  %4066 = vmatpush1.bf16.msra.mxu1 %v7519_v60  ;;  %v678_v20 = vsel %vm646_vm5, %v533_v61, %v662_v9  ;;  %vm654_vm7 = vcmp.ge.f32.partialorder %v537_v10, 0.0  ;;  %v670_v21 = vmul.f32 0.01, %v537_v10  ;;  %v7551_v58 = vcombine.low %v909_v46, %v913_v47  ;;  %v944_v46 = vld [vmem:[#allocation8 + $0x6a0] sm:$0xff]  ;;  %v941_v47 = vld [vmem:[#allocation8 + $0x688] sm:$0xff] }
 0x1e7   :  { %3895 = vmatprep.subr.bf16.mxu0 %v7526_v63  ;;  %4067 = vmatprep.subr.bf16.mxu1 %v7528_v1  ;;  %v679_v24 = vsel %vm647_vm6, %v535_v4, %v663_v17  ;;  %vm655_vm8 = vcmp.ge.f32.partialorder %v539_v18, 0.0  ;;  %v671_v25 = vmul.f32 0.01, %v539_v18  ;;  %v7558_v62 = vcombine.high %v916_v53, %v920_v55  ;;  %v924_v1 = vld [vmem:[#allocation8 + $0x600] sm:$0xff] }
 0x1e8   :  { %v686_v30 = vsel %vm654_vm7, %v537_v10, %v670_v21  ;;  %v7560_v63 = vcombine.high %v917_v56, %v921_v0  ;;  %v7557_v5 = vcombine.low %v916_v53, %v920_v55  ;;  %v7576_v42 = vcombine.high %v933_v26, %v937_v27  ;;  %v948_v53 = vld [vmem:[#allocation8 + $0x6c0] sm:$0xff]  ;;  %v949_v55 = vld [vmem:[#allocation8 + $0x6c8] sm:$0xff] }
 0x1e9   :  { %v9588_v31 = vpack.c.bf16 %v686_v30, %v678_v20  ;;  %v687_v32 = vsel %vm655_vm8, %v539_v18, %v671_v25  ;;  %v7566_v18 = vcombine.high %v924_v1, %v928_v2  ;;  %v936_v25 = vld [vmem:[#allocation8 + $0x660] sm:$0xff]  ;;  %v953_v56 = vld [vmem:[#allocation8 + $0x6e8] sm:$0xff]  ;;  %v7581_v0 = vcombine.low %v940_v44, %v944_v46 }
 0x1ea   :  { %3896 = vmatpush1.bf16.msra.mxu0 %v7525_v6  ;;  %4068 = vmatpush1.bf16.msra.mxu1 %v7527_v16  ;;  %v9590_v35 = vpack.c.bf16 %v687_v32, %v679_v24  ;;  %v925_v6 = vld [vmem:[#allocation8 + $0x608] sm:$0xff] }
 0x1eb   :  { %3897 = vmatprep.subr.bf16.mxu0 %v7534_v19  ;;  %4069 = vmatprep.subr.bf16.mxu1 %v7536_v22  ;;  %v7568_v21 = vcombine.high %v925_v6, %v929_v7  ;;  %v932_v22 = vld [vmem:[#allocation8 + $0x640] sm:$0xff] }
 0x1ec   :  { %3921 = vmatprep.mubr.bf16.mxu0 %v9590_v35  ;;  %4093 = vmatprep.mubr.bf16.mxu1 %v9590_v35 }
 0x1ee   :  { %3898 = vmatpush1.bf16.msra.mxu0 %v7533_v33  ;;  %4070 = vmatpush1.bf16.msra.mxu1 %v7535_v34  ;;  %v7565_v33 = vcombine.low %v924_v1, %v928_v2  ;;  %v7567_v34 = vcombine.low %v925_v6, %v929_v7  ;;  %v7591_v2 = vcombine.low %v949_v55, %v953_v56  ;;  %v968_v6 = vld [vmem:[#allocation8 + $0x760] sm:$0xff]  ;;  %v965_v7 = vld [vmem:[#allocation8 + $0x748] sm:$0xff] }
 0x1ef   :  { %3899 = vmatprep.subr.bf16.mxu0 %v7542_v37  ;;  %4071 = vmatprep.subr.bf16.mxu1 %v7544_v39  ;;  %v7574_v39 = vcombine.high %v932_v22, %v936_v25 }
 0x1f1   :  { %v575_v57 = vpop.f32.mrb[8].mxu1 }
 0x1f2   :  { %3900 = vmatpush1.bf16.msra.mxu0 %v7541_v48  ;;  %4072 = vmatpush1.bf16.msra.mxu1 %v7543_v49  ;;  %v576_v60 = vadd.f32 %v575_v57, %v265_v50  ;;  %v577_v61 = vpop.f32.mrb[9].mxu1  ;;  %v945_v48 = vld [vmem:[#allocation8 + $0x6a8] sm:$0xff]  ;;  %v7573_v49 = vcombine.low %v932_v22, %v936_v25 }
 0x1f3   :  { %3901 = vmatprep.subr.bf16.mxu0 %v7550_v51  ;;  %4073 = vmatprep.subr.bf16.mxu1 %v7552_v52  ;;  %v578_v3 = vadd.f32 %v577_v61, %v269_v54  ;;  %v579_v4 = vpop.f32.mrb[10].mxu1  ;;  %v7582_v51 = vcombine.high %v940_v44, %v944_v46  ;;  %v7584_v52 = vcombine.high %v941_v47, %v945_v48  ;;  %v960_v61 = vld [vmem:[#allocation8 + $0x720] sm:$0xff] }
 0x1f4   :  { %vm648_vm9 = vcmp.ge.f32.partialorder %v576_v60, 0.0  ;;  %v664_v8 = vmul.f32 0.01, %v576_v60  ;;  %v580_v9 = vadd.f32 %v579_v4, %v265_v50  ;;  %v581_v10 = vpop.f32.mrb[11].mxu1  ;;  %v7575_v50 = vcombine.low %v933_v26, %v937_v27 }
 0x1f5   :  { %vm649_vm10 = vcmp.ge.f32.partialorder %v578_v3, 0.0  ;;  %v665_v16 = vmul.f32 0.01, %v578_v3  ;;  %v582_v17 = vadd.f32 %v581_v10, %v269_v54  ;;  %v952_v54 = vld [vmem:[#allocation8 + $0x6e0] sm:$0xff]  ;;  %v7583_v57 = vcombine.low %v941_v47, %v945_v48 }
 0x1f6   :  { %3902 = vmatpush1.bf16.msra.mxu0 %v7549_v59  ;;  %4074 = vmatpush1.bf16.msra.mxu1 %v7551_v58  ;;  %v680_v19 = vsel %vm648_vm9, %v576_v60, %v664_v8  ;;  %vm656_vm11 = vcmp.ge.f32.partialorder %v580_v9, 0.0  ;;  %v672_v20 = vmul.f32 0.01, %v580_v9  ;;  %v7590_v59 = vcombine.high %v948_v53, %v952_v54  ;;  %v956_v60 = vld [vmem:[#allocation8 + $0x700] sm:$0xff]  ;;  %v969_v8 = vld [vmem:[#allocation8 + $0x768] sm:$0xff] }
 0x1f7   :  { %3903 = vmatprep.subr.bf16.mxu0 %v7558_v62  ;;  %4075 = vmatprep.subr.bf16.mxu1 %v7560_v63  ;;  %v681_v23 = vsel %vm649_vm10, %v578_v3, %v665_v16  ;;  %vm657_vm12 = vcmp.ge.f32.partialorder %v582_v17, 0.0  ;;  %v673_v24 = vmul.f32 0.01, %v582_v17  ;;  %v7592_v58 = vcombine.high %v949_v55, %v953_v56  ;;  %v957_v62 = vld [vmem:[#allocation8 + $0x708] sm:$0xff]  ;;  %v976_v16 = vld [vmem:[#allocation8 + $0x7a0] sm:$0xff] }
 0x1f8   :  { %v688_v28 = vsel %vm656_vm11, %v580_v9, %v672_v20  ;;  %v961_v63 = vld [vmem:[#allocation8 + $0x728] sm:$0xff]  ;;  %v7589_v1 = vcombine.low %v948_v53, %v952_v54  ;;  %v7598_v3 = vcombine.high %v956_v60, %v960_v61  ;;  %v7597_v9 = vcombine.low %v956_v60, %v960_v61  ;;  %v988_v61 = vld [vmem:[#allocation8 + $0x800] sm:$0xff] }
 0x1f9   :  { %v9602_v30 = vpack.c.bf16 %v688_v28, %v680_v19  ;;  %v689_v32 = vsel %vm657_vm12, %v582_v17, %v673_v24  ;;  %v7600_v4 = vcombine.high %v957_v62, %v961_v63  ;;  %v7599_v10 = vcombine.low %v957_v62, %v961_v63  ;;  %v977_v24 = vld [vmem:[#allocation8 + $0x7a8] sm:$0xff] }
 0x1fa   :  { %3904 = vmatpush1.bf16.msra.mxu0 %v7557_v5  ;;  %4076 = vmatpush1.bf16.msra.mxu1 %v7559_v11  ;;  %v9604_v37 = vpack.c.bf16 %v689_v32, %v681_v23  ;;  %v964_v5 = vld [vmem:[#allocation8 + $0x740] sm:$0xff]  ;;  %v272_v17 = vsub.s32 6, %v9550_v13  ;;  %v276_v19 = vsub.s32 7, %v9550_v13  ;;  %v973_v23 = vld [vmem:[#allocation8 + $0x788] sm:$0xff]  ;;  %v7607_v32 = vcombine.low %v965_v7, %v969_v8 }
 0x1fb   :  { %3905 = vmatprep.subr.bf16.mxu0 %v7566_v18  ;;  %4077 = vmatprep.subr.bf16.mxu1 %v7568_v21  ;;  %v972_v11 = vld [vmem:[#allocation8 + $0x780] sm:$0xff]  ;;  %v7606_v20 = vcombine.high %v964_v5, %v968_v6  ;;  %v7608_v21 = vcombine.high %v965_v7, %v969_v8  ;;  %v7605_v28 = vcombine.low %v964_v5, %v968_v6  ;;  %v628_v53 = vand.u32 127, %v246_v12 }
 0x1fc   :  { %v273_v25 = vrot.slane %v9555_v15, %v272_v17  ;;  %v277_v26 = vrot.slane %v9555_v15, %v276_v19  ;;  %v7615_v48 = vcombine.low %v973_v23, %v977_v24 }
 0x1fd   :  { %v635_v60 = vadd.s32 896, %v628_v53  ;;  %v1024_v53 = vld [vmem:[#allocation8 + $0x920] sm:$0xff] }
 0x1fe   :  { %3906 = vmatpush1.bf16.msra.mxu0 %v7565_v33  ;;  %4078 = vmatpush1.bf16.msra.mxu1 %v7567_v34  ;;  %v7613_v33 = vcombine.low %v972_v11, %v976_v16  ;;  %v7614_v34 = vcombine.high %v972_v11, %v976_v16  ;;  %v996_v11 = vld [vmem:[#allocation8 + $0x840] sm:$0xff] }
 0x1ff   :  { %3907 = vmatprep.subr.bf16.mxu0 %v7574_v39  ;;  %4079 = vmatprep.subr.bf16.mxu1 %v7576_v42  ;;  %v980_v42 = vld [vmem:[#allocation8 + $0x7c0] sm:$0xff]  ;;  %vm643_vm1 = vcmp.lt.s32.totalorder %v635_v60, 960 }
 0x200   :  { %v1032_v60 = vld [vmem:[#allocation8 + $0x960] sm:$0xff] }
 0x201   :  { %v618_v18 = vpop.f32.mrb[12].mxu1 }
 0x202   :  { %3908 = vmatpush1.bf16.msra.mxu0 %v7573_v49  ;;  %4080 = vmatpush1.bf16.msra.mxu1 %v7575_v50  ;;  %v620_v22 = vpop.f32.mrb[13].mxu1  ;;  %v619_v44 = vadd.f32 %v618_v18, %v273_v25  ;;  %v7616_v49 = vcombine.high %v973_v23, %v977_v24  ;;  %v984_v50 = vld [vmem:[#allocation8 + $0x7e0] sm:$0xff] }
 0x203   :  { %3909 = vmatprep.subr.bf16.mxu0 %v7582_v51  ;;  %4081 = vmatprep.subr.bf16.mxu1 %v7584_v52  ;;  %v622_v27 = vpop.f32.mrb[14].mxu1  ;;  %v621_v46 = vadd.f32 %v620_v22, %v277_v26  ;;  %v981_v51 = vld [vmem:[#allocation8 + $0x7c8] sm:$0xff]  ;;  %v7621_v5 = vcombine.low %v980_v42, %v984_v50  ;;  %v1000_v18 = vld [vmem:[#allocation8 + $0x860] sm:$0xff] }
 0x204   :  { %v624_v39 = vpop.f32.mrb[15].mxu1  ;;  %v623_v47 = vadd.f32 %v622_v27, %v273_v25  ;;  %v985_v52 = vld [vmem:[#allocation8 + $0x7e8] sm:$0xff]  ;;  %vm650_vm13 = vcmp.ge.f32.partialorder %v619_v44, 0.0  ;;  %v666_v54 = vmul.f32 0.01, %v619_v44  ;;  %v7638_v24 = vcombine.high %v996_v11, %v1000_v18  ;;  %v1008_v27 = vld [vmem:[#allocation8 + $0x8a0] sm:$0xff] }
 0x205   :  { %v625_v15 = vadd.f32 %v624_v39, %v277_v26  ;;  %vm651_vm14 = vcmp.ge.f32.partialorder %v621_v46, 0.0  ;;  %v667_v55 = vmul.f32 0.01, %v621_v46  ;;  %v7623_v6 = vcombine.low %v981_v51, %v985_v52  ;;  %v1004_v26 = vld [vmem:[#allocation8 + $0x880] sm:$0xff] }
 0x206   :  { %3910 = vmatpush1.bf16.msra.mxu0 %v7581_v0  ;;  %4082 = vmatpush1.bf16.msra.mxu1 %v7583_v57  ;;  %vm658_vm15 = vcmp.ge.f32.partialorder %v623_v47, 0.0  ;;  %v674_v56 = vmul.f32 0.01, %v623_v47  ;;  %v7622_v57 = vcombine.high %v980_v42, %v984_v50  ;;  %v7646_v39 = vcombine.high %v1004_v26, %v1008_v27 }
 0x207   :  { %3911 = vmatprep.subr.bf16.mxu0 %v7590_v59  ;;  %4083 = vmatprep.subr.bf16.mxu1 %v7592_v58  ;;  %vm659_vm0 = vcmp.ge.f32.partialorder %v625_v15, 0.0  ;;  %v675_v0 = vmul.f32 0.01, %v625_v15  ;;  %v7624_v59 = vcombine.high %v981_v51, %v985_v52  ;;  %v682_v58 = vsel %vm650_vm13, %v619_v44, %v666_v54  ;;  %v1012_v44 = vld [vmem:[#allocation8 + $0x8c0] sm:$0xff]  ;;  %v1021_v54 = vld [vmem:[#allocation8 + $0x908] sm:$0xff] }
 0x208   :  { %v683_v62 = vsel %vm651_vm14, %v621_v46, %v667_v55  ;;  %v690_v63 = vsel %vm658_vm15, %v623_v47, %v674_v56  ;;  %v1013_v47 = vld [vmem:[#allocation8 + $0x8c8] sm:$0xff] }
 0x209   :  { %v691_v12 = vsel %vm659_vm0, %v625_v15, %v675_v0  ;;  %v715_v7 = vsel %vm643_vm1, %v683_v62, %v621_v46  ;;  %v1016_v46 = vld [vmem:[#allocation8 + $0x8e0] sm:$0xff]  ;;  %v1025_v55 = vld [vmem:[#allocation8 + $0x928] sm:$0xff] }
 0x20a   :  { %3912 = vmatpush1.bf16.msra.mxu0 %v7589_v1  ;;  %4084 = vmatpush1.bf16.msra.mxu1 %v7591_v2  ;;  %v992_v1 = vld [vmem:[#allocation8 + $0x820] sm:$0xff]  ;;  %v989_v2 = vld [vmem:[#allocation8 + $0x808] sm:$0xff]  ;;  %v723_v8 = vsel %vm643_vm1, %v691_v12, %v625_v15  ;;  %v7654_v51 = vcombine.high %v1012_v44, %v1016_v46  ;;  %v7653_v56 = vcombine.low %v1012_v44, %v1016_v46 }
 0x20b   :  { %3913 = vmatprep.subr.bf16.mxu0 %v7598_v3  ;;  %4085 = vmatprep.subr.bf16.mxu1 %v7600_v4  ;;  %v993_v3 = vld [vmem:[#allocation8 + $0x828] sm:$0xff]  ;;  %v9615_v4 = vpack.c.bf16 %v690_v63, %v682_v58  ;;  %v9617_v16 = vpack.c.bf16 %v723_v8, %v715_v7  ;;  %v7629_v22 = vcombine.low %v988_v61, %v992_v1  ;;  %v1020_v15 = vld [vmem:[#allocation8 + $0x900] sm:$0xff] }
 0x20c   :  { %v7631_v23 = vcombine.low %v989_v2, %v993_v3  ;;  %v1028_v58 = vld [vmem:[#allocation8 + $0x940] sm:$0xff]  ;;  %v1033_v62 = vld [vmem:[#allocation8 + $0x968] sm:$0xff]  ;;  %v7661_v63 = vcombine.low %v1020_v15, %v1024_v53  ;;  %v7663_v12 = vcombine.low %v1021_v54, %v1025_v55 }
 0x20d   :  { %v1041_v7 = vld [vmem:[#allocation8 + $0x9a8] sm:$0xff]  ;;  %v7669_v8 = vcombine.low %v1028_v58, %v1032_v60  ;;  %v1060_v46 = vld [vmem:[#allocation8 + $0xa40] sm:$0xff] }
 0x20e   :  { %3914 = vmatpush1.bf16.msra.mxu0 %v7597_v9  ;;  %4086 = vmatpush1.bf16.msra.mxu1 %v7599_v10  ;;  %v7630_v9 = vcombine.high %v988_v61, %v992_v1  ;;  %v7632_v10 = vcombine.high %v989_v2, %v993_v3  ;;  %v1029_v61 = vld [vmem:[#allocation8 + $0x948] sm:$0xff]  ;;  %v7670_v1 = vcombine.high %v1028_v58, %v1032_v60  ;;  %v1036_v3 = vld [vmem:[#allocation8 + $0x980] sm:$0xff] }
 0x20f   :  { %3915 = vmatprep.subr.bf16.mxu0 %v7606_v20  ;;  %4087 = vmatprep.subr.bf16.mxu1 %v7608_v21  ;;  %v997_v20 = vld [vmem:[#allocation8 + $0x848] sm:$0xff]  ;;  %v7672_v2 = vcombine.high %v1029_v61, %v1033_v62  ;;  %v1076_v60 = vld [vmem:[#allocation8 + $0xac0] sm:$0xff] }
 0x210   :  { %v1001_v21 = vld [vmem:[#allocation8 + $0x868] sm:$0xff] }
 0x211   :  { %v7640_v25 = vcombine.high %v997_v20, %v1001_v21 }
 0x212   :  { %3916 = vmatpush1.bf16.msra.mxu0 %v7605_v28  ;;  %4088 = vmatpush1.bf16.msra.mxu1 %v7607_v32  ;;  %v1005_v28 = vld [vmem:[#allocation8 + $0x888] sm:$0xff] }
 0x213   :  { %3917 = vmatprep.subr.bf16.mxu0 %v7614_v34  ;;  %4089 = vmatprep.subr.bf16.mxu1 %v7616_v49  ;;  %v1009_v32 = vld [vmem:[#allocation8 + $0x8a8] sm:$0xff]  ;;  %v7639_v34 = vcombine.low %v997_v20, %v1001_v21  ;;  %v7645_v49 = vcombine.low %v1004_v26, %v1008_v27  ;;  %v1048_v20 = vld [vmem:[#allocation8 + $0x9e0] sm:$0xff] }
 0x214   :  { %v7648_v42 = vcombine.high %v1005_v28, %v1009_v32  ;;  %v7647_v50 = vcombine.low %v1005_v28, %v1009_v32  ;;  %v1045_v21 = vld [vmem:[#allocation8 + $0x9c8] sm:$0xff]  ;;  %v1052_v27 = vld [vmem:[#allocation8 + $0xa00] sm:$0xff] }
 0x215   :  { %v1056_v28 = vld [vmem:[#allocation8 + $0xa20] sm:$0xff]  ;;  %v1053_v32 = vld [vmem:[#allocation8 + $0xa08] sm:$0xff] }
 0x216   :  { %3918 = vmatpush1.bf16.msra.mxu0 %v7613_v33  ;;  %4090 = vmatpush1.bf16.msra.mxu1 %v7615_v48  ;;  %v7637_v33 = vcombine.low %v996_v11, %v1000_v18  ;;  %v1017_v48 = vld [vmem:[#allocation8 + $0x8e8] sm:$0xff]  ;;  %v1044_v18 = vld [vmem:[#allocation8 + $0x9c0] sm:$0xff] }
 0x217   :  { %3919 = vmatprep.subr.bf16.mxu0 %v7622_v57  ;;  %4091 = vmatprep.subr.bf16.mxu1 %v7624_v59  ;;  %v7656_v52 = vcombine.high %v1013_v47, %v1017_v48  ;;  %v7655_v0 = vcombine.low %v1013_v47, %v1017_v48  ;;  %v7662_v57 = vcombine.high %v1020_v15, %v1024_v53  ;;  %v1064_v47 = vld [vmem:[#allocation8 + $0xa60] sm:$0xff]  ;;  %v1061_v48 = vld [vmem:[#allocation8 + $0xa48] sm:$0xff] }
 0x218   :  { %v7664_v59 = vcombine.high %v1021_v54, %v1025_v55  ;;  %v1068_v53 = vld [vmem:[#allocation8 + $0xa80] sm:$0xff]  ;;  %v1069_v55 = vld [vmem:[#allocation8 + $0xa88] sm:$0xff] }
 0x219   :  { %v1072_v54 = vld [vmem:[#allocation8 + $0xaa0] sm:$0xff] }
 0x21a   :  { %3920 = vmatpush1.bf16.msra.mxu0 %v7621_v5  ;;  %4092 = vmatpush1.bf16.msra.mxu1 %v7623_v6  ;;  %v1040_v5 = vld [vmem:[#allocation8 + $0x9a0] sm:$0xff]  ;;  %v1037_v6 = vld [vmem:[#allocation8 + $0x988] sm:$0xff] }
 0x21b   :  { %3932 = vmatprep.subr.bf16.mxu0 %v7630_v9  ;;  %4104 = vmatprep.subr.bf16.mxu1 %v7632_v10  ;;  %v7671_v9 = vcombine.low %v1029_v61, %v1033_v62  ;;  %v7678_v10 = vcombine.high %v1036_v3, %v1040_v5  ;;  %v7680_v11 = vcombine.high %v1037_v6, %v1041_v7  ;;  %v1080_v61 = vld [vmem:[#allocation8 + $0xae0] sm:$0xff]  ;;  %v1077_v62 = vld [vmem:[#allocation8 + $0xac8] sm:$0xff] }
 0x21d   :  { %3922 = vmatmul.mubr.bf16.vlgmr.msra.gmra.mrb[0].mxu0 %v9588_v31  ;;  %4094 = vmatmul.mubr.bf16.vlgmr.msra.gmra.mrb[16].mxu1 %v9588_v31 }
 0x21e   :  { %3933 = vmatpush1.bf16.msra.mxu0 %v7629_v22  ;;  %4105 = vmatpush1.bf16.msra.mxu1 %v7631_v23  ;;  %v1049_v22 = vld [vmem:[#allocation8 + $0x9e8] sm:$0xff]  ;;  %v7677_v23 = vcombine.low %v1036_v3, %v1040_v5  ;;  %v1084_v5 = vld [vmem:[#allocation8 + $0xb00] sm:$0xff] }
 0x21f   :  { %3934 = vmatprep.subr.bf16.mxu0 %v7638_v24  ;;  %4106 = vmatprep.subr.bf16.mxu1 %v7640_v25  ;;  %v7679_v24 = vcombine.low %v1037_v6, %v1041_v7  ;;  %v7686_v25 = vcombine.high %v1044_v18, %v1048_v20  ;;  %v7688_v26 = vcombine.high %v1045_v21, %v1049_v22  ;;  %v1088_v6 = vld [vmem:[#allocation8 + $0xb20] sm:$0xff]  ;;  %v1085_v7 = vld [vmem:[#allocation8 + $0xb08] sm:$0xff] }
 0x220   :  { %3964 = vmatprep.mubr.bf16.mxu0 %v9604_v37  ;;  %4136 = vmatprep.mubr.bf16.mxu1 %v9604_v37 }
 0x222   :  { %3935 = vmatpush1.bf16.msra.mxu0 %v7637_v33  ;;  %4107 = vmatpush1.bf16.msra.mxu1 %v7639_v34  ;;  %v1057_v33 = vld [vmem:[#allocation8 + $0xa28] sm:$0xff]  ;;  %v7685_v34 = vcombine.low %v1044_v18, %v1048_v20  ;;  %v1092_v20 = vld [vmem:[#allocation8 + $0xb40] sm:$0xff] }
 0x223   :  { %3936 = vmatprep.subr.bf16.mxu0 %v7646_v39  ;;  %4108 = vmatprep.subr.bf16.mxu1 %v7648_v42  ;;  %v7687_v39 = vcombine.low %v1045_v21, %v1049_v22  ;;  %v7694_v42 = vcombine.high %v1052_v27, %v1056_v28  ;;  %v7696_v44 = vcombine.high %v1053_v32, %v1057_v33  ;;  %v1096_v21 = vld [vmem:[#allocation8 + $0xb60] sm:$0xff]  ;;  %v1093_v22 = vld [vmem:[#allocation8 + $0xb48] sm:$0xff] }
 0x226   :  { %3937 = vmatpush1.bf16.msra.mxu0 %v7645_v49  ;;  %4109 = vmatpush1.bf16.msra.mxu1 %v7647_v50  ;;  %v1065_v49 = vld [vmem:[#allocation8 + $0xa68] sm:$0xff]  ;;  %v7693_v50 = vcombine.low %v1052_v27, %v1056_v28  ;;  %v1100_v28 = vld [vmem:[#allocation8 + $0xb80] sm:$0xff] }
 0x227   :  { %3938 = vmatprep.subr.bf16.mxu0 %v7654_v51  ;;  %4110 = vmatprep.subr.bf16.mxu1 %v7656_v52  ;;  %v7695_v51 = vcombine.low %v1053_v32, %v1057_v33  ;;  %v7702_v52 = vcombine.high %v1060_v46, %v1064_v47  ;;  %v7704_v15 = vcombine.high %v1061_v48, %v1065_v49  ;;  %v1104_v32 = vld [vmem:[#allocation8 + $0xba0] sm:$0xff]  ;;  %v1101_v33 = vld [vmem:[#allocation8 + $0xb88] sm:$0xff] }
 0x22a   :  { %3939 = vmatpush1.bf16.msra.mxu0 %v7653_v56  ;;  %4111 = vmatpush1.bf16.msra.mxu1 %v7655_v0  ;;  %v1073_v56 = vld [vmem:[#allocation8 + $0xaa8] sm:$0xff]  ;;  %v7701_v0 = vcombine.low %v1060_v46, %v1064_v47  ;;  %v1108_v47 = vld [vmem:[#allocation8 + $0xbc0] sm:$0xff] }
 0x22b   :  { %3940 = vmatprep.subr.bf16.mxu0 %v7662_v57  ;;  %4112 = vmatprep.subr.bf16.mxu1 %v7664_v59  ;;  %v7703_v57 = vcombine.low %v1061_v48, %v1065_v49  ;;  %v7710_v59 = vcombine.high %v1068_v53, %v1072_v54  ;;  %v7712_v58 = vcombine.high %v1069_v55, %v1073_v56  ;;  %v1112_v48 = vld [vmem:[#allocation8 + $0xbe0] sm:$0xff]  ;;  %v1109_v49 = vld [vmem:[#allocation8 + $0xbc8] sm:$0xff] }
 0x22e   :  { %3941 = vmatpush1.bf16.msra.mxu0 %v7661_v63  ;;  %4113 = vmatpush1.bf16.msra.mxu1 %v7663_v12  ;;  %v1081_v63 = vld [vmem:[#allocation8 + $0xae8] sm:$0xff]  ;;  %v7709_v12 = vcombine.low %v1068_v53, %v1072_v54  ;;  %v1116_v54 = vld [vmem:[#allocation8 + $0xc00] sm:$0xff] }
 0x22f   :  { %3942 = vmatprep.subr.bf16.mxu0 %v7670_v1  ;;  %4114 = vmatprep.subr.bf16.mxu1 %v7672_v2  ;;  %v7711_v1 = vcombine.low %v1069_v55, %v1073_v56  ;;  %v7718_v2 = vcombine.high %v1076_v60, %v1080_v61  ;;  %v7720_v3 = vcombine.high %v1077_v62, %v1081_v63  ;;  %v1120_v55 = vld [vmem:[#allocation8 + $0xc20] sm:$0xff]  ;;  %v1117_v56 = vld [vmem:[#allocation8 + $0xc08] sm:$0xff] }
 0x232   :  { %3943 = vmatpush1.bf16.msra.mxu0 %v7669_v8  ;;  %4115 = vmatpush1.bf16.msra.mxu1 %v7671_v9  ;;  %v1089_v8 = vld [vmem:[#allocation8 + $0xb28] sm:$0xff]  ;;  %v7717_v9 = vcombine.low %v1076_v60, %v1080_v61  ;;  %v1124_v61 = vld [vmem:[#allocation8 + $0xc40] sm:$0xff] }
 0x233   :  { %3944 = vmatprep.subr.bf16.mxu0 %v7678_v10  ;;  %4116 = vmatprep.subr.bf16.mxu1 %v7680_v11  ;;  %v7719_v10 = vcombine.low %v1077_v62, %v1081_v63  ;;  %v7726_v11 = vcombine.high %v1084_v5, %v1088_v6  ;;  %v7728_v18 = vcombine.high %v1085_v7, %v1089_v8  ;;  %v1128_v62 = vld [vmem:[#allocation8 + $0xc60] sm:$0xff]  ;;  %v1125_v63 = vld [vmem:[#allocation8 + $0xc48] sm:$0xff] }
 0x236   :  { %3945 = vmatpush1.bf16.msra.mxu0 %v7677_v23  ;;  %4117 = vmatpush1.bf16.msra.mxu1 %v7679_v24  ;;  %v1097_v23 = vld [vmem:[#allocation8 + $0xb68] sm:$0xff]  ;;  %v7725_v24 = vcombine.low %v1084_v5, %v1088_v6  ;;  %v1132_v6 = vld [vmem:[#allocation8 + $0xc80] sm:$0xff] }
 0x237   :  { %3946 = vmatprep.subr.bf16.mxu0 %v7686_v25  ;;  %4118 = vmatprep.subr.bf16.mxu1 %v7688_v26  ;;  %v7727_v25 = vcombine.low %v1085_v7, %v1089_v8  ;;  %v7734_v26 = vcombine.high %v1092_v20, %v1096_v21  ;;  %v7736_v27 = vcombine.high %v1093_v22, %v1097_v23  ;;  %v1136_v7 = vld [vmem:[#allocation8 + $0xca0] sm:$0xff]  ;;  %v1133_v8 = vld [vmem:[#allocation8 + $0xc88] sm:$0xff] }
 0x23a   :  { %3947 = vmatpush1.bf16.msra.mxu0 %v7685_v34  ;;  %4119 = vmatpush1.bf16.msra.mxu1 %v7687_v39  ;;  %v1105_v34 = vld [vmem:[#allocation8 + $0xba8] sm:$0xff]  ;;  %v7733_v39 = vcombine.low %v1092_v20, %v1096_v21  ;;  %v1140_v21 = vld [vmem:[#allocation8 + $0xcc0] sm:$0xff] }
 0x23b   :  { %3948 = vmatprep.subr.bf16.mxu0 %v7694_v42  ;;  %4120 = vmatprep.subr.bf16.mxu1 %v7696_v44  ;;  %v7735_v42 = vcombine.low %v1093_v22, %v1097_v23  ;;  %v7742_v44 = vcombine.high %v1100_v28, %v1104_v32  ;;  %v7744_v46 = vcombine.high %v1101_v33, %v1105_v34  ;;  %v1144_v22 = vld [vmem:[#allocation8 + $0xce0] sm:$0xff]  ;;  %v1141_v23 = vld [vmem:[#allocation8 + $0xcc8] sm:$0xff] }
 0x23e   :  { %3949 = vmatpush1.bf16.msra.mxu0 %v7693_v50  ;;  %4121 = vmatpush1.bf16.msra.mxu1 %v7695_v51  ;;  %v1113_v50 = vld [vmem:[#allocation8 + $0xbe8] sm:$0xff]  ;;  %v7741_v51 = vcombine.low %v1100_v28, %v1104_v32  ;;  %v1148_v32 = vld [vmem:[#allocation8 + $0xd00] sm:$0xff] }
 0x23f   :  { %3950 = vmatprep.subr.bf16.mxu0 %v7702_v52  ;;  %4122 = vmatprep.subr.bf16.mxu1 %v7704_v15  ;;  %v7743_v52 = vcombine.low %v1101_v33, %v1105_v34  ;;  %v7750_v15 = vcombine.high %v1108_v47, %v1112_v48  ;;  %v7752_v53 = vcombine.high %v1109_v49, %v1113_v50  ;;  %v1152_v33 = vld [vmem:[#allocation8 + $0xd20] sm:$0xff]  ;;  %v1149_v34 = vld [vmem:[#allocation8 + $0xd08] sm:$0xff] }
 0x242   :  { %3951 = vmatpush1.bf16.msra.mxu0 %v7701_v0  ;;  %4123 = vmatpush1.bf16.msra.mxu1 %v7703_v57  ;;  %v1121_v0 = vld [vmem:[#allocation8 + $0xc28] sm:$0xff]  ;;  %v7749_v57 = vcombine.low %v1108_v47, %v1112_v48  ;;  %v1156_v48 = vld [vmem:[#allocation8 + $0xd40] sm:$0xff] }
 0x243   :  { %3952 = vmatprep.subr.bf16.mxu0 %v7710_v59  ;;  %4124 = vmatprep.subr.bf16.mxu1 %v7712_v58  ;;  %v7751_v59 = vcombine.low %v1109_v49, %v1113_v50  ;;  %v7758_v58 = vcombine.high %v1116_v54, %v1120_v55  ;;  %v7760_v60 = vcombine.high %v1117_v56, %v1121_v0  ;;  %v1160_v49 = vld [vmem:[#allocation8 + $0xd60] sm:$0xff]  ;;  %v1157_v50 = vld [vmem:[#allocation8 + $0xd48] sm:$0xff] }
 0x246   :  { %3953 = vmatpush1.bf16.msra.mxu0 %v7709_v12  ;;  %4125 = vmatpush1.bf16.msra.mxu1 %v7711_v1  ;;  %v1129_v12 = vld [vmem:[#allocation8 + $0xc68] sm:$0xff]  ;;  %v7757_v1 = vcombine.low %v1116_v54, %v1120_v55  ;;  %v1164_v55 = vld [vmem:[#allocation8 + $0xd80] sm:$0xff] }
 0x247   :  { %3954 = vmatprep.subr.bf16.mxu0 %v7718_v2  ;;  %4126 = vmatprep.subr.bf16.mxu1 %v7720_v3  ;;  %v7759_v2 = vcombine.low %v1117_v56, %v1121_v0  ;;  %v7766_v3 = vcombine.high %v1124_v61, %v1128_v62  ;;  %v7768_v5 = vcombine.high %v1125_v63, %v1129_v12  ;;  %v1168_v56 = vld [vmem:[#allocation8 + $0xda0] sm:$0xff]  ;;  %v1165_v0 = vld [vmem:[#allocation8 + $0xd88] sm:$0xff] }
 0x24a   :  { %3955 = vmatpush1.bf16.msra.mxu0 %v7717_v9  ;;  %4127 = vmatpush1.bf16.msra.mxu1 %v7719_v10  ;;  %v1137_v9 = vld [vmem:[#allocation8 + $0xca8] sm:$0xff]  ;;  %v7765_v10 = vcombine.low %v1124_v61, %v1128_v62  ;;  %v1172_v62 = vld [vmem:[#allocation8 + $0xdc0] sm:$0xff] }
 0x24b   :  { %3956 = vmatprep.subr.bf16.mxu0 %v7726_v11  ;;  %4128 = vmatprep.subr.bf16.mxu1 %v7728_v18  ;;  %v7767_v11 = vcombine.low %v1125_v63, %v1129_v12  ;;  %v7774_v18 = vcombine.high %v1132_v6, %v1136_v7  ;;  %v7776_v20 = vcombine.high %v1133_v8, %v1137_v9  ;;  %v1176_v63 = vld [vmem:[#allocation8 + $0xde0] sm:$0xff]  ;;  %v1173_v12 = vld [vmem:[#allocation8 + $0xdc8] sm:$0xff] }
 0x24e   :  { %3957 = vmatpush1.bf16.msra.mxu0 %v7725_v24  ;;  %4129 = vmatpush1.bf16.msra.mxu1 %v7727_v25  ;;  %v1145_v24 = vld [vmem:[#allocation8 + $0xce8] sm:$0xff]  ;;  %v7773_v25 = vcombine.low %v1132_v6, %v1136_v7  ;;  %v1180_v7 = vld [vmem:[#allocation8 + $0xe00] sm:$0xff] }
 0x24f   :  { %3958 = vmatprep.subr.bf16.mxu0 %v7734_v26  ;;  %4130 = vmatprep.subr.bf16.mxu1 %v7736_v27  ;;  %v7775_v26 = vcombine.low %v1133_v8, %v1137_v9  ;;  %v7782_v27 = vcombine.high %v1140_v21, %v1144_v22  ;;  %v7784_v28 = vcombine.high %v1141_v23, %v1145_v24  ;;  %v1184_v8 = vld [vmem:[#allocation8 + $0xe20] sm:$0xff]  ;;  %v1181_v9 = vld [vmem:[#allocation8 + $0xe08] sm:$0xff] }
 0x252   :  { %3959 = vmatpush1.bf16.msra.mxu0 %v7733_v39  ;;  %4131 = vmatpush1.bf16.msra.mxu1 %v7735_v42  ;;  %v1153_v39 = vld [vmem:[#allocation8 + $0xd28] sm:$0xff]  ;;  %v7781_v42 = vcombine.low %v1140_v21, %v1144_v22  ;;  %v1188_v22 = vld [vmem:[#allocation8 + $0xe40] sm:$0xff] }
 0x253   :  { %3960 = vmatprep.subr.bf16.mxu0 %v7742_v44  ;;  %4132 = vmatprep.subr.bf16.mxu1 %v7744_v46  ;;  %v7783_v44 = vcombine.low %v1141_v23, %v1145_v24  ;;  %v7790_v46 = vcombine.high %v1148_v32, %v1152_v33  ;;  %v7792_v47 = vcombine.high %v1149_v34, %v1153_v39  ;;  %v1192_v23 = vld [vmem:[#allocation8 + $0xe60] sm:$0xff]  ;;  %v1189_v24 = vld [vmem:[#allocation8 + $0xe48] sm:$0xff] }
 0x256   :  { %3961 = vmatpush1.bf16.msra.mxu0 %v7741_v51  ;;  %4133 = vmatpush1.bf16.msra.mxu1 %v7743_v52  ;;  %v1161_v51 = vld [vmem:[#allocation8 + $0xd68] sm:$0xff]  ;;  %v7789_v52 = vcombine.low %v1148_v32, %v1152_v33  ;;  %v1196_v33 = vld [vmem:[#allocation8 + $0xe80] sm:$0xff] }
 0x257   :  { %3962 = vmatprep.subr.bf16.mxu0 %v7750_v15  ;;  %4134 = vmatprep.subr.bf16.mxu1 %v7752_v53  ;;  %v7791_v15 = vcombine.low %v1149_v34, %v1153_v39  ;;  %v7798_v53 = vcombine.high %v1156_v48, %v1160_v49  ;;  %v7800_v54 = vcombine.high %v1157_v50, %v1161_v51  ;;  %v1200_v34 = vld [vmem:[#allocation8 + $0xea0] sm:$0xff]  ;;  %v1197_v39 = vld [vmem:[#allocation8 + $0xe88] sm:$0xff] }
 0x25a   :  { %3963 = vmatpush1.bf16.msra.mxu0 %v7749_v57  ;;  %4135 = vmatpush1.bf16.msra.mxu1 %v7751_v59  ;;  %v1169_v57 = vld [vmem:[#allocation8 + $0xda8] sm:$0xff]  ;;  %v7797_v59 = vcombine.low %v1156_v48, %v1160_v49  ;;  %v1204_v49 = vld [vmem:[#allocation8 + $0xec0] sm:$0xff] }
 0x25b   :  { %3975 = vmatprep.subr.bf16.mxu0 %v7758_v58  ;;  %4147 = vmatprep.subr.bf16.mxu1 %v7760_v60  ;;  %v7799_v58 = vcombine.low %v1157_v50, %v1161_v51  ;;  %v7806_v60 = vcombine.high %v1164_v55, %v1168_v56  ;;  %v7808_v61 = vcombine.high %v1165_v0, %v1169_v57  ;;  %v1208_v50 = vld [vmem:[#allocation8 + $0xee0] sm:$0xff]  ;;  %v1205_v51 = vld [vmem:[#allocation8 + $0xec8] sm:$0xff] }
 0x25d   :  { %3965 = vmatmul.mubr.bf16.vlgmr.msra.gmra.mrb[0].mxu0 %v9602_v30  ;;  %4137 = vmatmul.mubr.bf16.vlgmr.msra.gmra.mrb[16].mxu1 %v9602_v30 }
 0x25e   :  { %3976 = vmatpush1.bf16.msra.mxu0 %v7757_v1  ;;  %4148 = vmatpush1.bf16.msra.mxu1 %v7759_v2  ;;  %v1177_v1 = vld [vmem:[#allocation8 + $0xde8] sm:$0xff]  ;;  %v7805_v2 = vcombine.low %v1164_v55, %v1168_v56  ;;  %v1212_v56 = vld [vmem:[#allocation8 + $0xf00] sm:$0xff] }
 0x25f   :  { %3977 = vmatprep.subr.bf16.mxu0 %v7766_v3  ;;  %4149 = vmatprep.subr.bf16.mxu1 %v7768_v5  ;;  %v7807_v3 = vcombine.low %v1165_v0, %v1169_v57  ;;  %v7814_v5 = vcombine.high %v1172_v62, %v1176_v63  ;;  %v7816_v6 = vcombine.high %v1173_v12, %v1177_v1  ;;  %v1216_v0 = vld [vmem:[#allocation8 + $0xf20] sm:$0xff]  ;;  %v1213_v57 = vld [vmem:[#allocation8 + $0xf08] sm:$0xff] }
 0x260   :  { %4007 = vmatprep.mubr.bf16.mxu0 %v9617_v16  ;;  %4179 = vmatprep.mubr.bf16.mxu1 %v9617_v16 }
 0x262   :  { %3978 = vmatpush1.bf16.msra.mxu0 %v7765_v10  ;;  %4150 = vmatpush1.bf16.msra.mxu1 %v7767_v11  ;;  %v1185_v10 = vld [vmem:[#allocation8 + $0xe28] sm:$0xff]  ;;  %v7813_v11 = vcombine.low %v1172_v62, %v1176_v63  ;;  %v1220_v63 = vld [vmem:[#allocation8 + $0xf40] sm:$0xff] }
 0x263   :  { %3979 = vmatprep.subr.bf16.mxu0 %v7774_v18  ;;  %4151 = vmatprep.subr.bf16.mxu1 %v7776_v20  ;;  %v7815_v18 = vcombine.low %v1173_v12, %v1177_v1  ;;  %v7822_v20 = vcombine.high %v1180_v7, %v1184_v8  ;;  %v7824_v21 = vcombine.high %v1181_v9, %v1185_v10  ;;  %v1224_v12 = vld [vmem:[#allocation8 + $0xf60] sm:$0xff]  ;;  %v1221_v1 = vld [vmem:[#allocation8 + $0xf48] sm:$0xff] }
 0x266   :  { %3980 = vmatpush1.bf16.msra.mxu0 %v7773_v25  ;;  %4152 = vmatpush1.bf16.msra.mxu1 %v7775_v26  ;;  %v1193_v25 = vld [vmem:[#allocation8 + $0xe68] sm:$0xff]  ;;  %v7821_v26 = vcombine.low %v1180_v7, %v1184_v8  ;;  %v1228_v8 = vld [vmem:[#allocation8 + $0xf80] sm:$0xff] }
 0x267   :  { %3981 = vmatprep.subr.bf16.mxu0 %v7782_v27  ;;  %4153 = vmatprep.subr.bf16.mxu1 %v7784_v28  ;;  %v7823_v27 = vcombine.low %v1181_v9, %v1185_v10  ;;  %v7830_v28 = vcombine.high %v1188_v22, %v1192_v23  ;;  %v7832_v32 = vcombine.high %v1189_v24, %v1193_v25  ;;  %v1232_v9 = vld [vmem:[#allocation8 + $0xfa0] sm:$0xff]  ;;  %v1229_v10 = vld [vmem:[#allocation8 + $0xf88] sm:$0xff] }
 0x26a   :  { %3982 = vmatpush1.bf16.msra.mxu0 %v7781_v42  ;;  %4154 = vmatpush1.bf16.msra.mxu1 %v7783_v44  ;;  %v1201_v42 = vld [vmem:[#allocation8 + $0xea8] sm:$0xff]  ;;  %v7829_v44 = vcombine.low %v1188_v22, %v1192_v23  ;;  %v1236_v23 = vld [vmem:[#allocation8 + $0xfc0] sm:$0xff] }
 0x26b   :  { %3983 = vmatprep.subr.bf16.mxu0 %v7790_v46  ;;  %4155 = vmatprep.subr.bf16.mxu1 %v7792_v47  ;;  %v7831_v46 = vcombine.low %v1189_v24, %v1193_v25  ;;  %v7838_v47 = vcombine.high %v1196_v33, %v1200_v34  ;;  %v7840_v48 = vcombine.high %v1197_v39, %v1201_v42  ;;  %v1240_v24 = vld [vmem:[#allocation8 + $0xfe0] sm:$0xff]  ;;  %v1237_v25 = vld [vmem:[#allocation8 + $0xfc8] sm:$0xff] }
 0x26e   :  { %3984 = vmatpush1.bf16.msra.mxu0 %v7789_v52  ;;  %4156 = vmatpush1.bf16.msra.mxu1 %v7791_v15  ;;  %v1209_v52 = vld [vmem:[#allocation8 + $0xee8] sm:$0xff]  ;;  %v7837_v15 = vcombine.low %v1196_v33, %v1200_v34  ;;  %v734_v34 = vld [vmem:[#allocation8 + $0x10] sm:$0xff] }
 0x26f   :  { %3985 = vmatprep.subr.bf16.mxu0 %v7798_v53  ;;  %4157 = vmatprep.subr.bf16.mxu1 %v7800_v54  ;;  %v7839_v53 = vcombine.low %v1197_v39, %v1201_v42  ;;  %v7846_v54 = vcombine.high %v1204_v49, %v1208_v50  ;;  %v7848_v55 = vcombine.high %v1205_v51, %v1209_v52  ;;  %v738_v39 = vld [vmem:[#allocation8 + $0x30] sm:$0xff]  ;;  %v735_v42 = vld [vmem:[#allocation8 + $0x18] sm:$0xff] }
 0x272   :  { %3986 = vmatpush1.bf16.msra.mxu0 %v7797_v59  ;;  %4158 = vmatpush1.bf16.msra.mxu1 %v7799_v58  ;;  %v1217_v59 = vld [vmem:[#allocation8 + $0xf28] sm:$0xff]  ;;  %v7845_v58 = vcombine.low %v1204_v49, %v1208_v50  ;;  %v742_v50 = vld [vmem:[#allocation8 + $0x50] sm:$0xff] }
 0x273   :  { %3987 = vmatprep.subr.bf16.mxu0 %v7806_v60  ;;  %4159 = vmatprep.subr.bf16.mxu1 %v7808_v61  ;;  %v7847_v60 = vcombine.low %v1205_v51, %v1209_v52  ;;  %v7854_v61 = vcombine.high %v1212_v56, %v1216_v0  ;;  %v7856_v62 = vcombine.high %v1213_v57, %v1217_v59  ;;  %v746_v51 = vld [vmem:[#allocation8 + $0x70] sm:$0xff]  ;;  %v743_v52 = vld [vmem:[#allocation8 + $0x58] sm:$0xff] }
 0x276   :  { %3988 = vmatpush1.bf16.msra.mxu0 %v7805_v2  ;;  %4160 = vmatpush1.bf16.msra.mxu1 %v7807_v3  ;;  %v1225_v2 = vld [vmem:[#allocation8 + $0xf68] sm:$0xff]  ;;  %v7853_v3 = vcombine.low %v1212_v56, %v1216_v0  ;;  %v750_v0 = vld [vmem:[#allocation8 + $0x90] sm:$0xff] }
 0x277   :  { %3989 = vmatprep.subr.bf16.mxu0 %v7814_v5  ;;  %4161 = vmatprep.subr.bf16.mxu1 %v7816_v6  ;;  %v7855_v5 = vcombine.low %v1213_v57, %v1217_v59  ;;  %v7862_v6 = vcombine.high %v1220_v63, %v1224_v12  ;;  %v7864_v7 = vcombine.high %v1221_v1, %v1225_v2  ;;  %v754_v57 = vld [vmem:[#allocation8 + $0xb0] sm:$0xff]  ;;  %v751_v59 = vld [vmem:[#allocation8 + $0x98] sm:$0xff] }
 0x27a   :  { %3990 = vmatpush1.bf16.msra.mxu0 %v7813_v11  ;;  %4162 = vmatpush1.bf16.msra.mxu1 %v7815_v18  ;;  %v1233_v11 = vld [vmem:[#allocation8 + $0xfa8] sm:$0xff]  ;;  %v7861_v18 = vcombine.low %v1220_v63, %v1224_v12  ;;  %v758_v12 = vld [vmem:[#allocation8 + $0xd0] sm:$0xff] }
 0x27b   :  { %3991 = vmatprep.subr.bf16.mxu0 %v7822_v20  ;;  %4163 = vmatprep.subr.bf16.mxu1 %v7824_v21  ;;  %v7863_v20 = vcombine.low %v1221_v1, %v1225_v2  ;;  %v7870_v21 = vcombine.high %v1228_v8, %v1232_v9  ;;  %v7872_v22 = vcombine.high %v1229_v10, %v1233_v11  ;;  %v762_v1 = vld [vmem:[#allocation8 + $0xf0] sm:$0xff]  ;;  %v759_v2 = vld [vmem:[#allocation8 + $0xd8] sm:$0xff] }
 0x27e   :  { %3992 = vmatpush1.bf16.msra.mxu0 %v7821_v26  ;;  %4164 = vmatpush1.bf16.msra.mxu1 %v7823_v27  ;;  %v1241_v26 = vld [vmem:[#allocation8 + $0xfe8] sm:$0xff]  ;;  %v7869_v27 = vcombine.low %v1228_v8, %v1232_v9  ;;  %v766_v9 = vld [vmem:[#allocation8 + $0x110] sm:$0xff] }
 0x27f   :  { %3993 = vmatprep.subr.bf16.mxu0 %v7830_v28  ;;  %4165 = vmatprep.subr.bf16.mxu1 %v7832_v32  ;;  %v7871_v28 = vcombine.low %v1229_v10, %v1233_v11  ;;  %v7878_v32 = vcombine.high %v1236_v23, %v1240_v24  ;;  %v7880_v33 = vcombine.high %v1237_v25, %v1241_v26  ;;  %v770_v10 = vld [vmem:[#allocation8 + $0x130] sm:$0xff]  ;;  %v771_v11 = vld [vmem:[#allocation8 + $0x138] sm:$0xff] }
 0x282   :  { %3994 = vmatpush1.bf16.msra.mxu0 %v7829_v44  ;;  %4166 = vmatpush1.bf16.msra.mxu1 %v7831_v46  ;;  %v739_v44 = vld [vmem:[#allocation8 + $0x38] sm:$0xff]  ;;  %v7877_v46 = vcombine.low %v1236_v23, %v1240_v24  ;;  %v774_v23 = vld [vmem:[#allocation8 + $0x150] sm:$0xff] }
 0x283   :  { %3995 = vmatprep.subr.bf16.mxu0 %v7838_v47  ;;  %4167 = vmatprep.subr.bf16.mxu1 %v7840_v48  ;;  %v7879_v47 = vcombine.low %v1237_v25, %v1241_v26  ;;  %v7378_v48 = vcombine.high %v734_v34, %v738_v39  ;;  %v7380_v49 = vcombine.high %v735_v42, %v739_v44  ;;  %v778_v24 = vld [vmem:[#allocation8 + $0x170] sm:$0xff]  ;;  %v775_v25 = vld [vmem:[#allocation8 + $0x158] sm:$0xff] }
 0x284   :  { %v779_v26 = vld [vmem:[#allocation8 + $0x178] sm:$0xff] }
 0x286   :  { %3996 = vmatpush1.bf16.msra.mxu0 %v7837_v15  ;;  %4168 = vmatpush1.bf16.msra.mxu1 %v7839_v53  ;;  %v747_v15 = vld [vmem:[#allocation8 + $0x78] sm:$0xff]  ;;  %v7377_v53 = vcombine.low %v734_v34, %v738_v39  ;;  %v782_v34 = vld [vmem:[#allocation8 + $0x190] sm:$0xff] }
 0x287   :  { %3997 = vmatprep.subr.bf16.mxu0 %v7846_v54  ;;  %4169 = vmatprep.subr.bf16.mxu1 %v7848_v55  ;;  %v7379_v54 = vcombine.low %v735_v42, %v739_v44  ;;  %v7386_v55 = vcombine.high %v742_v50, %v746_v51  ;;  %v7388_v56 = vcombine.high %v743_v52, %v747_v15  ;;  %v786_v39 = vld [vmem:[#allocation8 + $0x1b0] sm:$0xff]  ;;  %v783_v42 = vld [vmem:[#allocation8 + $0x198] sm:$0xff] }
 0x288   :  { %v787_v44 = vld [vmem:[#allocation8 + $0x1b8] sm:$0xff] }
 0x28a   :  { %3998 = vmatpush1.bf16.msra.mxu0 %v7845_v58  ;;  %4170 = vmatpush1.bf16.msra.mxu1 %v7847_v60  ;;  %v755_v58 = vld [vmem:[#allocation8 + $0xb8] sm:$0xff]  ;;  %v7385_v60 = vcombine.low %v742_v50, %v746_v51  ;;  %v790_v50 = vld [vmem:[#allocation8 + $0x1d0] sm:$0xff] }
 0x28b   :  { %3999 = vmatprep.subr.bf16.mxu0 %v7854_v61  ;;  %4171 = vmatprep.subr.bf16.mxu1 %v7856_v62  ;;  %v7387_v61 = vcombine.low %v743_v52, %v747_v15  ;;  %v7394_v62 = vcombine.high %v750_v0, %v754_v57  ;;  %v7396_v63 = vcombine.high %v751_v59, %v755_v58  ;;  %v794_v51 = vld [vmem:[#allocation8 + $0x1f0] sm:$0xff]  ;;  %v791_v52 = vld [vmem:[#allocation8 + $0x1d8] sm:$0xff] }
 0x28c   :  { %v795_v15 = vld [vmem:[#allocation8 + $0x1f8] sm:$0xff] }
 0x28e   :  { %4000 = vmatpush1.bf16.msra.mxu0 %v7853_v3  ;;  %4172 = vmatpush1.bf16.msra.mxu1 %v7855_v5  ;;  %v763_v3 = vld [vmem:[#allocation8 + $0xf8] sm:$0xff]  ;;  %v7393_v5 = vcombine.low %v750_v0, %v754_v57  ;;  %v798_v0 = vld [vmem:[#allocation8 + $0x210] sm:$0xff] }
 0x28f   :  { %4001 = vmatprep.subr.bf16.mxu0 %v7862_v6  ;;  %4173 = vmatprep.subr.bf16.mxu1 %v7864_v7  ;;  %v7395_v6 = vcombine.low %v751_v59, %v755_v58  ;;  %v7402_v7 = vcombine.high %v758_v12, %v762_v1  ;;  %v7404_v8 = vcombine.high %v759_v2, %v763_v3  ;;  %v802_v57 = vld [vmem:[#allocation8 + $0x230] sm:$0xff]  ;;  %v799_v59 = vld [vmem:[#allocation8 + $0x218] sm:$0xff] }
 0x290   :  { %v803_v58 = vld [vmem:[#allocation8 + $0x238] sm:$0xff] }
 0x292   :  { %4002 = vmatpush1.bf16.msra.mxu0 %v7861_v18  ;;  %4174 = vmatpush1.bf16.msra.mxu1 %v7863_v20  ;;  %v7401_v18 = vcombine.low %v758_v12, %v762_v1  ;;  %v7403_v20 = vcombine.low %v759_v2, %v763_v3  ;;  %v806_v12 = vld [vmem:[#allocation8 + $0x250] sm:$0xff]  ;;  %v807_v2 = vld [vmem:[#allocation8 + $0x258] sm:$0xff] }
 0x293   :  { %4003 = vmatprep.subr.bf16.mxu0 %v7870_v21  ;;  %4175 = vmatprep.subr.bf16.mxu1 %v7872_v22  ;;  %v7410_v21 = vcombine.high %v766_v9, %v770_v10  ;;  %v810_v1 = vld [vmem:[#allocation8 + $0x270] sm:$0xff]  ;;  %v811_v3 = vld [vmem:[#allocation8 + $0x278] sm:$0xff] }
 0x296   :  { %4004 = vmatpush1.bf16.msra.mxu0 %v7869_v27  ;;  %4176 = vmatpush1.bf16.msra.mxu1 %v7871_v28  ;;  %v7409_v27 = vcombine.low %v766_v9, %v770_v10  ;;  %v814_v9 = vld [vmem:[#allocation8 + $0x290] sm:$0xff] }
 0x297   :  { %4005 = vmatprep.subr.bf16.mxu0 %v7878_v32  ;;  %4177 = vmatprep.subr.bf16.mxu1 %v7880_v33  ;;  %v7418_v32 = vcombine.high %v774_v23, %v778_v24  ;;  %v7420_v33 = vcombine.high %v775_v25, %v779_v26  ;;  %v818_v10 = vld [vmem:[#allocation8 + $0x2b0] sm:$0xff] }
 0x29a   :  { %4006 = vmatpush1.bf16.msra.mxu0 %v7877_v46  ;;  %4178 = vmatpush1.bf16.msra.mxu1 %v7879_v47  ;;  %v7417_v46 = vcombine.low %v774_v23, %v778_v24  ;;  %v7419_v47 = vcombine.low %v775_v25, %v779_v26  ;;  %v822_v23 = vld [vmem:[#allocation8 + $0x2d0] sm:$0xff]  ;;  %v823_v25 = vld [vmem:[#allocation8 + $0x2d8] sm:$0xff] }
 0x29b   :  { %4190 = vmatprep.subr.bf16.mxu0 %v7378_v48  ;;  %4362 = vmatprep.subr.bf16.mxu1 %v7380_v49  ;;  %v7426_v48 = vcombine.high %v782_v34, %v786_v39  ;;  %v7428_v49 = vcombine.high %v783_v42, %v787_v44  ;;  %v826_v24 = vld [vmem:[#allocation8 + $0x2f0] sm:$0xff]  ;;  %v827_v26 = vld [vmem:[#allocation8 + $0x2f8] sm:$0xff] }
 0x29d   :  { %4008 = vmatmul.mubr.bf16.vlgmr.msra.gmra.mrb[0].mxu0 %v9615_v4  ;;  %4180 = vmatmul.mubr.bf16.vlgmr.msra.gmra.mrb[16].mxu1 %v9615_v4 }
 0x29e   :  { %4191 = vmatpush1.bf16.msra.mxu0 %v7377_v53  ;;  %4222 = vmatprep.mubr.bf16.mxu0 %v9566_v40  ;;  %v7425_v53 = vcombine.low %v782_v34, %v786_v39  ;;  %v830_v34 = vld [vmem:[#allocation8 + $0x310] sm:$0xff] }
 0x29f   :  { %4363 = vmatpush1.bf16.msra.mxu1 %v7379_v54  ;;  %4394 = vmatprep.mubr.bf16.mxu1 %v9566_v40  ;;  %v767_v40 = vld [vmem:[#allocation8 + $0x118] sm:$0xff]  ;;  %v7427_v54 = vcombine.low %v783_v42, %v787_v44  ;;  %v834_v39 = vld [vmem:[#allocation8 + $0x330] sm:$0xff] }
 0x2a0   :  { %4192 = vmatprep.subr.bf16.mxu0 %v7386_v55  ;;  %4364 = vmatprep.subr.bf16.mxu1 %v7388_v56  ;;  %v7412_v22 = vcombine.high %v767_v40, %v771_v11  ;;  %v7411_v28 = vcombine.low %v767_v40, %v771_v11  ;;  %v7434_v55 = vcombine.high %v790_v50, %v794_v51  ;;  %v815_v40 = vld [vmem:[#allocation8 + $0x298] sm:$0xff] }
 0x2a1   :  { %v7436_v56 = vcombine.high %v791_v52, %v795_v15  ;;  %v819_v11 = vld [vmem:[#allocation8 + $0x2b8] sm:$0xff] }
 0x2a2   :  { %4193 = vmatpush1.bf16.msra.mxu0 %v7385_v60  ;;  %v7433_v60 = vcombine.low %v790_v50, %v794_v51  ;;  %v831_v42 = vld [vmem:[#allocation8 + $0x318] sm:$0xff]  ;;  %v838_v50 = vld [vmem:[#allocation8 + $0x350] sm:$0xff] }
 0x2a3   :  { %4365 = vmatpush1.bf16.msra.mxu1 %v7387_v61  ;;  %4194 = vmatprep.subr.bf16.mxu0 %v7394_v62  ;;  %v7435_v61 = vcombine.low %v791_v52, %v795_v15  ;;  %v7442_v62 = vcombine.high %v798_v0, %v802_v57  ;;  %v835_v44 = vld [vmem:[#allocation8 + $0x338] sm:$0xff]  ;;  %v842_v51 = vld [vmem:[#allocation8 + $0x370] sm:$0xff] }
 0x2a4   :  { %4366 = vmatprep.subr.bf16.mxu1 %v7396_v63  ;;  %v7444_v63 = vcombine.high %v799_v59, %v803_v58  ;;  %v839_v52 = vld [vmem:[#allocation8 + $0x358] sm:$0xff] }
 0x2a5   :  { %v843_v15 = vld [vmem:[#allocation8 + $0x378] sm:$0xff] }
 0x2a6   :  { %4195 = vmatpush1.bf16.msra.mxu0 %v7393_v5  ;;  %v7441_v5 = vcombine.low %v798_v0, %v802_v57  ;;  %v846_v0 = vld [vmem:[#allocation8 + $0x390] sm:$0xff] }
 0x2a7   :  { %4367 = vmatpush1.bf16.msra.mxu1 %v7395_v6  ;;  %4196 = vmatprep.subr.bf16.mxu0 %v7402_v7  ;;  %v7443_v6 = vcombine.low %v799_v59, %v803_v58  ;;  %v7450_v7 = vcombine.high %v806_v12, %v810_v1  ;;  %v850_v57 = vld [vmem:[#allocation8 + $0x3b0] sm:$0xff]  ;;  %v847_v59 = vld [vmem:[#allocation8 + $0x398] sm:$0xff] }
 0x2a8   :  { %4368 = vmatprep.subr.bf16.mxu1 %v7404_v8  ;;  %v7452_v8 = vcombine.high %v807_v2, %v811_v3  ;;  %v851_v58 = vld [vmem:[#allocation8 + $0x3b8] sm:$0xff] }
 0x2aa   :  { %4197 = vmatpush1.bf16.msra.mxu0 %v7401_v18  ;;  %v7449_v18 = vcombine.low %v806_v12, %v810_v1  ;;  %v854_v12 = vld [vmem:[#allocation8 + $0x3d0] sm:$0xff] }
 0x2ab   :  { %4369 = vmatpush1.bf16.msra.mxu1 %v7403_v20  ;;  %4198 = vmatprep.subr.bf16.mxu0 %v7410_v21  ;;  %v7451_v20 = vcombine.low %v807_v2, %v811_v3  ;;  %v7458_v21 = vcombine.high %v814_v9, %v818_v10  ;;  %v858_v1 = vld [vmem:[#allocation8 + $0x3f0] sm:$0xff]  ;;  %v855_v2 = vld [vmem:[#allocation8 + $0x3d8] sm:$0xff] }
 0x2ac   :  { %4370 = vmatprep.subr.bf16.mxu1 %v7412_v22  ;;  %v7460_v22 = vcombine.high %v815_v40, %v819_v11  ;;  %v859_v3 = vld [vmem:[#allocation8 + $0x3f8] sm:$0xff] }
 0x2ae   :  { %4199 = vmatpush1.bf16.msra.mxu0 %v7409_v27  ;;  %v7457_v27 = vcombine.low %v814_v9, %v818_v10  ;;  %v862_v9 = vld [vmem:[#allocation8 + $0x410] sm:$0xff] }
 0x2af   :  { %4371 = vmatpush1.bf16.msra.mxu1 %v7411_v28  ;;  %4200 = vmatprep.subr.bf16.mxu0 %v7418_v32  ;;  %v7459_v28 = vcombine.low %v815_v40, %v819_v11  ;;  %v7466_v32 = vcombine.high %v822_v23, %v826_v24  ;;  %v866_v10 = vld [vmem:[#allocation8 + $0x430] sm:$0xff]  ;;  %v863_v40 = vld [vmem:[#allocation8 + $0x418] sm:$0xff] }
 0x2b0   :  { %4372 = vmatprep.subr.bf16.mxu1 %v7420_v33  ;;  %v7468_v33 = vcombine.high %v823_v25, %v827_v26  ;;  %v867_v11 = vld [vmem:[#allocation8 + $0x438] sm:$0xff] }
 0x2b2   :  { %4201 = vmatpush1.bf16.msra.mxu0 %v7417_v46  ;;  %v7465_v46 = vcombine.low %v822_v23, %v826_v24  ;;  %v870_v23 = vld [vmem:[#allocation8 + $0x450] sm:$0xff] }
 0x2b3   :  { %4373 = vmatpush1.bf16.msra.mxu1 %v7419_v47  ;;  %4202 = vmatprep.subr.bf16.mxu0 %v7426_v48  ;;  %v7467_v47 = vcombine.low %v823_v25, %v827_v26  ;;  %v7474_v48 = vcombine.high %v830_v34, %v834_v39  ;;  %v874_v24 = vld [vmem:[#allocation8 + $0x470] sm:$0xff]  ;;  %v7505_v25 = vcombine.low %v862_v9, %v866_v10  ;;  %v871_v26 = vld [vmem:[#allocation8 + $0x458] sm:$0xff] }
 0x2b4   :  { %4374 = vmatprep.subr.bf16.mxu1 %v7428_v49  ;;  %v7476_v49 = vcombine.high %v831_v42, %v835_v44 }
 0x2b6   :  { %4203 = vmatpush1.bf16.msra.mxu0 %v7425_v53  ;;  %v7473_v53 = vcombine.low %v830_v34, %v834_v39  ;;  %v882_v34 = vld [vmem:[#allocation8 + $0x4b0] sm:$0xff] }
 0x2b7   :  { %4375 = vmatpush1.bf16.msra.mxu1 %v7427_v54  ;;  %4204 = vmatprep.subr.bf16.mxu0 %v7434_v55  ;;  %v7475_v54 = vcombine.low %v831_v42, %v835_v44  ;;  %v7482_v55 = vcombine.high %v838_v50, %v842_v51  ;;  %v879_v42 = vld [vmem:[#allocation8 + $0x498] sm:$0xff] }
 0x2b8   :  { %4376 = vmatprep.subr.bf16.mxu1 %v7436_v56  ;;  %v7484_v56 = vcombine.high %v839_v52, %v843_v15  ;;  %v883_v44 = vld [vmem:[#allocation8 + $0x4b8] sm:$0xff] }
 0x2ba   :  { %4205 = vmatpush1.bf16.msra.mxu0 %v7433_v60  ;;  %v7481_v60 = vcombine.low %v838_v50, %v842_v51  ;;  %v886_v50 = vld [vmem:[#allocation8 + $0x4d0] sm:$0xff] }
 0x2bb   :  { %4377 = vmatpush1.bf16.msra.mxu1 %v7435_v61  ;;  %4206 = vmatprep.subr.bf16.mxu0 %v7442_v62  ;;  %v7483_v61 = vcombine.low %v839_v52, %v843_v15  ;;  %v7490_v62 = vcombine.high %v846_v0, %v850_v57  ;;  %v890_v51 = vld [vmem:[#allocation8 + $0x4f0] sm:$0xff]  ;;  %v887_v52 = vld [vmem:[#allocation8 + $0x4d8] sm:$0xff] }
 0x2bc   :  { %4378 = vmatprep.subr.bf16.mxu1 %v7444_v63  ;;  %v7492_v63 = vcombine.high %v847_v59, %v851_v58  ;;  %v891_v15 = vld [vmem:[#allocation8 + $0x4f8] sm:$0xff] }
 0x2be   :  { %4207 = vmatpush1.bf16.msra.mxu0 %v7441_v5  ;;  %v7489_v5 = vcombine.low %v846_v0, %v850_v57  ;;  %v898_v0 = vld [vmem:[#allocation8 + $0x530] sm:$0xff]  ;;  %v895_v57 = vld [vmem:[#allocation8 + $0x518] sm:$0xff] }
 0x2bf   :  { %4379 = vmatpush1.bf16.msra.mxu1 %v7443_v6  ;;  %4208 = vmatprep.subr.bf16.mxu0 %v7450_v7  ;;  %v7491_v6 = vcombine.low %v847_v59, %v851_v58  ;;  %v7498_v7 = vcombine.high %v854_v12, %v858_v1  ;;  %v899_v59 = vld [vmem:[#allocation8 + $0x538] sm:$0xff]  ;;  %v7531_v58 = vcombine.low %v887_v52, %v891_v15 }
 0x2c0   :  { %4380 = vmatprep.subr.bf16.mxu1 %v7452_v8  ;;  %v7500_v8 = vcombine.high %v855_v2, %v859_v3 }
 0x2c2   :  { %4209 = vmatpush1.bf16.msra.mxu0 %v7449_v18  ;;  %v7497_v18 = vcombine.low %v854_v12, %v858_v1  ;;  %v903_v12 = vld [vmem:[#allocation8 + $0x558] sm:$0xff] }
 0x2c3   :  { %4381 = vmatpush1.bf16.msra.mxu1 %v7451_v20  ;;  %4210 = vmatprep.subr.bf16.mxu0 %v7458_v21  ;;  %v7499_v20 = vcombine.low %v855_v2, %v859_v3  ;;  %v7506_v21 = vcombine.high %v862_v9, %v866_v10  ;;  %v907_v1 = vld [vmem:[#allocation8 + $0x578] sm:$0xff]  ;;  %v7539_v3 = vcombine.low %v895_v57, %v899_v59 }
 0x2c4   :  { %4382 = vmatprep.subr.bf16.mxu1 %v7460_v22  ;;  %v7508_v22 = vcombine.high %v863_v40, %v867_v11  ;;  %v911_v9 = vld [vmem:[#allocation8 + $0x598] sm:$0xff] }
 0x2c5   :  { %v915_v10 = vld [vmem:[#allocation8 + $0x5b8] sm:$0xff] }
 0x2c6   :  { %4211 = vmatpush1.bf16.msra.mxu0 %v7457_v27  ;;  %v875_v27 = vld [vmem:[#allocation8 + $0x478] sm:$0xff] }
 0x2c7   :  { %4383 = vmatpush1.bf16.msra.mxu1 %v7459_v28  ;;  %4212 = vmatprep.subr.bf16.mxu0 %v7466_v32  ;;  %v7507_v28 = vcombine.low %v863_v40, %v867_v11  ;;  %v7514_v32 = vcombine.high %v870_v23, %v874_v24  ;;  %v7516_v39 = vcombine.high %v871_v26, %v875_v27 }
 0x2c8   :  { %4384 = vmatprep.subr.bf16.mxu1 %v7468_v33  ;;  %v878_v33 = vld [vmem:[#allocation8 + $0x490] sm:$0xff]  ;;  %v7547_v11 = vcombine.low %v903_v12, %v907_v1 }
 0x2ca   :  { %4213 = vmatpush1.bf16.msra.mxu0 %v7465_v46  ;;  %v7513_v46 = vcombine.low %v870_v23, %v874_v24  ;;  %v919_v23 = vld [vmem:[#allocation8 + $0x5d8] sm:$0xff] }
 0x2cb   :  { %4385 = vmatpush1.bf16.msra.mxu1 %v7467_v47  ;;  %4214 = vmatprep.subr.bf16.mxu0 %v7474_v48  ;;  %v7515_v47 = vcombine.low %v871_v26, %v875_v27  ;;  %v7522_v48 = vcombine.high %v878_v33, %v882_v34  ;;  %v923_v24 = vld [vmem:[#allocation8 + $0x5f8] sm:$0xff]  ;;  %v7555_v26 = vcombine.low %v911_v9, %v915_v10 }
 0x2cc   :  { %4386 = vmatprep.subr.bf16.mxu1 %v7476_v49  ;;  %v7524_v49 = vcombine.high %v879_v42, %v883_v44 }
 0x2ce   :  { %4215 = vmatpush1.bf16.msra.mxu0 %v7473_v53  ;;  %v7521_v53 = vcombine.low %v878_v33, %v882_v34  ;;  %v930_v33 = vld [vmem:[#allocation8 + $0x630] sm:$0xff]  ;;  %v927_v34 = vld [vmem:[#allocation8 + $0x618] sm:$0xff] }
 0x2cf   :  { %4387 = vmatpush1.bf16.msra.mxu1 %v7475_v54  ;;  %4216 = vmatprep.subr.bf16.mxu0 %v7482_v55  ;;  %v7530_v54 = vcombine.high %v886_v50, %v890_v51  ;;  %v7532_v55 = vcombine.high %v887_v52, %v891_v15 }
 0x2d0   :  { %4388 = vmatprep.subr.bf16.mxu1 %v7484_v56  ;;  %v894_v56 = vld [vmem:[#allocation8 + $0x510] sm:$0xff] }
 0x2d1   :  { %v7537_v2 = vcombine.low %v894_v56, %v898_v0 }
 0x2d2   :  { %4217 = vmatpush1.bf16.msra.mxu0 %v7481_v60  ;;  %v7538_v60 = vcombine.high %v894_v56, %v898_v0  ;;  %v943_v56 = vld [vmem:[#allocation8 + $0x698] sm:$0xff] }
 0x2d3   :  { %4389 = vmatpush1.bf16.msra.mxu1 %v7483_v61  ;;  %4218 = vmatprep.subr.bf16.mxu0 %v7490_v62  ;;  %v7540_v61 = vcombine.high %v895_v57, %v899_v59  ;;  %v902_v62 = vld [vmem:[#allocation8 + $0x550] sm:$0xff]  ;;  %v947_v0 = vld [vmem:[#allocation8 + $0x6b8] sm:$0xff] }
 0x2d4   :  { %4390 = vmatprep.subr.bf16.mxu1 %v7492_v63  ;;  %v906_v63 = vld [vmem:[#allocation8 + $0x570] sm:$0xff] }
 0x2d5   :  { %v7545_v40 = vcombine.low %v902_v62, %v906_v63 }
 0x2d6   :  { %4219 = vmatpush1.bf16.msra.mxu0 %v7489_v5  ;;  %v7546_v5 = vcombine.high %v902_v62, %v906_v63  ;;  %v951_v62 = vld [vmem:[#allocation8 + $0x6d8] sm:$0xff] }
 0x2d7   :  { %4391 = vmatpush1.bf16.msra.mxu1 %v7491_v6  ;;  %4220 = vmatprep.subr.bf16.mxu0 %v7498_v7  ;;  %v7548_v6 = vcombine.high %v903_v12, %v907_v1  ;;  %v910_v7 = vld [vmem:[#allocation8 + $0x590] sm:$0xff]  ;;  %v955_v63 = vld [vmem:[#allocation8 + $0x6f8] sm:$0xff]  ;;  %v7587_v1 = vcombine.low %v943_v56, %v947_v0 }
 0x2d8   :  { %4392 = vmatprep.subr.bf16.mxu1 %v7500_v8  ;;  %v914_v8 = vld [vmem:[#allocation8 + $0x5b0] sm:$0xff] }
 0x2da   :  { %4221 = vmatpush1.bf16.msra.mxu0 %v7497_v18  ;;  %v7554_v18 = vcombine.high %v910_v7, %v914_v8 }
 0x2db   :  { %4393 = vmatpush1.bf16.msra.mxu1 %v7499_v20  ;;  %4233 = vmatprep.subr.bf16.mxu0 %v7506_v21  ;;  %v7556_v20 = vcombine.high %v911_v9, %v915_v10  ;;  %v918_v21 = vld [vmem:[#allocation8 + $0x5d0] sm:$0xff]  ;;  %v7595_v10 = vcombine.low %v951_v62, %v955_v63 }
 0x2dc   :  { %4405 = vmatprep.subr.bf16.mxu1 %v7508_v22  ;;  %v922_v22 = vld [vmem:[#allocation8 + $0x5f0] sm:$0xff] }
 0x2dd   :  { %4223 = vmatmul.mubr.bf16.vlgmr.msra.gmra.mrb[4].mxu0 %v9564_v38  ;;  %v7562_v27 = vcombine.high %v918_v21, %v922_v22 }
 0x2de   :  { %4395 = vmatmul.mubr.bf16.vlgmr.msra.gmra.mrb[20].mxu1 %v9564_v38  ;;  %4234 = vmatpush1.bf16.msra.mxu0 %v7505_v25  ;;  %v7523_v38 = vcombine.low %v879_v42, %v883_v44  ;;  %v7553_v25 = vcombine.low %v910_v7, %v914_v8  ;;  %v7561_v42 = vcombine.low %v918_v21, %v922_v22  ;;  %v959_v7 = vld [vmem:[#allocation8 + $0x718] sm:$0xff] }
 0x2df   :  { %4265 = vmatprep.mubr.bf16.mxu0 %v9590_v35  ;;  %4406 = vmatpush1.bf16.msra.mxu1 %v7507_v28  ;;  %v7564_v28 = vcombine.high %v919_v23, %v923_v24  ;;  %v7563_v44 = vcombine.low %v919_v23, %v923_v24  ;;  %v963_v8 = vld [vmem:[#allocation8 + $0x738] sm:$0xff] }
 0x2e0   :  { %4437 = vmatprep.mubr.bf16.mxu1 %v9590_v35  ;;  %4235 = vmatprep.subr.bf16.mxu0 %v7514_v32  ;;  %v7529_v35 = vcombine.low %v886_v50, %v890_v51  ;;  %v926_v32 = vld [vmem:[#allocation8 + $0x610] sm:$0xff]  ;;  %v935_v50 = vld [vmem:[#allocation8 + $0x658] sm:$0xff]  ;;  %v7603_v24 = vcombine.low %v959_v7, %v963_v8 }
 0x2e1   :  { %4407 = vmatprep.subr.bf16.mxu1 %v7516_v39  ;;  %v931_v39 = vld [vmem:[#allocation8 + $0x638] sm:$0xff]  ;;  %v7569_v52 = vcombine.low %v926_v32, %v930_v33 }
 0x2e2   :  { %4236 = vmatpush1.bf16.msra.mxu0 %v7513_v46  ;;  %v7570_v46 = vcombine.high %v926_v32, %v930_v33  ;;  %v939_v51 = vld [vmem:[#allocation8 + $0x678] sm:$0xff]  ;;  %v7571_v15 = vcombine.low %v927_v34, %v931_v39 }
 0x2e3   :  { %4408 = vmatpush1.bf16.msra.mxu1 %v7515_v47  ;;  %4237 = vmatprep.subr.bf16.mxu0 %v7522_v48  ;;  %v7572_v47 = vcombine.high %v927_v34, %v931_v39  ;;  %v934_v48 = vld [vmem:[#allocation8 + $0x650] sm:$0xff]  ;;  %v7579_v59 = vcombine.low %v935_v50, %v939_v51  ;;  %v967_v21 = vld [vmem:[#allocation8 + $0x758] sm:$0xff] }
 0x2e4   :  { %4409 = vmatprep.subr.bf16.mxu1 %v7524_v49  ;;  %v938_v49 = vld [vmem:[#allocation8 + $0x670] sm:$0xff]  ;;  %v971_v22 = vld [vmem:[#allocation8 + $0x778] sm:$0xff] }
 0x2e5   :  { %v7577_v57 = vcombine.low %v934_v48, %v938_v49  ;;  %v975_v32 = vld [vmem:[#allocation8 + $0x798] sm:$0xff]  ;;  %v7611_v39 = vcombine.low %v967_v21, %v971_v22 }
 0x2e6   :  { %4238 = vmatpush1.bf16.msra.mxu0 %v7521_v53  ;;  %v7578_v53 = vcombine.high %v934_v48, %v938_v49  ;;  %v979_v33 = vld [vmem:[#allocation8 + $0x7b8] sm:$0xff] }
 0x2e7   :  { %4410 = vmatpush1.bf16.msra.mxu1 %v7523_v38  ;;  %4239 = vmatprep.subr.bf16.mxu0 %v7530_v54  ;;  %v7580_v38 = vcombine.high %v935_v50, %v939_v51  ;;  %v942_v54 = vld [vmem:[#allocation8 + $0x690] sm:$0xff]  ;;  %v983_v48 = vld [vmem:[#allocation8 + $0x7d8] sm:$0xff]  ;;  %v7619_v51 = vcombine.low %v975_v32, %v979_v33 }
 0x2e8   :  { %4411 = vmatprep.subr.bf16.mxu1 %v7532_v55  ;;  %v946_v55 = vld [vmem:[#allocation8 + $0x6b0] sm:$0xff]  ;;  %v987_v49 = vld [vmem:[#allocation8 + $0x7f8] sm:$0xff] }
 0x2e9   :  { %v7585_v12 = vcombine.low %v942_v54, %v946_v55 }
 0x2ea   :  { %4240 = vmatpush1.bf16.msra.mxu0 %v7529_v35  ;;  %v7586_v35 = vcombine.high %v942_v54, %v946_v55  ;;  %v991_v54 = vld [vmem:[#allocation8 + $0x818] sm:$0xff] }
 0x2eb   :  { %4412 = vmatpush1.bf16.msra.mxu1 %v7531_v58  ;;  %4241 = vmatprep.subr.bf16.mxu0 %v7538_v60  ;;  %v7588_v58 = vcombine.high %v943_v56, %v947_v0  ;;  %v950_v60 = vld [vmem:[#allocation8 + $0x6d0] sm:$0xff]  ;;  %v995_v55 = vld [vmem:[#allocation8 + $0x838] sm:$0xff]  ;;  %v7627_v0 = vcombine.low %v983_v48, %v987_v49 }
 0x2ec   :  { %4413 = vmatprep.subr.bf16.mxu1 %v7540_v61  ;;  %v954_v61 = vld [vmem:[#allocation8 + $0x6f0] sm:$0xff] }
 0x2ed   :  { %v7593_v9 = vcombine.low %v950_v60, %v954_v61 }
 0x2ee   :  { %4242 = vmatpush1.bf16.msra.mxu0 %v7537_v2  ;;  %v7594_v2 = vcombine.high %v950_v60, %v954_v61  ;;  %v999_v61 = vld [vmem:[#allocation8 + $0x858] sm:$0xff] }
 0x2ef   :  { %4414 = vmatpush1.bf16.msra.mxu1 %v7539_v3  ;;  %4243 = vmatprep.subr.bf16.mxu0 %v7546_v5  ;;  %v7596_v3 = vcombine.high %v951_v62, %v955_v63  ;;  %v958_v5 = vld [vmem:[#allocation8 + $0x710] sm:$0xff]  ;;  %v1003_v62 = vld [vmem:[#allocation8 + $0x878] sm:$0xff]  ;;  %v7635_v63 = vcombine.low %v991_v54, %v995_v55 }
 0x2f0   :  { %4415 = vmatprep.subr.bf16.mxu1 %v7548_v6  ;;  %v962_v6 = vld [vmem:[#allocation8 + $0x730] sm:$0xff] }
 0x2f1   :  { %v7601_v23 = vcombine.low %v958_v5, %v962_v6 }
 0x2f2   :  { %4244 = vmatpush1.bf16.msra.mxu0 %v7545_v40  ;;  %v7602_v40 = vcombine.high %v958_v5, %v962_v6  ;;  %v1007_v5 = vld [vmem:[#allocation8 + $0x898] sm:$0xff] }
 0x2f3   :  { %4416 = vmatpush1.bf16.msra.mxu1 %v7547_v11  ;;  %4245 = vmatprep.subr.bf16.mxu0 %v7554_v18  ;;  %v7604_v11 = vcombine.high %v959_v7, %v963_v8  ;;  %v966_v18 = vld [vmem:[#allocation8 + $0x750] sm:$0xff]  ;;  %v1011_v6 = vld [vmem:[#allocation8 + $0x8b8] sm:$0xff]  ;;  %v7643_v8 = vcombine.low %v999_v61, %v1003_v62 }
 0x2f4   :  { %4417 = vmatprep.subr.bf16.mxu1 %v7556_v20  ;;  %v970_v20 = vld [vmem:[#allocation8 + $0x770] sm:$0xff] }
 0x2f5   :  { %v7609_v34 = vcombine.low %v966_v18, %v970_v20 }
 0x2f6   :  { %4246 = vmatpush1.bf16.msra.mxu0 %v7553_v25  ;;  %v7610_v25 = vcombine.high %v966_v18, %v970_v20  ;;  %v1015_v18 = vld [vmem:[#allocation8 + $0x8d8] sm:$0xff] }
 0x2f7   :  { %4418 = vmatpush1.bf16.msra.mxu1 %v7555_v26  ;;  %4247 = vmatprep.subr.bf16.mxu0 %v7562_v27  ;;  %v7612_v26 = vcombine.high %v967_v21, %v971_v22  ;;  %v974_v27 = vld [vmem:[#allocation8 + $0x790] sm:$0xff]  ;;  %v1019_v20 = vld [vmem:[#allocation8 + $0x8f8] sm:$0xff] }
 0x2f8   :  { %4419 = vmatprep.subr.bf16.mxu1 %v7564_v28  ;;  %v978_v28 = vld [vmem:[#allocation8 + $0x7b0] sm:$0xff] }
 0x2f9   :  { %v7617_v50 = vcombine.low %v974_v27, %v978_v28 }
 0x2fa   :  { %4248 = vmatpush1.bf16.msra.mxu0 %v7561_v42  ;;  %v7618_v42 = vcombine.high %v974_v27, %v978_v28  ;;  %v1027_v27 = vld [vmem:[#allocation8 + $0x938] sm:$0xff]  ;;  %v7659_v28 = vcombine.low %v1015_v18, %v1019_v20 }
 0x2fb   :  { %4420 = vmatpush1.bf16.msra.mxu1 %v7563_v44  ;;  %4249 = vmatprep.subr.bf16.mxu0 %v7570_v46  ;;  %v7620_v44 = vcombine.high %v975_v32, %v979_v33  ;;  %v982_v46 = vld [vmem:[#allocation8 + $0x7d0] sm:$0xff] }
 0x2fc   :  { %4421 = vmatprep.subr.bf16.mxu1 %v7572_v47  ;;  %v986_v47 = vld [vmem:[#allocation8 + $0x7f0] sm:$0xff] }
 0x2fd   :  { %v7625_v56 = vcombine.low %v982_v46, %v986_v47 }
 0x2fe   :  { %4250 = vmatpush1.bf16.msra.mxu0 %v7569_v52  ;;  %v7626_v52 = vcombine.high %v982_v46, %v986_v47 }
 0x2ff   :  { %4422 = vmatpush1.bf16.msra.mxu1 %v7571_v15  ;;  %4251 = vmatprep.subr.bf16.mxu0 %v7578_v53  ;;  %v7628_v15 = vcombine.high %v983_v48, %v987_v49  ;;  %v990_v53 = vld [vmem:[#allocation8 + $0x810] sm:$0xff] }
 0x300   :  { %4423 = vmatprep.subr.bf16.mxu1 %v7580_v38  ;;  %v994_v38 = vld [vmem:[#allocation8 + $0x830] sm:$0xff] }
 0x301   :  { %v7633_v60 = vcombine.low %v990_v53, %v994_v38 }
 0x302   :  { %4252 = vmatpush1.bf16.msra.mxu0 %v7577_v57  ;;  %v7634_v57 = vcombine.high %v990_v53, %v994_v38 }
 0x303   :  { %4424 = vmatpush1.bf16.msra.mxu1 %v7579_v59  ;;  %4253 = vmatprep.subr.bf16.mxu0 %v7586_v35  ;;  %v7636_v59 = vcombine.high %v991_v54, %v995_v55  ;;  %v998_v35 = vld [vmem:[#allocation8 + $0x850] sm:$0xff] }
 0x304   :  { %4425 = vmatprep.subr.bf16.mxu1 %v7588_v58  ;;  %v1002_v58 = vld [vmem:[#allocation8 + $0x870] sm:$0xff] }
 0x305   :  { %v7641_v7 = vcombine.low %v998_v35, %v1002_v58 }
 0x306   :  { %4254 = vmatpush1.bf16.msra.mxu0 %v7585_v12  ;;  %v7642_v12 = vcombine.high %v998_v35, %v1002_v58 }
 0x307   :  { %4426 = vmatpush1.bf16.msra.mxu1 %v7587_v1  ;;  %4255 = vmatprep.subr.bf16.mxu0 %v7594_v2  ;;  %v1006_v1 = vld [vmem:[#allocation8 + $0x890] sm:$0xff] }
 0x308   :  { %4427 = vmatprep.subr.bf16.mxu1 %v7596_v3  ;;  %v1010_v2 = vld [vmem:[#allocation8 + $0x8b0] sm:$0xff]  ;;  %v7644_v3 = vcombine.high %v999_v61, %v1003_v62 }
 0x309   :  { %v7649_v21 = vcombine.low %v1006_v1, %v1010_v2  ;;  %v1054_v62 = vld [vmem:[#allocation8 + $0xa10] sm:$0xff] }
 0x30a   :  { %4256 = vmatpush1.bf16.msra.mxu0 %v7593_v9  ;;  %v7650_v9 = vcombine.high %v1006_v1, %v1010_v2  ;;  %v1059_v1 = vld [vmem:[#allocation8 + $0xa38] sm:$0xff] }
 0x30b   :  { %4428 = vmatpush1.bf16.msra.mxu1 %v7595_v10  ;;  %4257 = vmatprep.subr.bf16.mxu0 %v7602_v40  ;;  %v7652_v10 = vcombine.high %v1007_v5, %v1011_v6  ;;  %v1014_v40 = vld [vmem:[#allocation8 + $0x8d0] sm:$0xff] }
 0x30c   :  { %4429 = vmatprep.subr.bf16.mxu1 %v7604_v11  ;;  %v1018_v11 = vld [vmem:[#allocation8 + $0x8f0] sm:$0xff] }
 0x30d   :  { %v7658_v22 = vcombine.high %v1014_v40, %v1018_v11 }
 0x30e   :  { %4258 = vmatpush1.bf16.msra.mxu0 %v7601_v23  ;;  %v7660_v23 = vcombine.high %v1015_v18, %v1019_v20 }
 0x30f   :  { %4430 = vmatpush1.bf16.msra.mxu1 %v7603_v24  ;;  %4259 = vmatprep.subr.bf16.mxu0 %v7610_v25  ;;  %v1022_v24 = vld [vmem:[#allocation8 + $0x910] sm:$0xff] }
 0x310   :  { %4431 = vmatprep.subr.bf16.mxu1 %v7612_v26  ;;  %v1026_v25 = vld [vmem:[#allocation8 + $0x930] sm:$0xff]  ;;  %v1023_v26 = vld [vmem:[#allocation8 + $0x918] sm:$0xff] }
 0x311   :  { %v7666_v32 = vcombine.high %v1022_v24, %v1026_v25  ;;  %v7668_v33 = vcombine.high %v1023_v26, %v1027_v27  ;;  %v7665_v46 = vcombine.low %v1022_v24, %v1026_v25  ;;  %v7667_v47 = vcombine.low %v1023_v26, %v1027_v27 }
 0x312   :  { %4260 = vmatpush1.bf16.msra.mxu0 %v7609_v34  ;;  %v1030_v34 = vld [vmem:[#allocation8 + $0x950] sm:$0xff] }
 0x313   :  { %4432 = vmatpush1.bf16.msra.mxu1 %v7611_v39  ;;  %4261 = vmatprep.subr.bf16.mxu0 %v7618_v42  ;;  %v1034_v39 = vld [vmem:[#allocation8 + $0x970] sm:$0xff]  ;;  %v1031_v42 = vld [vmem:[#allocation8 + $0x958] sm:$0xff] }
 0x314   :  { %4433 = vmatprep.subr.bf16.mxu1 %v7620_v44  ;;  %v1035_v44 = vld [vmem:[#allocation8 + $0x978] sm:$0xff]  ;;  %v7674_v48 = vcombine.high %v1030_v34, %v1034_v39  ;;  %v7673_v53 = vcombine.low %v1030_v34, %v1034_v39 }
 0x315   :  { %v7676_v49 = vcombine.high %v1031_v42, %v1035_v44  ;;  %v7675_v38 = vcombine.low %v1031_v42, %v1035_v44 }
 0x316   :  { %4262 = vmatpush1.bf16.msra.mxu0 %v7617_v50  ;;  %v1038_v50 = vld [vmem:[#allocation8 + $0x990] sm:$0xff] }
 0x317   :  { %4434 = vmatpush1.bf16.msra.mxu1 %v7619_v51  ;;  %4263 = vmatprep.subr.bf16.mxu0 %v7626_v52  ;;  %v1042_v51 = vld [vmem:[#allocation8 + $0x9b0] sm:$0xff]  ;;  %v1039_v52 = vld [vmem:[#allocation8 + $0x998] sm:$0xff] }
 0x318   :  { %4435 = vmatprep.subr.bf16.mxu1 %v7628_v15  ;;  %v1043_v15 = vld [vmem:[#allocation8 + $0x9b8] sm:$0xff]  ;;  %v7682_v54 = vcombine.high %v1038_v50, %v1042_v51  ;;  %v7681_v35 = vcombine.low %v1038_v50, %v1042_v51 }
 0x319   :  { %v7684_v55 = vcombine.high %v1039_v52, %v1043_v15  ;;  %v7683_v58 = vcombine.low %v1039_v52, %v1043_v15 }
 0x31a   :  { %4264 = vmatpush1.bf16.msra.mxu0 %v7625_v56  ;;  %v1046_v56 = vld [vmem:[#allocation8 + $0x9d0] sm:$0xff] }
 0x31b   :  { %4436 = vmatpush1.bf16.msra.mxu1 %v7627_v0  ;;  %4276 = vmatprep.subr.bf16.mxu0 %v7634_v57  ;;  %v1050_v0 = vld [vmem:[#allocation8 + $0x9f0] sm:$0xff]  ;;  %v1047_v57 = vld [vmem:[#allocation8 + $0x9d8] sm:$0xff] }
 0x31c   :  { %4448 = vmatprep.subr.bf16.mxu1 %v7636_v59  ;;  %v1051_v59 = vld [vmem:[#allocation8 + $0x9f8] sm:$0xff]  ;;  %v7689_v2 = vcombine.low %v1046_v56, %v1050_v0 }
 0x31d   :  { %4266 = vmatmul.mubr.bf16.vlgmr.msra.gmra.mrb[4].mxu0 %v9588_v31  ;;  %v7692_v61 = vcombine.high %v1047_v57, %v1051_v59 }
 0x31e   :  { %4438 = vmatmul.mubr.bf16.vlgmr.msra.gmra.mrb[20].mxu1 %v9588_v31  ;;  %4277 = vmatpush1.bf16.msra.mxu0 %v7633_v60  ;;  %v7651_v31 = vcombine.low %v1007_v5, %v1011_v6  ;;  %v7690_v60 = vcombine.high %v1046_v56, %v1050_v0 }
 0x31f   :  { %4308 = vmatprep.mubr.bf16.mxu0 %v9604_v37  ;;  %4449 = vmatpush1.bf16.msra.mxu1 %v7635_v63  ;;  %v1058_v63 = vld [vmem:[#allocation8 + $0xa30] sm:$0xff] }
 0x320   :  { %4480 = vmatprep.mubr.bf16.mxu1 %v9604_v37  ;;  %4278 = vmatprep.subr.bf16.mxu0 %v7642_v12  ;;  %v7657_v37 = vcombine.low %v1014_v40, %v1018_v11  ;;  %v1055_v12 = vld [vmem:[#allocation8 + $0xa18] sm:$0xff]  ;;  %v7698_v5 = vcombine.high %v1054_v62, %v1058_v63  ;;  %v7697_v40 = vcombine.low %v1054_v62, %v1058_v63 }
 0x321   :  { %4450 = vmatprep.subr.bf16.mxu1 %v7644_v3  ;;  %v7691_v3 = vcombine.low %v1047_v57, %v1051_v59  ;;  %v7700_v6 = vcombine.high %v1055_v12, %v1059_v1  ;;  %v7699_v11 = vcombine.low %v1055_v12, %v1059_v1 }
 0x322   :  { %4279 = vmatpush1.bf16.msra.mxu0 %v7641_v7  ;;  %v1062_v7 = vld [vmem:[#allocation8 + $0xa50] sm:$0xff] }
 0x323   :  { %4451 = vmatpush1.bf16.msra.mxu1 %v7643_v8  ;;  %4280 = vmatprep.subr.bf16.mxu0 %v7650_v9  ;;  %v1066_v8 = vld [vmem:[#allocation8 + $0xa70] sm:$0xff]  ;;  %v1063_v9 = vld [vmem:[#allocation8 + $0xa58] sm:$0xff] }
 0x324   :  { %4452 = vmatprep.subr.bf16.mxu1 %v7652_v10  ;;  %v1067_v10 = vld [vmem:[#allocation8 + $0xa78] sm:$0xff]  ;;  %v7706_v18 = vcombine.high %v1062_v7, %v1066_v8  ;;  %v7705_v24 = vcombine.low %v1062_v7, %v1066_v8 }
 0x325   :  { %v7708_v20 = vcombine.high %v1063_v9, %v1067_v10  ;;  %v7707_v25 = vcombine.low %v1063_v9, %v1067_v10 }
 0x326   :  { %4281 = vmatpush1.bf16.msra.mxu0 %v7649_v21  ;;  %v1070_v21 = vld [vmem:[#allocation8 + $0xa90] sm:$0xff] }
 0x327   :  { %4453 = vmatpush1.bf16.msra.mxu1 %v7651_v31  ;;  %4282 = vmatprep.subr.bf16.mxu0 %v7658_v22  ;;  %v1074_v31 = vld [vmem:[#allocation8 + $0xab0] sm:$0xff]  ;;  %v1071_v22 = vld [vmem:[#allocation8 + $0xa98] sm:$0xff] }
 0x328   :  { %4454 = vmatprep.subr.bf16.mxu1 %v7660_v23  ;;  %v1075_v23 = vld [vmem:[#allocation8 + $0xab8] sm:$0xff]  ;;  %v7714_v26 = vcombine.high %v1070_v21, %v1074_v31  ;;  %v7713_v34 = vcombine.low %v1070_v21, %v1074_v31 }
 0x329   :  { %v7716_v27 = vcombine.high %v1071_v22, %v1075_v23  ;;  %v7715_v39 = vcombine.low %v1071_v22, %v1075_v23 }
 0x32a   :  { %4283 = vmatpush1.bf16.msra.mxu0 %v7657_v37  ;;  %v1078_v37 = vld [vmem:[#allocation8 + $0xad0] sm:$0xff] }
 0x32b   :  { %4455 = vmatpush1.bf16.msra.mxu1 %v7659_v28  ;;  %4284 = vmatprep.subr.bf16.mxu0 %v7666_v32  ;;  %v1082_v28 = vld [vmem:[#allocation8 + $0xaf0] sm:$0xff]  ;;  %v1079_v32 = vld [vmem:[#allocation8 + $0xad8] sm:$0xff] }
 0x32c   :  { %4456 = vmatprep.subr.bf16.mxu1 %v7668_v33  ;;  %v1083_v33 = vld [vmem:[#allocation8 + $0xaf8] sm:$0xff]  ;;  %v7722_v42 = vcombine.high %v1078_v37, %v1082_v28  ;;  %v7721_v50 = vcombine.low %v1078_v37, %v1082_v28 }
 0x32d   :  { %v7724_v44 = vcombine.high %v1079_v32, %v1083_v33  ;;  %v7723_v51 = vcombine.low %v1079_v32, %v1083_v33  ;;  %v1131_v37 = vld [vmem:[#allocation8 + $0xc78] sm:$0xff]  ;;  %v1134_v33 = vld [vmem:[#allocation8 + $0xc90] sm:$0xff] }
 0x32e   :  { %4285 = vmatpush1.bf16.msra.mxu0 %v7665_v46  ;;  %v1086_v46 = vld [vmem:[#allocation8 + $0xb10] sm:$0xff] }
 0x32f   :  { %4457 = vmatpush1.bf16.msra.mxu1 %v7667_v47  ;;  %4286 = vmatprep.subr.bf16.mxu0 %v7674_v48  ;;  %v1090_v47 = vld [vmem:[#allocation8 + $0xb30] sm:$0xff]  ;;  %v1087_v48 = vld [vmem:[#allocation8 + $0xb18] sm:$0xff] }
 0x330   :  { %4458 = vmatprep.subr.bf16.mxu1 %v7676_v49  ;;  %v1091_v49 = vld [vmem:[#allocation8 + $0xb38] sm:$0xff]  ;;  %v7730_v52 = vcombine.high %v1086_v46, %v1090_v47  ;;  %v7729_v56 = vcombine.low %v1086_v46, %v1090_v47 }
 0x331   :  { %v7732_v15 = vcombine.high %v1087_v48, %v1091_v49  ;;  %v7731_v0 = vcombine.low %v1087_v48, %v1091_v49 }
 0x332   :  { %4287 = vmatpush1.bf16.msra.mxu0 %v7673_v53  ;;  %v1094_v53 = vld [vmem:[#allocation8 + $0xb50] sm:$0xff] }
 0x333   :  { %4459 = vmatpush1.bf16.msra.mxu1 %v7675_v38  ;;  %4288 = vmatprep.subr.bf16.mxu0 %v7682_v54  ;;  %v1098_v38 = vld [vmem:[#allocation8 + $0xb70] sm:$0xff]  ;;  %v1095_v54 = vld [vmem:[#allocation8 + $0xb58] sm:$0xff] }
 0x334   :  { %4460 = vmatprep.subr.bf16.mxu1 %v7684_v55  ;;  %v1099_v55 = vld [vmem:[#allocation8 + $0xb78] sm:$0xff]  ;;  %v7738_v57 = vcombine.high %v1094_v53, %v1098_v38  ;;  %v7737_v62 = vcombine.low %v1094_v53, %v1098_v38 }
 0x335   :  { %v7740_v59 = vcombine.high %v1095_v54, %v1099_v55  ;;  %v7739_v63 = vcombine.low %v1095_v54, %v1099_v55  ;;  %v1150_v55 = vld [vmem:[#allocation8 + $0xd10] sm:$0xff] }
 0x336   :  { %4289 = vmatpush1.bf16.msra.mxu0 %v7681_v35  ;;  %v1102_v35 = vld [vmem:[#allocation8 + $0xb90] sm:$0xff] }
 0x337   :  { %4461 = vmatpush1.bf16.msra.mxu1 %v7683_v58  ;;  %4290 = vmatprep.subr.bf16.mxu0 %v7690_v60  ;;  %v1106_v58 = vld [vmem:[#allocation8 + $0xbb0] sm:$0xff]  ;;  %v1103_v60 = vld [vmem:[#allocation8 + $0xb98] sm:$0xff] }
 0x338   :  { %4462 = vmatprep.subr.bf16.mxu1 %v7692_v61  ;;  %v1107_v61 = vld [vmem:[#allocation8 + $0xbb8] sm:$0xff]  ;;  %v7746_v12 = vcombine.high %v1102_v35, %v1106_v58  ;;  %v7745_v7 = vcombine.low %v1102_v35, %v1106_v58 }
 0x339   :  { %v7748_v1 = vcombine.high %v1103_v60, %v1107_v61  ;;  %v7747_v8 = vcombine.low %v1103_v60, %v1107_v61  ;;  %v1158_v60 = vld [vmem:[#allocation8 + $0xd50] sm:$0xff] }
 0x33a   :  { %4291 = vmatpush1.bf16.msra.mxu0 %v7689_v2  ;;  %v1110_v2 = vld [vmem:[#allocation8 + $0xbd0] sm:$0xff] }
 0x33b   :  { %4463 = vmatpush1.bf16.msra.mxu1 %v7691_v3  ;;  %4292 = vmatprep.subr.bf16.mxu0 %v7698_v5  ;;  %v1114_v3 = vld [vmem:[#allocation8 + $0xbf0] sm:$0xff]  ;;  %v1111_v5 = vld [vmem:[#allocation8 + $0xbd8] sm:$0xff] }
 0x33c   :  { %4464 = vmatprep.subr.bf16.mxu1 %v7700_v6  ;;  %v1115_v6 = vld [vmem:[#allocation8 + $0xbf8] sm:$0xff]  ;;  %v7754_v9 = vcombine.high %v1110_v2, %v1114_v3  ;;  %v7753_v21 = vcombine.low %v1110_v2, %v1114_v3  ;;  %v1162_v61 = vld [vmem:[#allocation8 + $0xd70] sm:$0xff] }
 0x33d   :  { %v7756_v10 = vcombine.high %v1111_v5, %v1115_v6  ;;  %v7755_v31 = vcombine.low %v1111_v5, %v1115_v6  ;;  %v7802_v3 = vcombine.high %v1158_v60, %v1162_v61  ;;  %v9643_v6 = vld [vmem:[#allocation8 + $0xd90] sm:$0xff] }
 0x33e   :  { %4293 = vmatpush1.bf16.msra.mxu0 %v7697_v40  ;;  %v1118_v40 = vld [vmem:[#allocation8 + $0xc10] sm:$0xff] }
 0x33f   :  { %4465 = vmatpush1.bf16.msra.mxu1 %v7699_v11  ;;  %4294 = vmatprep.subr.bf16.mxu0 %v7706_v18  ;;  %v1122_v11 = vld [vmem:[#allocation8 + $0xc30] sm:$0xff]  ;;  %v1119_v18 = vld [vmem:[#allocation8 + $0xc18] sm:$0xff] }
 0x340   :  { %4466 = vmatprep.subr.bf16.mxu1 %v7708_v20  ;;  %v1123_v20 = vld [vmem:[#allocation8 + $0xc38] sm:$0xff]  ;;  %v7762_v22 = vcombine.high %v1118_v40, %v1122_v11 }
 0x341   :  { %v7764_v23 = vcombine.high %v1119_v18, %v1123_v20  ;;  %v7763_v28 = vcombine.low %v1119_v18, %v1123_v20  ;;  %v9655_v18 = vld [vmem:[#allocation8 + $0xdf0] sm:$0xff] }
 0x342   :  { %4295 = vmatpush1.bf16.msra.mxu0 %v7705_v24  ;;  %v1126_v24 = vld [vmem:[#allocation8 + $0xc50] sm:$0xff] }
 0x343   :  { %4467 = vmatpush1.bf16.msra.mxu1 %v7707_v25  ;;  %4296 = vmatprep.subr.bf16.mxu0 %v7714_v26  ;;  %v1130_v25 = vld [vmem:[#allocation8 + $0xc70] sm:$0xff]  ;;  %v7761_v26 = vcombine.low %v1118_v40, %v1122_v11  ;;  %v9651_v40 = vld [vmem:[#allocation8 + $0xdb8] sm:$0xff] }
 0x344   :  { %4468 = vmatprep.subr.bf16.mxu1 %v7716_v27  ;;  %v1127_v27 = vld [vmem:[#allocation8 + $0xc58] sm:$0xff]  ;;  %v7770_v32 = vcombine.high %v1126_v24, %v1130_v25  ;;  %v7769_v46 = vcombine.low %v1126_v24, %v1130_v25  ;;  %v9653_v11 = vld [vmem:[#allocation8 + $0xdd0] sm:$0xff] }
 0x345   :  { %v7771_v47 = vcombine.low %v1127_v27, %v1131_v37 }
 0x346   :  { %4297 = vmatpush1.bf16.msra.mxu0 %v7713_v34  ;;  %v1138_v34 = vld [vmem:[#allocation8 + $0xcb0] sm:$0xff] }
 0x347   :  { %4469 = vmatpush1.bf16.msra.mxu1 %v7715_v39  ;;  %4298 = vmatprep.subr.bf16.mxu0 %v7722_v42  ;;  %v7772_v39 = vcombine.high %v1127_v27, %v1131_v37  ;;  %v1135_v42 = vld [vmem:[#allocation8 + $0xc98] sm:$0xff]  ;;  %v7778_v48 = vcombine.high %v1134_v33, %v1138_v34  ;;  %v7777_v53 = vcombine.low %v1134_v33, %v1138_v34  ;;  %v9667_v27 = vld [vmem:[#allocation8 + $0xe10] sm:$0xff] }
 0x348   :  { %4470 = vmatprep.subr.bf16.mxu1 %v7724_v44  ;;  %v1139_v44 = vld [vmem:[#allocation8 + $0xcb8] sm:$0xff]  ;;  %v9669_v37 = vld [vmem:[#allocation8 + $0xe30] sm:$0xff] }
 0x349   :  { %v7780_v49 = vcombine.high %v1135_v42, %v1139_v44 }
 0x34a   :  { %4299 = vmatpush1.bf16.msra.mxu0 %v7721_v50  ;;  %v1142_v50 = vld [vmem:[#allocation8 + $0xcd0] sm:$0xff] }
 0x34b   :  { %4471 = vmatpush1.bf16.msra.mxu1 %v7723_v51  ;;  %4300 = vmatprep.subr.bf16.mxu0 %v7730_v52  ;;  %v1146_v51 = vld [vmem:[#allocation8 + $0xcf0] sm:$0xff]  ;;  %v1143_v52 = vld [vmem:[#allocation8 + $0xcd8] sm:$0xff] }
 0x34c   :  { %4472 = vmatprep.subr.bf16.mxu1 %v7732_v15  ;;  %v1147_v15 = vld [vmem:[#allocation8 + $0xcf8] sm:$0xff]  ;;  %v7786_v38 = vcombine.high %v1142_v50, %v1146_v51 }
 0x34d   :  { %v7788_v54 = vcombine.high %v1143_v52, %v1147_v15 }
 0x34e   :  { %4301 = vmatpush1.bf16.msra.mxu0 %v7729_v56  ;;  %v1154_v56 = vld [vmem:[#allocation8 + $0xd30] sm:$0xff] }
 0x34f   :  { %4473 = vmatpush1.bf16.msra.mxu1 %v7731_v0  ;;  %4302 = vmatprep.subr.bf16.mxu0 %v7738_v57  ;;  %v1151_v0 = vld [vmem:[#allocation8 + $0xd18] sm:$0xff]  ;;  %v7794_v35 = vcombine.high %v1150_v55, %v1154_v56 }
 0x350   :  { %4474 = vmatprep.subr.bf16.mxu1 %v7740_v59  ;;  %v1155_v57 = vld [vmem:[#allocation8 + $0xd38] sm:$0xff]  ;;  %v7787_v59 = vcombine.low %v1143_v52, %v1147_v15 }
 0x351   :  { %v7796_v58 = vcombine.high %v1151_v0, %v1155_v57  ;;  %v7795_v2 = vcombine.low %v1151_v0, %v1155_v57  ;;  %v9685_v52 = vld [vmem:[#allocation8 + $0xe38] sm:$0xff] }
 0x352   :  { %4303 = vmatpush1.bf16.msra.mxu0 %v7737_v62  ;;  %v1159_v62 = vld [vmem:[#allocation8 + $0xd58] sm:$0xff] }
 0x353   :  { %4475 = vmatpush1.bf16.msra.mxu1 %v7739_v63  ;;  %4304 = vmatprep.subr.bf16.mxu0 %v7746_v12  ;;  %v1163_v63 = vld [vmem:[#allocation8 + $0xd78] sm:$0xff]  ;;  %v7793_v12 = vcombine.low %v1150_v55, %v1154_v56  ;;  %v7826_v55 = vcombine.high %v9667_v27, %v9669_v37 }
 0x354   :  { %4476 = vmatprep.subr.bf16.mxu1 %v7748_v1  ;;  %v1244_v1 = vld [vmem:[#allocation10] sm:$0xff]  ;;  %v7804_v5 = vcombine.high %v1159_v62, %v1163_v63  ;;  %v7803_v24 = vcombine.low %v1159_v62, %v1163_v63 }
 0x355   :  { %v1253_v20 = vrot.slane %v1244_v1, %v9558_v29 }
 0x356   :  { %4305 = vmatpush1.bf16.msra.mxu0 %v7745_v7  ;;  %v9645_v7 = vld [vmem:[#allocation8 + $0xdb0] sm:$0xff] }
 0x357   :  { %4477 = vmatpush1.bf16.msra.mxu1 %v7747_v8  ;;  %4306 = vmatprep.subr.bf16.mxu0 %v7754_v9  ;;  %v9647_v8 = vld [vmem:[#allocation8 + $0xd98] sm:$0xff]  ;;  %v1249_v9 = vrot.slane %v1244_v1, %v9553_v14  ;;  %v7809_v25 = vcombine.low %v9643_v6, %v9645_v7 }
 0x358   :  { %4478 = vmatprep.subr.bf16.mxu1 %v7756_v10  ;;  %v1257_v10 = vrot.slane %v1244_v1, %v9569_v41  ;;  %v7811_v33 = vcombine.low %v9647_v8, %v9651_v40  ;;  %v7812_v34 = vcombine.high %v9647_v8, %v9651_v40 }
 0x35a   :  { %4307 = vmatpush1.bf16.msra.mxu0 %v7753_v21  ;;  %v1261_v21 = vrot.slane %v1244_v1, %v9572_v45 }
 0x35b   :  { %4479 = vmatpush1.bf16.msra.mxu1 %v7755_v31  ;;  %4319 = vmatprep.subr.bf16.mxu0 %v7762_v22  ;;  %v7801_v31 = vcombine.low %v1158_v60, %v1162_v61  ;;  %v9659_v22 = vld [vmem:[#allocation8 + $0xdd8] sm:$0xff] }
 0x35c   :  { %4491 = vmatprep.subr.bf16.mxu1 %v7764_v23  ;;  %v9661_v23 = vld [vmem:[#allocation8 + $0xdf8] sm:$0xff] }
 0x35d   :  { %4309 = vmatmul.mubr.bf16.vlgmr.msra.gmra.mrb[4].mxu0 %v9602_v30 }
 0x35e   :  { %4481 = vmatmul.mubr.bf16.vlgmr.msra.gmra.mrb[20].mxu1 %v9602_v30  ;;  %4320 = vmatpush1.bf16.msra.mxu0 %v7761_v26  ;;  %v7779_v30 = vcombine.low %v1135_v42, %v1139_v44  ;;  %v7810_v26 = vcombine.high %v9643_v6, %v9645_v7  ;;  %v7818_v42 = vcombine.high %v9653_v11, %v9655_v18 }
 0x35f   :  { %4351 = vmatprep.mubr.bf16.mxu0 %v9617_v16  ;;  %4492 = vmatpush1.bf16.msra.mxu1 %v7763_v28 }
 0x360   :  { %4523 = vmatprep.mubr.bf16.mxu1 %v9617_v16  ;;  %4321 = vmatprep.subr.bf16.mxu0 %v7770_v32  ;;  %v7785_v16 = vcombine.low %v1142_v50, %v1146_v51  ;;  %v7820_v50 = vcombine.high %v9659_v22, %v9661_v23  ;;  %v9683_v51 = vld [vmem:[#allocation8 + $0xe18] sm:$0xff] }
 0x361   :  { %4493 = vmatprep.subr.bf16.mxu1 %v7772_v39  ;;  %v7817_v39 = vcombine.low %v9653_v11, %v9655_v18  ;;  %v1191_v11 = vld [vmem:[#allocation8 + $0xe58] sm:$0xff] }
 0x362   :  { %4322 = vmatpush1.bf16.msra.mxu0 %v7769_v46  ;;  %v1195_v18 = vld [vmem:[#allocation8 + $0xe78] sm:$0xff] }
 0x363   :  { %4494 = vmatpush1.bf16.msra.mxu1 %v7771_v47  ;;  %4323 = vmatprep.subr.bf16.mxu0 %v7778_v48 }
 0x364   :  { %4495 = vmatprep.subr.bf16.mxu1 %v7780_v49  ;;  %v7819_v49 = vcombine.low %v9659_v22, %v9661_v23 }
 0x366   :  { %4324 = vmatpush1.bf16.msra.mxu0 %v7777_v53 }
 0x367   :  { %4496 = vmatpush1.bf16.msra.mxu1 %v7779_v30  ;;  %4325 = vmatprep.subr.bf16.mxu0 %v7786_v38 }
 0x368   :  { %4497 = vmatprep.subr.bf16.mxu1 %v7788_v54  ;;  %v7825_v54 = vcombine.low %v9667_v27, %v9669_v37  ;;  %v7836_v37 = vcombine.high %v1191_v11, %v1195_v18 }
 0x36a   :  { %4326 = vmatpush1.bf16.msra.mxu0 %v7785_v16  ;;  %v7827_v16 = vcombine.low %v9683_v51, %v9685_v52 }
 0x36b   :  { %4498 = vmatpush1.bf16.msra.mxu1 %v7787_v59  ;;  %4327 = vmatprep.subr.bf16.mxu0 %v7794_v35  ;;  %v7828_v59 = vcombine.high %v9683_v51, %v9685_v52 }
 0x36c   :  { %4499 = vmatprep.subr.bf16.mxu1 %v7796_v58 }
 0x36e   :  { %4328 = vmatpush1.bf16.msra.mxu0 %v7793_v12 }
 0x36f   :  { %4500 = vmatpush1.bf16.msra.mxu1 %v7795_v2  ;;  %4329 = vmatprep.subr.bf16.mxu0 %v7802_v3  ;;  %v1190_v3 = vld [vmem:[#allocation8 + $0xe50] sm:$0xff] }
 0x370   :  { %v4009_v28 = vpop.f32.mrb[0].mxu0  ;;  %v4181_v32 = vpop.f32.mrb[16].mxu1  ;;  %4501 = vmatprep.subr.bf16.mxu1 %v7804_v5  ;;  %v1194_v5 = vld [vmem:[#allocation8 + $0xe70] sm:$0xff] }
 0x371   :  { %v8282_v44 = vadd.f32 %v4009_v28, %v1249_v9  ;;  %v8286_v46 = vadd.f32 %v4181_v32, %v1257_v10  ;;  %v4011_v47 = vpop.f32.mrb[1].mxu0  ;;  %v4183_v48 = vpop.f32.mrb[17].mxu1  ;;  %v1198_v28 = vld [vmem:[#allocation8 + $0xe90] sm:$0xff] }
 0x372   :  { %v8283_v15 = vadd.f32 %v4011_v47, %v1253_v20  ;;  %v8287_v53 = vadd.f32 %v4183_v48, %v1261_v21  ;;  %v4013_v30 = vpop.f32.mrb[2].mxu0  ;;  %v4185_v38 = vpop.f32.mrb[18].mxu1  ;;  %4330 = vmatpush1.bf16.msra.mxu0 %v7801_v31  ;;  %v1202_v32 = vld [vmem:[#allocation8 + $0xeb0] sm:$0xff] }
 0x373   :  { %vm4534_vm2 = vcmp.ge.f32.partialorder %v8282_v44, 0.0  ;;  %v4550_v56 = vmul.f32 0.01, %v8282_v44  ;;  %vm4536_vm3 = vcmp.ge.f32.partialorder %v8286_v46, 0.0  ;;  %v4552_v0 = vmul.f32 0.01, %v8286_v46  ;;  %4502 = vmatpush1.bf16.msra.mxu1 %v7803_v24  ;;  %4331 = vmatprep.subr.bf16.mxu0 %v7810_v26 }
 0x374   :  { %vm4535_vm4 = vcmp.ge.f32.partialorder %v8283_v15, 0.0  ;;  %v4551_v57 = vmul.f32 0.01, %v8283_v15  ;;  %4503 = vmatprep.subr.bf16.mxu1 %v7812_v34  ;;  %vm4537_vm5 = vcmp.ge.f32.partialorder %v8287_v53, 0.0  ;;  %v4553_v35 = vmul.f32 0.01, %v8287_v53 }
 0x375   :  { %v8284_v58 = vadd.f32 %v4013_v30, %v1249_v9  ;;  %v8288_v60 = vadd.f32 %v4185_v38, %v1257_v10  ;;  %v4015_v61 = vpop.f32.mrb[3].mxu0  ;;  %v4187_v62 = vpop.f32.mrb[19].mxu1  ;;  %v4566_v63 = vsel %vm4534_vm2, %v8282_v44, %v4550_v56  ;;  %v4568_v12 = vsel %vm4536_vm3, %v8286_v46, %v4552_v0  ;;  %v1203_v34 = vld [vmem:[#allocation8 + $0xeb8] sm:$0xff]  ;;  %v1206_v47 = vld [vmem:[#allocation8 + $0xed0] sm:$0xff] }
 0x376   :  { %v8285_v1 = vadd.f32 %v4015_v61, %v1253_v20  ;;  %v8289_v2 = vadd.f32 %v4187_v62, %v1261_v21  ;;  %4332 = vmatpush1.bf16.msra.mxu0 %v7809_v25  ;;  %v4567_v20 = vsel %vm4535_vm4, %v8283_v15, %v4551_v57  ;;  %v4569_v21 = vsel %vm4537_vm5, %v8287_v53, %v4553_v35  ;;  %v1210_v48 = vld [vmem:[#allocation8 + $0xef0] sm:$0xff] }
 0x377   :  { %vm4542_vm6 = vcmp.ge.f32.partialorder %v8284_v58, 0.0  ;;  %v4558_v6 = vmul.f32 0.01, %v8284_v58  ;;  %vm4544_vm7 = vcmp.ge.f32.partialorder %v8288_v60, 0.0  ;;  %v4560_v7 = vmul.f32 0.01, %v8288_v60  ;;  %4504 = vmatpush1.bf16.msra.mxu1 %v7811_v33  ;;  %4333 = vmatprep.subr.bf16.mxu0 %v7818_v42 }
 0x378   :  { %vm4543_vm8 = vcmp.ge.f32.partialorder %v8285_v1, 0.0  ;;  %v4559_v8 = vmul.f32 0.01, %v8285_v1  ;;  %vm4545_vm9 = vcmp.ge.f32.partialorder %v8289_v2, 0.0  ;;  %v4561_v9 = vmul.f32 0.01, %v8289_v2  ;;  %4505 = vmatprep.subr.bf16.mxu1 %v7820_v50 }
 0x379   :  { %v4574_v10 = vsel %vm4542_vm6, %v8284_v58, %v4558_v6  ;;  %v4576_v40 = vsel %vm4544_vm7, %v8288_v60, %v4560_v7  ;;  %v7834_v25 = vcombine.high %v1190_v3, %v1194_v5  ;;  %v1199_v33 = vld [vmem:[#allocation8 + $0xe98] sm:$0xff]  ;;  %v7833_v42 = vcombine.low %v1190_v3, %v1194_v5  ;;  %v1214_v30 = vld [vmem:[#allocation8 + $0xf10] sm:$0xff] }
 0x37a   :  { %v9699_v31 = vpack.c.bf16 %v4574_v10, %v4566_v63  ;;  %v9701_v22 = vpack.c.bf16 %v4576_v40, %v4568_v12  ;;  %4334 = vmatpush1.bf16.msra.mxu0 %v7817_v39  ;;  %v4575_v23 = vsel %vm4543_vm8, %v8285_v1, %v4559_v8  ;;  %v4577_v24 = vsel %vm4545_vm9, %v8289_v2, %v4561_v9  ;;  %v1211_v50 = vld [vmem:[#allocation8 + $0xef8] sm:$0xff]  ;;  %v1218_v38 = vld [vmem:[#allocation8 + $0xf30] sm:$0xff] }
 0x37b   :  { %4506 = vmatpush1.bf16.msra.mxu1 %v7819_v49  ;;  %4335 = vmatprep.subr.bf16.mxu0 %v7826_v55  ;;  %v9703_v26 = vpack.c.bf16 %v4575_v23, %v4567_v20  ;;  %v9705_v27 = vpack.c.bf16 %v4577_v24, %v4569_v21  ;;  %v7835_v39 = vcombine.low %v1191_v11, %v1195_v18  ;;  %v1207_v49 = vld [vmem:[#allocation8 + $0xed8] sm:$0xff]  ;;  %v1226_v35 = vld [vmem:[#allocation8 + $0xf70] sm:$0xff] }
 0x37c   :  { %4507 = vmatprep.subr.bf16.mxu1 %v7828_v59  ;;  %v7842_v44 = vcombine.high %v1198_v28, %v1202_v32  ;;  %v7844_v46 = vcombine.high %v1199_v33, %v1203_v34  ;;  %v7841_v51 = vcombine.low %v1198_v28, %v1202_v32  ;;  %v7843_v52 = vcombine.low %v1199_v33, %v1203_v34  ;;  %v1219_v55 = vld [vmem:[#allocation8 + $0xf38] sm:$0xff]  ;;  %v1222_v59 = vld [vmem:[#allocation8 + $0xf50] sm:$0xff] }
 0x37d   :  { %v7850_v15 = vcombine.high %v1206_v47, %v1210_v48  ;;  %v7852_v53 = vcombine.high %v1207_v49, %v1211_v50  ;;  %v7849_v56 = vcombine.low %v1206_v47, %v1210_v48  ;;  %v7851_v0 = vcombine.low %v1207_v49, %v1211_v50  ;;  %v1223_v58 = vld [vmem:[#allocation8 + $0xf58] sm:$0xff]  ;;  %v1230_v1 = vld [vmem:[#allocation8 + $0xf90] sm:$0xff] }
 0x37e   :  { %4336 = vmatpush1.bf16.msra.mxu0 %v7825_v54  ;;  %v1215_v54 = vld [vmem:[#allocation8 + $0xf18] sm:$0xff]  ;;  %v7858_v57 = vcombine.high %v1214_v30, %v1218_v38  ;;  %v7857_v61 = vcombine.low %v1214_v30, %v1218_v38  ;;  %v7866_v63 = vcombine.high %v1222_v59, %v1226_v35  ;;  %v1234_v2 = vld [vmem:[#allocation8 + $0xfb0] sm:$0xff]  ;;  %v7865_v6 = vcombine.low %v1222_v59, %v1226_v35 }
 0x37f   :  { %4508 = vmatpush1.bf16.msra.mxu1 %v7827_v16  ;;  %4337 = vmatprep.subr.bf16.mxu0 %v7834_v25  ;;  %v7860_v16 = vcombine.high %v1215_v54, %v1219_v55  ;;  %v1227_v60 = vld [vmem:[#allocation8 + $0xf78] sm:$0xff]  ;;  %v7859_v62 = vcombine.low %v1215_v54, %v1219_v55  ;;  %v7874_v8 = vcombine.high %v1230_v1, %v1234_v2  ;;  %v1238_v10 = vld [vmem:[#allocation8 + $0xfd0] sm:$0xff] }
 0x380   :  { %4509 = vmatprep.subr.bf16.mxu1 %v7836_v37  ;;  %v7868_v12 = vcombine.high %v1223_v58, %v1227_v60  ;;  %v1231_v3 = vld [vmem:[#allocation8 + $0xf98] sm:$0xff]  ;;  %v7867_v7 = vcombine.low %v1223_v58, %v1227_v60  ;;  %v1242_v40 = vld [vmem:[#allocation8 + $0xff0] sm:$0xff]  ;;  %v7873_v20 = vcombine.low %v1230_v1, %v1234_v2 }
 0x381   :  { %v1235_v5 = vld [vmem:[#allocation8 + $0xfb8] sm:$0xff]  ;;  %v7882_v23 = vcombine.high %v1238_v10, %v1242_v40  ;;  %v7881_v25 = vcombine.low %v1238_v10, %v1242_v40  ;;  %v8417_v32 = vld [vmem:[#allocation11 + $0xc] ss:$16 sps:$4 sm:$0xff]   ;;  %v8415_v34 = vld [vmem:[#allocation11 + $0x8] ss:$16 sps:$4 sm:$0xff]  }
 0x382   :  { %4338 = vmatpush1.bf16.msra.mxu0 %v7833_v42  ;;  %v7876_v9 = vcombine.high %v1231_v3, %v1235_v5  ;;  %v1239_v11 = vld [vmem:[#allocation8 + $0xfd8] sm:$0xff]  ;;  %v7875_v21 = vcombine.low %v1231_v3, %v1235_v5  ;;  %v8429_v48 = vld [vmem:[#allocation11 + $0x4c] ss:$16 sps:$4 sm:$0xff]   ;;  %v8427_v50 = vld [vmem:[#allocation11 + $0x48] ss:$16 sps:$4 sm:$0xff]  }
 0x383   :  { %4510 = vmatpush1.bf16.msra.mxu1 %v7835_v39  ;;  %4339 = vmatprep.subr.bf16.mxu0 %v7842_v44  ;;  %v1243_v18 = vld [vmem:[#allocation8 + $0xff8] sm:$0xff]  ;;  %v8423_v39 = vld [vmem:[#allocation11 + $0x2c] ss:$16 sps:$4 sm:$0xff]   ;;  %v8439_v38 = vld [vmem:[#allocation11 + $0x88] ss:$16 sps:$4 sm:$0xff]  }
 0x384   :  { %4511 = vmatprep.subr.bf16.mxu1 %v7844_v46  ;;  %v7884_v24 = vcombine.high %v1239_v11, %v1243_v18  ;;  %v7883_v37 = vcombine.low %v1239_v11, %v1243_v18  ;;  %v8414_v28 = vld [vmem:[#allocation11 + $0x4] ss:$16 sps:$4 sm:$0xff]   ;;  %v8412_v33 = vld [vmem:[#allocation11] ss:$16 sps:$4 sm:$0xff]   ;;  %v8421_v46 = vld [vmem:[#allocation11 + $0x28] ss:$16 sps:$4 sm:$0xff]  }
 0x385   :  { %v8420_v42 = vld [vmem:[#allocation11 + $0x24] ss:$16 sps:$4 sm:$0xff]   ;;  %v8418_v44 = vld [vmem:[#allocation11 + $0x20] ss:$16 sps:$4 sm:$0xff]   ;;  %v8441_v30 = vld [vmem:[#allocation11 + $0x8c] ss:$16 sps:$4 sm:$0xff]  }
 0x386   :  { %4340 = vmatpush1.bf16.msra.mxu0 %v7841_v51  ;;  %v8426_v47 = vld [vmem:[#allocation11 + $0x44] ss:$16 sps:$4 sm:$0xff]   ;;  %v8424_v49 = vld [vmem:[#allocation11 + $0x40] ss:$16 sps:$4 sm:$0xff]   ;;  %v8447_v55 = vld [vmem:[#allocation11 + $0xac] ss:$16 sps:$4 sm:$0xff]  }
 0x387   :  { %4512 = vmatpush1.bf16.msra.mxu1 %v7843_v52  ;;  %4341 = vmatprep.subr.bf16.mxu0 %v7850_v15  ;;  %v8432_v51 = vld [vmem:[#allocation11 + $0x64] ss:$16 sps:$4 sm:$0xff]   ;;  %v8430_v52 = vld [vmem:[#allocation11 + $0x60] ss:$16 sps:$4 sm:$0xff]   ;;  %v8433_v15 = vld [vmem:[#allocation11 + $0x68] ss:$16 sps:$4 sm:$0xff]  }
 0x388   :  { %4513 = vmatprep.subr.bf16.mxu1 %v7852_v53  ;;  %v8438_v53 = vld [vmem:[#allocation11 + $0x84] ss:$16 sps:$4 sm:$0xff]   ;;  %v8448_v59 = vld [vmem:[#allocation11 + $0xc0] ss:$16 sps:$4 sm:$0xff]   ;;  %v8451_v35 = vld [vmem:[#allocation11 + $0xc8] ss:$16 sps:$4 sm:$0xff]  }
 0x389   :  { %v8444_v54 = vld [vmem:[#allocation11 + $0xa4] ss:$16 sps:$4 sm:$0xff]   ;;  %v8459_v60 = vld [vmem:[#allocation11 + $0xec] ss:$16 sps:$4 sm:$0xff]   ;;  %v8460_v1 = vld [vmem:[#allocation11 + $0x100] ss:$16 sps:$4 sm:$0xff]  }
 0x38a   :  { %4342 = vmatpush1.bf16.msra.mxu0 %v7849_v56  ;;  %v8442_v56 = vld [vmem:[#allocation11 + $0xa0] ss:$16 sps:$4 sm:$0xff]   ;;  %v8456_v58 = vld [vmem:[#allocation11 + $0xe4] ss:$16 sps:$4 sm:$0xff]   ;;  %v8463_v2 = vld [vmem:[#allocation11 + $0x108] ss:$16 sps:$4 sm:$0xff]  }
 0x38b   :  { %4514 = vmatpush1.bf16.msra.mxu1 %v7851_v0  ;;  %4343 = vmatprep.subr.bf16.mxu0 %v7858_v57  ;;  %v8445_v0 = vld [vmem:[#allocation11 + $0xa8] ss:$16 sps:$4 sm:$0xff]   ;;  %v8450_v57 = vld [vmem:[#allocation11 + $0xc4] ss:$16 sps:$4 sm:$0xff]   ;;  %v8471_v5 = vld [vmem:[#allocation11 + $0x12c] ss:$16 sps:$4 sm:$0xff]  }
 0x38c   :  { %4515 = vmatprep.subr.bf16.mxu1 %v7860_v16  ;;  %v8453_v16 = vld [vmem:[#allocation11 + $0xcc] ss:$16 sps:$4 sm:$0xff]   ;;  %v8468_v3 = vld [vmem:[#allocation11 + $0x124] ss:$16 sps:$4 sm:$0xff]   ;;  %v8472_v10 = vld [vmem:[#allocation11 + $0x140] ss:$16 sps:$4 sm:$0xff]  }
 0x38d   :  { %v8475_v40 = vld [vmem:[#allocation11 + $0x148] ss:$16 sps:$4 sm:$0xff]   ;;  %v8480_v11 = vld [vmem:[#allocation11 + $0x164] ss:$16 sps:$4 sm:$0xff]   ;;  %v8483_v18 = vld [vmem:[#allocation11 + $0x16c] ss:$16 sps:$4 sm:$0xff]  }
 0x38e   :  { %4344 = vmatpush1.bf16.msra.mxu0 %v7857_v61  ;;  %v8454_v61 = vld [vmem:[#allocation11 + $0xe0] ss:$16 sps:$4 sm:$0xff]  }
 0x38f   :  { %4516 = vmatpush1.bf16.msra.mxu1 %v7859_v62  ;;  %4345 = vmatprep.subr.bf16.mxu0 %v7866_v63  ;;  %v8457_v62 = vld [vmem:[#allocation11 + $0xe8] ss:$16 sps:$4 sm:$0xff]   ;;  %v8462_v63 = vld [vmem:[#allocation11 + $0x104] ss:$16 sps:$4 sm:$0xff]  }
 0x390   :  { %4517 = vmatprep.subr.bf16.mxu1 %v7868_v12  ;;  %v8465_v12 = vld [vmem:[#allocation11 + $0x10c] ss:$16 sps:$4 sm:$0xff]  }
 0x392   :  { %4346 = vmatpush1.bf16.msra.mxu0 %v7865_v6  ;;  %v8466_v6 = vld [vmem:[#allocation11 + $0x120] ss:$16 sps:$4 sm:$0xff]  }
 0x393   :  { %4518 = vmatpush1.bf16.msra.mxu1 %v7867_v7  ;;  %4347 = vmatprep.subr.bf16.mxu0 %v7874_v8  ;;  %v8469_v7 = vld [vmem:[#allocation11 + $0x128] ss:$16 sps:$4 sm:$0xff]   ;;  %v8474_v8 = vld [vmem:[#allocation11 + $0x144] ss:$16 sps:$4 sm:$0xff]  }
 0x394   :  { %4519 = vmatprep.subr.bf16.mxu1 %v7876_v9  ;;  %v8477_v9 = vld [vmem:[#allocation11 + $0x14c] ss:$16 sps:$4 sm:$0xff]  }
 0x396   :  { %4348 = vmatpush1.bf16.msra.mxu0 %v7873_v20  ;;  %v8478_v20 = vld [vmem:[#allocation11 + $0x160] ss:$16 sps:$4 sm:$0xff]  }
 0x397   :  { %4520 = vmatpush1.bf16.msra.mxu1 %v7875_v21  ;;  %4349 = vmatprep.subr.bf16.mxu0 %v7882_v23  ;;  %v8481_v21 = vld [vmem:[#allocation11 + $0x168] ss:$16 sps:$4 sm:$0xff]   ;;  %v8486_v23 = vld [vmem:[#allocation11 + $0x184] ss:$16 sps:$4 sm:$0xff]  }
 0x398   :  { %4521 = vmatprep.subr.bf16.mxu1 %v7884_v24  ;;  %v8489_v24 = vld [vmem:[#allocation11 + $0x18c] ss:$16 sps:$4 sm:$0xff]  }
 0x39a   :  { %4350 = vmatpush1.bf16.msra.mxu0 %v7881_v25  ;;  %v8484_v25 = vld [vmem:[#allocation11 + $0x180] ss:$16 sps:$4 sm:$0xff]  }
 0x39b   :  { %4522 = vmatpush1.bf16.msra.mxu1 %v7883_v37  ;;  %6148 = vmatprep.subr.bf16.mxu0 %v8414_v28  ;;  %v8487_v37 = vld [vmem:[#allocation11 + $0x188] ss:$16 sps:$4 sm:$0xff]   ;;  %v8492_v28 = vld [vmem:[#allocation11 + $0x1a4] ss:$16 sps:$4 sm:$0xff]  }
 0x39c   :  { %6320 = vmatprep.subr.bf16.mxu1 %v8417_v32  ;;  %v8495_v32 = vld [vmem:[#allocation11 + $0x1ac] ss:$16 sps:$4 sm:$0xff]  }
 0x39d   :  { %4352 = vmatmul.mubr.bf16.vlgmr.msra.gmra.mrb[4].mxu0 %v9615_v4 }
 0x39e   :  { %4524 = vmatmul.mubr.bf16.vlgmr.msra.gmra.mrb[20].mxu1 %v9615_v4  ;;  %6149 = vmatpush1.bf16.msra.mxu0 %v8412_v33  ;;  %v8435_v4 = vld [vmem:[#allocation11 + $0x6c] ss:$16 sps:$4 sm:$0xff]   ;;  %v8490_v33 = vld [vmem:[#allocation11 + $0x1a0] ss:$16 sps:$4 sm:$0xff]  }
 0x39f   :  { %6180 = vmatprep.mubr.bf16.mxu0 %v9703_v26  ;;  %6321 = vmatpush1.bf16.msra.mxu1 %v8415_v34  ;;  %v8493_v34 = vld [vmem:[#allocation11 + $0x1a8] ss:$16 sps:$4 sm:$0xff]  }
 0x3a0   :  { %6352 = vmatprep.mubr.bf16.mxu1 %v9703_v26  ;;  %6150 = vmatprep.subr.bf16.mxu0 %v8420_v42  ;;  %v8436_v26 = vld [vmem:[#allocation11 + $0x80] ss:$16 sps:$4 sm:$0xff]   ;;  %v8498_v42 = vld [vmem:[#allocation11 + $0x1c4] ss:$16 sps:$4 sm:$0xff]  }
 0x3a1   :  { %6322 = vmatprep.subr.bf16.mxu1 %v8423_v39  ;;  %v8501_v39 = vld [vmem:[#allocation11 + $0x1cc] ss:$16 sps:$4 sm:$0xff]  }
 0x3a2   :  { %6151 = vmatpush1.bf16.msra.mxu0 %v8418_v44  ;;  %v8496_v44 = vld [vmem:[#allocation11 + $0x1c0] ss:$16 sps:$4 sm:$0xff]  }
 0x3a3   :  { %6323 = vmatpush1.bf16.msra.mxu1 %v8421_v46  ;;  %6152 = vmatprep.subr.bf16.mxu0 %v8426_v47  ;;  %v8499_v46 = vld [vmem:[#allocation11 + $0x1c8] ss:$16 sps:$4 sm:$0xff]   ;;  %v8504_v47 = vld [vmem:[#allocation11 + $0x1e4] ss:$16 sps:$4 sm:$0xff]  }
 0x3a4   :  { %6324 = vmatprep.subr.bf16.mxu1 %v8429_v48  ;;  %v8507_v48 = vld [vmem:[#allocation11 + $0x1ec] ss:$16 sps:$4 sm:$0xff]  }
 0x3a6   :  { %6153 = vmatpush1.bf16.msra.mxu0 %v8424_v49  ;;  %v8502_v49 = vld [vmem:[#allocation11 + $0x1e0] ss:$16 sps:$4 sm:$0xff]  }
 0x3a7   :  { %6325 = vmatpush1.bf16.msra.mxu1 %v8427_v50  ;;  %6154 = vmatprep.subr.bf16.mxu0 %v8432_v51  ;;  %v8505_v50 = vld [vmem:[#allocation11 + $0x1e8] ss:$16 sps:$4 sm:$0xff]   ;;  %v8510_v51 = vld [vmem:[#allocation11 + $0x204] ss:$16 sps:$4 sm:$0xff]  }
 0x3a8   :  { %6326 = vmatprep.subr.bf16.mxu1 %v8435_v4  ;;  %v8513_v4 = vld [vmem:[#allocation11 + $0x20c] ss:$16 sps:$4 sm:$0xff]  }
 0x3aa   :  { %6155 = vmatpush1.bf16.msra.mxu0 %v8430_v52  ;;  %v8508_v52 = vld [vmem:[#allocation11 + $0x200] ss:$16 sps:$4 sm:$0xff]  }
 0x3ab   :  { %6327 = vmatpush1.bf16.msra.mxu1 %v8433_v15  ;;  %6156 = vmatprep.subr.bf16.mxu0 %v8438_v53  ;;  %v8511_v15 = vld [vmem:[#allocation11 + $0x208] ss:$16 sps:$4 sm:$0xff]   ;;  %v8516_v53 = vld [vmem:[#allocation11 + $0x224] ss:$16 sps:$4 sm:$0xff]  }
 0x3ac   :  { %6328 = vmatprep.subr.bf16.mxu1 %v8441_v30  ;;  %v8519_v30 = vld [vmem:[#allocation11 + $0x22c] ss:$16 sps:$4 sm:$0xff]  }
 0x3ae   :  { %6157 = vmatpush1.bf16.msra.mxu0 %v8436_v26  ;;  %v8514_v26 = vld [vmem:[#allocation11 + $0x220] ss:$16 sps:$4 sm:$0xff]  }
 0x3af   :  { %6329 = vmatpush1.bf16.msra.mxu1 %v8439_v38  ;;  %6158 = vmatprep.subr.bf16.mxu0 %v8444_v54  ;;  %v8517_v38 = vld [vmem:[#allocation11 + $0x228] ss:$16 sps:$4 sm:$0xff]   ;;  %v8522_v54 = vld [vmem:[#allocation11 + $0x244] ss:$16 sps:$4 sm:$0xff]  }
 0x3b0   :  { %6330 = vmatprep.subr.bf16.mxu1 %v8447_v55  ;;  %v8525_v55 = vld [vmem:[#allocation11 + $0x24c] ss:$16 sps:$4 sm:$0xff]  }
 0x3b2   :  { %6159 = vmatpush1.bf16.msra.mxu0 %v8442_v56  ;;  %v8520_v56 = vld [vmem:[#allocation11 + $0x240] ss:$16 sps:$4 sm:$0xff]  }
 0x3b3   :  { %6331 = vmatpush1.bf16.msra.mxu1 %v8445_v0  ;;  %6160 = vmatprep.subr.bf16.mxu0 %v8450_v57  ;;  %v8523_v0 = vld [vmem:[#allocation11 + $0x248] ss:$16 sps:$4 sm:$0xff]   ;;  %v8528_v57 = vld [vmem:[#allocation11 + $0x264] ss:$16 sps:$4 sm:$0xff]  }
 0x3b4   :  { %6332 = vmatprep.subr.bf16.mxu1 %v8453_v16  ;;  %v8526_v16 = vld [vmem:[#allocation11 + $0x260] ss:$16 sps:$4 sm:$0xff]  }
 0x3b6   :  { %6161 = vmatpush1.bf16.msra.mxu0 %v8448_v59  ;;  %v8529_v59 = vld [vmem:[#allocation11 + $0x268] ss:$16 sps:$4 sm:$0xff]  }
 0x3b7   :  { %6333 = vmatpush1.bf16.msra.mxu1 %v8451_v35  ;;  %6162 = vmatprep.subr.bf16.mxu0 %v8456_v58  ;;  %v8534_v35 = vld [vmem:[#allocation11 + $0x284] ss:$16 sps:$4 sm:$0xff]   ;;  %v8537_v58 = vld [vmem:[#allocation11 + $0x28c] ss:$16 sps:$4 sm:$0xff]  }
 0x3b8   :  { %6334 = vmatprep.subr.bf16.mxu1 %v8459_v60  ;;  %v8535_v60 = vld [vmem:[#allocation11 + $0x288] ss:$16 sps:$4 sm:$0xff]  }
 0x3ba   :  { %6163 = vmatpush1.bf16.msra.mxu0 %v8454_v61  ;;  %v8540_v61 = vld [vmem:[#allocation11 + $0x2a4] ss:$16 sps:$4 sm:$0xff]  }
 0x3bb   :  { %6335 = vmatpush1.bf16.msra.mxu1 %v8457_v62  ;;  %6164 = vmatprep.subr.bf16.mxu0 %v8462_v63  ;;  %v8543_v62 = vld [vmem:[#allocation11 + $0x2ac] ss:$16 sps:$4 sm:$0xff]   ;;  %v8538_v63 = vld [vmem:[#allocation11 + $0x2a0] ss:$16 sps:$4 sm:$0xff]  }
 0x3bc   :  { %6336 = vmatprep.subr.bf16.mxu1 %v8465_v12  ;;  %v8541_v12 = vld [vmem:[#allocation11 + $0x2a8] ss:$16 sps:$4 sm:$0xff]  }
 0x3be   :  { %6165 = vmatpush1.bf16.msra.mxu0 %v8460_v1  ;;  %v8546_v1 = vld [vmem:[#allocation11 + $0x2c4] ss:$16 sps:$4 sm:$0xff]  }
 0x3bf   :  { %6337 = vmatpush1.bf16.msra.mxu1 %v8463_v2  ;;  %6166 = vmatprep.subr.bf16.mxu0 %v8468_v3  ;;  %v8549_v2 = vld [vmem:[#allocation11 + $0x2cc] ss:$16 sps:$4 sm:$0xff]   ;;  %v8544_v3 = vld [vmem:[#allocation11 + $0x2c0] ss:$16 sps:$4 sm:$0xff]  }
 0x3c0   :  { %6338 = vmatprep.subr.bf16.mxu1 %v8471_v5  ;;  %v8547_v5 = vld [vmem:[#allocation11 + $0x2c8] ss:$16 sps:$4 sm:$0xff]  }
 0x3c2   :  { %6167 = vmatpush1.bf16.msra.mxu0 %v8466_v6  ;;  %v8552_v6 = vld [vmem:[#allocation11 + $0x2e4] ss:$16 sps:$4 sm:$0xff]  }
 0x3c3   :  { %6339 = vmatpush1.bf16.msra.mxu1 %v8469_v7  ;;  %6168 = vmatprep.subr.bf16.mxu0 %v8474_v8  ;;  %v8555_v7 = vld [vmem:[#allocation11 + $0x2ec] ss:$16 sps:$4 sm:$0xff]   ;;  %v8550_v8 = vld [vmem:[#allocation11 + $0x2e0] ss:$16 sps:$4 sm:$0xff]  }
 0x3c4   :  { %6340 = vmatprep.subr.bf16.mxu1 %v8477_v9  ;;  %v8553_v9 = vld [vmem:[#allocation11 + $0x2e8] ss:$16 sps:$4 sm:$0xff]  }
 0x3c6   :  { %6169 = vmatpush1.bf16.msra.mxu0 %v8472_v10  ;;  %v8558_v10 = vld [vmem:[#allocation11 + $0x304] ss:$16 sps:$4 sm:$0xff]  }
 0x3c7   :  { %6341 = vmatpush1.bf16.msra.mxu1 %v8475_v40  ;;  %6170 = vmatprep.subr.bf16.mxu0 %v8480_v11  ;;  %v8561_v40 = vld [vmem:[#allocation11 + $0x30c] ss:$16 sps:$4 sm:$0xff]   ;;  %v8556_v11 = vld [vmem:[#allocation11 + $0x300] ss:$16 sps:$4 sm:$0xff]  }
 0x3c8   :  { %6342 = vmatprep.subr.bf16.mxu1 %v8483_v18  ;;  %v8559_v18 = vld [vmem:[#allocation11 + $0x308] ss:$16 sps:$4 sm:$0xff]  }
 0x3ca   :  { %6171 = vmatpush1.bf16.msra.mxu0 %v8478_v20  ;;  %v8564_v20 = vld [vmem:[#allocation11 + $0x324] ss:$16 sps:$4 sm:$0xff]  }
 0x3cb   :  { %6343 = vmatpush1.bf16.msra.mxu1 %v8481_v21  ;;  %6172 = vmatprep.subr.bf16.mxu0 %v8486_v23  ;;  %v8567_v21 = vld [vmem:[#allocation11 + $0x32c] ss:$16 sps:$4 sm:$0xff]   ;;  %v8562_v23 = vld [vmem:[#allocation11 + $0x320] ss:$16 sps:$4 sm:$0xff]  }
 0x3cc   :  { %6344 = vmatprep.subr.bf16.mxu1 %v8489_v24  ;;  %v8565_v24 = vld [vmem:[#allocation11 + $0x328] ss:$16 sps:$4 sm:$0xff]  }
 0x3ce   :  { %6173 = vmatpush1.bf16.msra.mxu0 %v8484_v25  ;;  %v8570_v25 = vld [vmem:[#allocation11 + $0x344] ss:$16 sps:$4 sm:$0xff]  }
 0x3cf   :  { %6345 = vmatpush1.bf16.msra.mxu1 %v8487_v37  ;;  %6174 = vmatprep.subr.bf16.mxu0 %v8492_v28  ;;  %v8573_v37 = vld [vmem:[#allocation11 + $0x34c] ss:$16 sps:$4 sm:$0xff]   ;;  %v8568_v28 = vld [vmem:[#allocation11 + $0x340] ss:$16 sps:$4 sm:$0xff]  }
 0x3d0   :  { %6346 = vmatprep.subr.bf16.mxu1 %v8495_v32  ;;  %v8571_v32 = vld [vmem:[#allocation11 + $0x348] ss:$16 sps:$4 sm:$0xff]  }
 0x3d2   :  { %6175 = vmatpush1.bf16.msra.mxu0 %v8490_v33  ;;  %v8576_v33 = vld [vmem:[#allocation11 + $0x364] ss:$16 sps:$4 sm:$0xff]  }
 0x3d3   :  { %6347 = vmatpush1.bf16.msra.mxu1 %v8493_v34  ;;  %6176 = vmatprep.subr.bf16.mxu0 %v8498_v42  ;;  %v8579_v34 = vld [vmem:[#allocation11 + $0x36c] ss:$16 sps:$4 sm:$0xff]   ;;  %v8574_v42 = vld [vmem:[#allocation11 + $0x360] ss:$16 sps:$4 sm:$0xff]  }
 0x3d4   :  { %6348 = vmatprep.subr.bf16.mxu1 %v8501_v39  ;;  %v8577_v39 = vld [vmem:[#allocation11 + $0x368] ss:$16 sps:$4 sm:$0xff]  }
 0x3d6   :  { %6177 = vmatpush1.bf16.msra.mxu0 %v8496_v44  ;;  %v8582_v44 = vld [vmem:[#allocation11 + $0x384] ss:$16 sps:$4 sm:$0xff]  }
 0x3d7   :  { %6349 = vmatpush1.bf16.msra.mxu1 %v8499_v46  ;;  %6178 = vmatprep.subr.bf16.mxu0 %v8504_v47  ;;  %v8585_v46 = vld [vmem:[#allocation11 + $0x38c] ss:$16 sps:$4 sm:$0xff]   ;;  %v8580_v47 = vld [vmem:[#allocation11 + $0x380] ss:$16 sps:$4 sm:$0xff]  }
 0x3d8   :  { %6350 = vmatprep.subr.bf16.mxu1 %v8507_v48  ;;  %v8583_v48 = vld [vmem:[#allocation11 + $0x388] ss:$16 sps:$4 sm:$0xff]  }
 0x3da   :  { %6179 = vmatpush1.bf16.msra.mxu0 %v8502_v49  ;;  %v8588_v49 = vld [vmem:[#allocation11 + $0x3a4] ss:$16 sps:$4 sm:$0xff]  }
 0x3db   :  { %6351 = vmatpush1.bf16.msra.mxu1 %v8505_v50  ;;  %6191 = vmatprep.subr.bf16.mxu0 %v8510_v51  ;;  %v8591_v50 = vld [vmem:[#allocation11 + $0x3ac] ss:$16 sps:$4 sm:$0xff]   ;;  %v8586_v51 = vld [vmem:[#allocation11 + $0x3a0] ss:$16 sps:$4 sm:$0xff]  }
 0x3dc   :  { %6363 = vmatprep.subr.bf16.mxu1 %v8513_v4  ;;  %v8589_v4 = vld [vmem:[#allocation11 + $0x3a8] ss:$16 sps:$4 sm:$0xff]  }
 0x3dd   :  { %6181 = vmatmul.mubr.bf16.vlgmr.msra.gmra.mrb[8].mxu0 %v9699_v31 }
 0x3de   :  { %6353 = vmatmul.mubr.bf16.vlgmr.msra.gmra.mrb[24].mxu1 %v9699_v31  ;;  %6192 = vmatpush1.bf16.msra.mxu0 %v8508_v52  ;;  %v8531_v31 = vld [vmem:[#allocation11 + $0x26c] ss:$16 sps:$4 sm:$0xff]   ;;  %v8594_v52 = vld [vmem:[#allocation11 + $0x3c4] ss:$16 sps:$4 sm:$0xff]  }
 0x3df   :  { %6223 = vmatprep.mubr.bf16.mxu0 %v9705_v27  ;;  %6364 = vmatpush1.bf16.msra.mxu1 %v8511_v15  ;;  %v8597_v15 = vld [vmem:[#allocation11 + $0x3cc] ss:$16 sps:$4 sm:$0xff]  }
 0x3e0   :  { %6395 = vmatprep.mubr.bf16.mxu1 %v9705_v27  ;;  %6193 = vmatprep.subr.bf16.mxu0 %v8516_v53  ;;  %v8532_v27 = vld [vmem:[#allocation11 + $0x280] ss:$16 sps:$4 sm:$0xff]  }
 0x3e1   :  { %6365 = vmatprep.subr.bf16.mxu1 %v8519_v30  ;;  %v8592_v53 = vld [vmem:[#allocation11 + $0x3c0] ss:$16 sps:$4 sm:$0xff]   ;;  %v8595_v30 = vld [vmem:[#allocation11 + $0x3c8] ss:$16 sps:$4 sm:$0xff]  }
 0x3e2   :  { %6194 = vmatpush1.bf16.msra.mxu0 %v8514_v26  ;;  %v8600_v26 = vld [vmem:[#allocation11 + $0x3e4] ss:$16 sps:$4 sm:$0xff]  }
 0x3e3   :  { %6366 = vmatpush1.bf16.msra.mxu1 %v8517_v38  ;;  %6195 = vmatprep.subr.bf16.mxu0 %v8522_v54  ;;  %v8603_v38 = vld [vmem:[#allocation11 + $0x3ec] ss:$16 sps:$4 sm:$0xff]   ;;  %v8598_v54 = vld [vmem:[#allocation11 + $0x3e0] ss:$16 sps:$4 sm:$0xff]  }
 0x3e4   :  { %6367 = vmatprep.subr.bf16.mxu1 %v8525_v55  ;;  %v8601_v55 = vld [vmem:[#allocation11 + $0x3e8] ss:$16 sps:$4 sm:$0xff]  }
 0x3e6   :  { %6196 = vmatpush1.bf16.msra.mxu0 %v8520_v56  ;;  %v8606_v56 = vld [vmem:[#allocation11 + $0x404] ss:$16 sps:$4 sm:$0xff]  }
 0x3e7   :  { %6368 = vmatpush1.bf16.msra.mxu1 %v8523_v0  ;;  %6197 = vmatprep.subr.bf16.mxu0 %v8528_v57  ;;  %v8609_v0 = vld [vmem:[#allocation11 + $0x40c] ss:$16 sps:$4 sm:$0xff]   ;;  %v8604_v57 = vld [vmem:[#allocation11 + $0x400] ss:$16 sps:$4 sm:$0xff]  }
 0x3e8   :  { %6369 = vmatprep.subr.bf16.mxu1 %v8531_v31  ;;  %v8607_v31 = vld [vmem:[#allocation11 + $0x408] ss:$16 sps:$4 sm:$0xff]  }
 0x3ea   :  { %6198 = vmatpush1.bf16.msra.mxu0 %v8526_v16  ;;  %v8612_v16 = vld [vmem:[#allocation11 + $0x424] ss:$16 sps:$4 sm:$0xff]  }
 0x3eb   :  { %6370 = vmatpush1.bf16.msra.mxu1 %v8529_v59  ;;  %6199 = vmatprep.subr.bf16.mxu0 %v8534_v35  ;;  %v8615_v59 = vld [vmem:[#allocation11 + $0x42c] ss:$16 sps:$4 sm:$0xff]   ;;  %v8610_v35 = vld [vmem:[#allocation11 + $0x420] ss:$16 sps:$4 sm:$0xff]  }
 0x3ec   :  { %6371 = vmatprep.subr.bf16.mxu1 %v8537_v58  ;;  %v8613_v58 = vld [vmem:[#allocation11 + $0x428] ss:$16 sps:$4 sm:$0xff]  }
 0x3ee   :  { %6200 = vmatpush1.bf16.msra.mxu0 %v8532_v27  ;;  %v8618_v27 = vld [vmem:[#allocation11 + $0x444] ss:$16 sps:$4 sm:$0xff]  }
 0x3ef   :  { %6372 = vmatpush1.bf16.msra.mxu1 %v8535_v60  ;;  %6201 = vmatprep.subr.bf16.mxu0 %v8540_v61  ;;  %v8621_v60 = vld [vmem:[#allocation11 + $0x44c] ss:$16 sps:$4 sm:$0xff]   ;;  %v8616_v61 = vld [vmem:[#allocation11 + $0x440] ss:$16 sps:$4 sm:$0xff]  }
 0x3f0   :  { %6373 = vmatprep.subr.bf16.mxu1 %v8543_v62  ;;  %v8619_v62 = vld [vmem:[#allocation11 + $0x448] ss:$16 sps:$4 sm:$0xff]  }
 0x3f2   :  { %6202 = vmatpush1.bf16.msra.mxu0 %v8538_v63  ;;  %v8624_v63 = vld [vmem:[#allocation11 + $0x464] ss:$16 sps:$4 sm:$0xff]  }
 0x3f3   :  { %6374 = vmatpush1.bf16.msra.mxu1 %v8541_v12  ;;  %6203 = vmatprep.subr.bf16.mxu0 %v8546_v1  ;;  %v8627_v12 = vld [vmem:[#allocation11 + $0x46c] ss:$16 sps:$4 sm:$0xff]   ;;  %v8622_v1 = vld [vmem:[#allocation11 + $0x460] ss:$16 sps:$4 sm:$0xff]  }
 0x3f4   :  { %6375 = vmatprep.subr.bf16.mxu1 %v8549_v2  ;;  %v8630_v2 = vld [vmem:[#allocation11 + $0x484] ss:$16 sps:$4 sm:$0xff]  }
 0x3f6   :  { %6204 = vmatpush1.bf16.msra.mxu0 %v8544_v3  ;;  %v8633_v3 = vld [vmem:[#allocation11 + $0x48c] ss:$16 sps:$4 sm:$0xff]  }
 0x3f7   :  { %6376 = vmatpush1.bf16.msra.mxu1 %v8547_v5  ;;  %6205 = vmatprep.subr.bf16.mxu0 %v8552_v6  ;;  %v8628_v5 = vld [vmem:[#allocation11 + $0x480] ss:$16 sps:$4 sm:$0xff]   ;;  %v8631_v6 = vld [vmem:[#allocation11 + $0x488] ss:$16 sps:$4 sm:$0xff]  }
 0x3f8   :  { %6377 = vmatprep.subr.bf16.mxu1 %v8555_v7  ;;  %v8636_v7 = vld [vmem:[#allocation11 + $0x4a4] ss:$16 sps:$4 sm:$0xff]  }
 0x3fa   :  { %6206 = vmatpush1.bf16.msra.mxu0 %v8550_v8  ;;  %v8639_v8 = vld [vmem:[#allocation11 + $0x4ac] ss:$16 sps:$4 sm:$0xff]  }
 0x3fb   :  { %6378 = vmatpush1.bf16.msra.mxu1 %v8553_v9  ;;  %6207 = vmatprep.subr.bf16.mxu0 %v8558_v10  ;;  %v8634_v9 = vld [vmem:[#allocation11 + $0x4a0] ss:$16 sps:$4 sm:$0xff]   ;;  %v8637_v10 = vld [vmem:[#allocation11 + $0x4a8] ss:$16 sps:$4 sm:$0xff]  }
 0x3fc   :  { %6379 = vmatprep.subr.bf16.mxu1 %v8561_v40  ;;  %v8642_v40 = vld [vmem:[#allocation11 + $0x4c4] ss:$16 sps:$4 sm:$0xff]  }
 0x3fe   :  { %6208 = vmatpush1.bf16.msra.mxu0 %v8556_v11  ;;  %v8645_v11 = vld [vmem:[#allocation11 + $0x4cc] ss:$16 sps:$4 sm:$0xff]  }
 0x3ff   :  { %6380 = vmatpush1.bf16.msra.mxu1 %v8559_v18  ;;  %6209 = vmatprep.subr.bf16.mxu0 %v8564_v20  ;;  %v8640_v18 = vld [vmem:[#allocation11 + $0x4c0] ss:$16 sps:$4 sm:$0xff]   ;;  %v8643_v20 = vld [vmem:[#allocation11 + $0x4c8] ss:$16 sps:$4 sm:$0xff]  }
 0x400   :  { %6381 = vmatprep.subr.bf16.mxu1 %v8567_v21  ;;  %v8648_v21 = vld [vmem:[#allocation11 + $0x4e4] ss:$16 sps:$4 sm:$0xff]  }
 0x402   :  { %6210 = vmatpush1.bf16.msra.mxu0 %v8562_v23  ;;  %v8651_v23 = vld [vmem:[#allocation11 + $0x4ec] ss:$16 sps:$4 sm:$0xff]  }
 0x403   :  { %6382 = vmatpush1.bf16.msra.mxu1 %v8565_v24  ;;  %6211 = vmatprep.subr.bf16.mxu0 %v8570_v25  ;;  %v8646_v24 = vld [vmem:[#allocation11 + $0x4e0] ss:$16 sps:$4 sm:$0xff]   ;;  %v8649_v25 = vld [vmem:[#allocation11 + $0x4e8] ss:$16 sps:$4 sm:$0xff]  }
 0x404   :  { %6383 = vmatprep.subr.bf16.mxu1 %v8573_v37  ;;  %v8654_v37 = vld [vmem:[#allocation11 + $0x504] ss:$16 sps:$4 sm:$0xff]  }
 0x406   :  { %6212 = vmatpush1.bf16.msra.mxu0 %v8568_v28  ;;  %v8657_v28 = vld [vmem:[#allocation11 + $0x50c] ss:$16 sps:$4 sm:$0xff]  }
 0x407   :  { %6384 = vmatpush1.bf16.msra.mxu1 %v8571_v32  ;;  %6213 = vmatprep.subr.bf16.mxu0 %v8576_v33  ;;  %v8652_v32 = vld [vmem:[#allocation11 + $0x500] ss:$16 sps:$4 sm:$0xff]   ;;  %v8655_v33 = vld [vmem:[#allocation11 + $0x508] ss:$16 sps:$4 sm:$0xff]  }
 0x408   :  { %6385 = vmatprep.subr.bf16.mxu1 %v8579_v34  ;;  %v8660_v34 = vld [vmem:[#allocation11 + $0x524] ss:$16 sps:$4 sm:$0xff]  }
 0x40a   :  { %6214 = vmatpush1.bf16.msra.mxu0 %v8574_v42  ;;  %v8663_v42 = vld [vmem:[#allocation11 + $0x52c] ss:$16 sps:$4 sm:$0xff]  }
 0x40b   :  { %6386 = vmatpush1.bf16.msra.mxu1 %v8577_v39  ;;  %6215 = vmatprep.subr.bf16.mxu0 %v8582_v44  ;;  %v8658_v39 = vld [vmem:[#allocation11 + $0x520] ss:$16 sps:$4 sm:$0xff]   ;;  %v8661_v44 = vld [vmem:[#allocation11 + $0x528] ss:$16 sps:$4 sm:$0xff]  }
 0x40c   :  { %6387 = vmatprep.subr.bf16.mxu1 %v8585_v46  ;;  %v8666_v46 = vld [vmem:[#allocation11 + $0x544] ss:$16 sps:$4 sm:$0xff]  }
 0x40e   :  { %6216 = vmatpush1.bf16.msra.mxu0 %v8580_v47  ;;  %v8669_v47 = vld [vmem:[#allocation11 + $0x54c] ss:$16 sps:$4 sm:$0xff]  }
 0x40f   :  { %6388 = vmatpush1.bf16.msra.mxu1 %v8583_v48  ;;  %6217 = vmatprep.subr.bf16.mxu0 %v8588_v49  ;;  %v8664_v48 = vld [vmem:[#allocation11 + $0x540] ss:$16 sps:$4 sm:$0xff]   ;;  %v8667_v49 = vld [vmem:[#allocation11 + $0x548] ss:$16 sps:$4 sm:$0xff]  }
 0x410   :  { %6389 = vmatprep.subr.bf16.mxu1 %v8591_v50  ;;  %v8672_v50 = vld [vmem:[#allocation11 + $0x564] ss:$16 sps:$4 sm:$0xff]  }
 0x412   :  { %6218 = vmatpush1.bf16.msra.mxu0 %v8586_v51  ;;  %v8675_v51 = vld [vmem:[#allocation11 + $0x56c] ss:$16 sps:$4 sm:$0xff]  }
 0x413   :  { %6390 = vmatpush1.bf16.msra.mxu1 %v8589_v4  ;;  %6219 = vmatprep.subr.bf16.mxu0 %v8594_v52  ;;  %v8670_v4 = vld [vmem:[#allocation11 + $0x560] ss:$16 sps:$4 sm:$0xff]   ;;  %v8673_v52 = vld [vmem:[#allocation11 + $0x568] ss:$16 sps:$4 sm:$0xff]  }
 0x414   :  { %6391 = vmatprep.subr.bf16.mxu1 %v8597_v15  ;;  %v8678_v15 = vld [vmem:[#allocation11 + $0x584] ss:$16 sps:$4 sm:$0xff]  }
 0x416   :  { %6220 = vmatpush1.bf16.msra.mxu0 %v8592_v53  ;;  %v8681_v53 = vld [vmem:[#allocation11 + $0x58c] ss:$16 sps:$4 sm:$0xff]  }
 0x417   :  { %6392 = vmatpush1.bf16.msra.mxu1 %v8595_v30  ;;  %6221 = vmatprep.subr.bf16.mxu0 %v8600_v26  ;;  %v8676_v30 = vld [vmem:[#allocation11 + $0x580] ss:$16 sps:$4 sm:$0xff]   ;;  %v8679_v26 = vld [vmem:[#allocation11 + $0x588] ss:$16 sps:$4 sm:$0xff]  }
 0x418   :  { %6393 = vmatprep.subr.bf16.mxu1 %v8603_v38  ;;  %v8684_v38 = vld [vmem:[#allocation11 + $0x5a4] ss:$16 sps:$4 sm:$0xff]  }
 0x41a   :  { %6222 = vmatpush1.bf16.msra.mxu0 %v8598_v54  ;;  %v8687_v54 = vld [vmem:[#allocation11 + $0x5ac] ss:$16 sps:$4 sm:$0xff]  }
 0x41b   :  { %6394 = vmatpush1.bf16.msra.mxu1 %v8601_v55  ;;  %6234 = vmatprep.subr.bf16.mxu0 %v8606_v56  ;;  %v8682_v55 = vld [vmem:[#allocation11 + $0x5a0] ss:$16 sps:$4 sm:$0xff]   ;;  %v8685_v56 = vld [vmem:[#allocation11 + $0x5a8] ss:$16 sps:$4 sm:$0xff]  }
 0x41c   :  { %6406 = vmatprep.subr.bf16.mxu1 %v8609_v0  ;;  %v8690_v0 = vld [vmem:[#allocation11 + $0x5c4] ss:$16 sps:$4 sm:$0xff]  }
 0x41d   :  { %6224 = vmatmul.mubr.bf16.vlgmr.msra.gmra.mrb[8].mxu0 %v9701_v22 }
 0x41e   :  { %6396 = vmatmul.mubr.bf16.vlgmr.msra.gmra.mrb[24].mxu1 %v9701_v22  ;;  %6235 = vmatpush1.bf16.msra.mxu0 %v8604_v57  ;;  %v8625_v22 = vld [vmem:[#allocation11 + $0x468] ss:$16 sps:$4 sm:$0xff]   ;;  %v8693_v57 = vld [vmem:[#allocation11 + $0x5cc] ss:$16 sps:$4 sm:$0xff]  }
 0x41f   :  { %6407 = vmatpush1.bf16.msra.mxu1 %v8607_v31  ;;  %6236 = vmatprep.subr.bf16.mxu0 %v8612_v16  ;;  %v8688_v31 = vld [vmem:[#allocation11 + $0x5c0] ss:$16 sps:$4 sm:$0xff]   ;;  %v8691_v16 = vld [vmem:[#allocation11 + $0x5c8] ss:$16 sps:$4 sm:$0xff]  }
 0x420   :  { %6408 = vmatprep.subr.bf16.mxu1 %v8615_v59  ;;  %v8696_v59 = vld [vmem:[#allocation11 + $0x5e4] ss:$16 sps:$4 sm:$0xff]  }
 0x422   :  { %6237 = vmatpush1.bf16.msra.mxu0 %v8610_v35  ;;  %v8699_v35 = vld [vmem:[#allocation11 + $0x5ec] ss:$16 sps:$4 sm:$0xff]  }
 0x423   :  { %6409 = vmatpush1.bf16.msra.mxu1 %v8613_v58  ;;  %6238 = vmatprep.subr.bf16.mxu0 %v8618_v27  ;;  %v8694_v58 = vld [vmem:[#allocation11 + $0x5e0] ss:$16 sps:$4 sm:$0xff]   ;;  %v8697_v27 = vld [vmem:[#allocation11 + $0x5e8] ss:$16 sps:$4 sm:$0xff]  }
 0x424   :  { %6410 = vmatprep.subr.bf16.mxu1 %v8621_v60  ;;  %v8702_v60 = vld [vmem:[#allocation11 + $0x604] ss:$16 sps:$4 sm:$0xff]  }
 0x426   :  { %6239 = vmatpush1.bf16.msra.mxu0 %v8616_v61  ;;  %v8705_v61 = vld [vmem:[#allocation11 + $0x60c] ss:$16 sps:$4 sm:$0xff]  }
 0x427   :  { %6411 = vmatpush1.bf16.msra.mxu1 %v8619_v62  ;;  %6240 = vmatprep.subr.bf16.mxu0 %v8624_v63  ;;  %v8916_v62 = vld [vmem:[#allocation10] sm:$0xff] }
 0x428   :  { %6412 = vmatprep.subr.bf16.mxu1 %v8627_v12  ;;  %v1265_v63 = vrot.slane %v8916_v62, %v264_v36  ;;  %v1273_v12 = vrot.slane %v8916_v62, %v272_v17 }
 0x42a   :  { %6241 = vmatpush1.bf16.msra.mxu0 %v8622_v1  ;;  %v1269_v1 = vrot.slane %v8916_v62, %v268_v43 }
 0x42b   :  { %6413 = vmatpush1.bf16.msra.mxu1 %v8625_v22  ;;  %6242 = vmatprep.subr.bf16.mxu0 %v8630_v2  ;;  %v1277_v22 = vrot.slane %v8916_v62, %v276_v19  ;;  %v8735_v62 = vld [vmem:[#allocation11 + $0x6ac] ss:$16 sps:$4 sm:$0xff]  }
 0x42c   :  { %6414 = vmatprep.subr.bf16.mxu1 %v8633_v3 }
 0x42e   :  { %6243 = vmatpush1.bf16.msra.mxu0 %v8628_v5 }
 0x42f   :  { %6415 = vmatpush1.bf16.msra.mxu1 %v8631_v6  ;;  %6244 = vmatprep.subr.bf16.mxu0 %v8636_v7 }
 0x430   :  { %6416 = vmatprep.subr.bf16.mxu1 %v8639_v8 }
 0x432   :  { %6245 = vmatpush1.bf16.msra.mxu0 %v8634_v9 }
 0x433   :  { %6417 = vmatpush1.bf16.msra.mxu1 %v8637_v10  ;;  %6246 = vmatprep.subr.bf16.mxu0 %v8642_v40 }
 0x434   :  { %6418 = vmatprep.subr.bf16.mxu1 %v8645_v11 }
 0x436   :  { %6247 = vmatpush1.bf16.msra.mxu0 %v8640_v18 }
 0x437   :  { %6419 = vmatpush1.bf16.msra.mxu1 %v8643_v20  ;;  %6248 = vmatprep.subr.bf16.mxu0 %v8648_v21 }
 0x438   :  { %6420 = vmatprep.subr.bf16.mxu1 %v8651_v23 }
 0x43a   :  { %6249 = vmatpush1.bf16.msra.mxu0 %v8646_v24 }
 0x43b   :  { %6421 = vmatpush1.bf16.msra.mxu1 %v8649_v25  ;;  %6250 = vmatprep.subr.bf16.mxu0 %v8654_v37 }
 0x43c   :  { %6422 = vmatprep.subr.bf16.mxu1 %v8657_v28 }
 0x43e   :  { %6251 = vmatpush1.bf16.msra.mxu0 %v8652_v32 }
 0x43f   :  { %6423 = vmatpush1.bf16.msra.mxu1 %v8655_v33  ;;  %6252 = vmatprep.subr.bf16.mxu0 %v8660_v34 }
 0x440   :  { %6424 = vmatprep.subr.bf16.mxu1 %v8663_v42 }
 0x442   :  { %6253 = vmatpush1.bf16.msra.mxu0 %v8658_v39 }
 0x443   :  { %6425 = vmatpush1.bf16.msra.mxu1 %v8661_v44  ;;  %6254 = vmatprep.subr.bf16.mxu0 %v8666_v46 }
 0x444   :  { %6426 = vmatprep.subr.bf16.mxu1 %v8669_v47 }
 0x446   :  { %6255 = vmatpush1.bf16.msra.mxu0 %v8664_v48 }
 0x447   :  { %6427 = vmatpush1.bf16.msra.mxu1 %v8667_v49  ;;  %6256 = vmatprep.subr.bf16.mxu0 %v8672_v50 }
 0x448   :  { %6428 = vmatprep.subr.bf16.mxu1 %v8675_v51 }
 0x44a   :  { %6257 = vmatpush1.bf16.msra.mxu0 %v8670_v4  ;;  %v8700_v4 = vld [vmem:[#allocation11 + $0x600] ss:$16 sps:$4 sm:$0xff]  }
 0x44b   :  { %6429 = vmatpush1.bf16.msra.mxu1 %v8673_v52  ;;  %6258 = vmatprep.subr.bf16.mxu0 %v8678_v15  ;;  %v8703_v52 = vld [vmem:[#allocation11 + $0x608] ss:$16 sps:$4 sm:$0xff]  }
 0x44c   :  { %6430 = vmatprep.subr.bf16.mxu1 %v8681_v53  ;;  %v8708_v53 = vld [vmem:[#allocation11 + $0x624] ss:$16 sps:$4 sm:$0xff]  }
 0x44e   :  { %6259 = vmatpush1.bf16.msra.mxu0 %v8676_v30  ;;  %v8711_v30 = vld [vmem:[#allocation11 + $0x62c] ss:$16 sps:$4 sm:$0xff]  }
 0x44f   :  { %6431 = vmatpush1.bf16.msra.mxu1 %v8679_v26  ;;  %6260 = vmatprep.subr.bf16.mxu0 %v8684_v38  ;;  %v8706_v26 = vld [vmem:[#allocation11 + $0x620] ss:$16 sps:$4 sm:$0xff]   ;;  %v8709_v38 = vld [vmem:[#allocation11 + $0x628] ss:$16 sps:$4 sm:$0xff]  }
 0x450   :  { %6432 = vmatprep.subr.bf16.mxu1 %v8687_v54  ;;  %v8714_v54 = vld [vmem:[#allocation11 + $0x644] ss:$16 sps:$4 sm:$0xff]  }
 0x452   :  { %6261 = vmatpush1.bf16.msra.mxu0 %v8682_v55  ;;  %v8717_v55 = vld [vmem:[#allocation11 + $0x64c] ss:$16 sps:$4 sm:$0xff]  }
 0x453   :  { %6433 = vmatpush1.bf16.msra.mxu1 %v8685_v56  ;;  %6262 = vmatprep.subr.bf16.mxu0 %v8690_v0  ;;  %v8712_v56 = vld [vmem:[#allocation11 + $0x640] ss:$16 sps:$4 sm:$0xff]   ;;  %v8715_v0 = vld [vmem:[#allocation11 + $0x648] ss:$16 sps:$4 sm:$0xff]  }
 0x454   :  { %6434 = vmatprep.subr.bf16.mxu1 %v8693_v57  ;;  %v8720_v57 = vld [vmem:[#allocation11 + $0x664] ss:$16 sps:$4 sm:$0xff]  }
 0x456   :  { %6263 = vmatpush1.bf16.msra.mxu0 %v8688_v31  ;;  %v8723_v31 = vld [vmem:[#allocation11 + $0x66c] ss:$16 sps:$4 sm:$0xff]  }
 0x457   :  { %6435 = vmatpush1.bf16.msra.mxu1 %v8691_v16  ;;  %6264 = vmatprep.subr.bf16.mxu0 %v8696_v59  ;;  %v8718_v16 = vld [vmem:[#allocation11 + $0x660] ss:$16 sps:$4 sm:$0xff]   ;;  %v8721_v59 = vld [vmem:[#allocation11 + $0x668] ss:$16 sps:$4 sm:$0xff]  }
 0x458   :  { %6436 = vmatprep.subr.bf16.mxu1 %v8699_v35  ;;  %v8726_v35 = vld [vmem:[#allocation11 + $0x684] ss:$16 sps:$4 sm:$0xff]  }
 0x45a   :  { %6265 = vmatpush1.bf16.msra.mxu0 %v8694_v58  ;;  %v8729_v58 = vld [vmem:[#allocation11 + $0x68c] ss:$16 sps:$4 sm:$0xff]  }
 0x45b   :  { %6437 = vmatpush1.bf16.msra.mxu1 %v8697_v27  ;;  %6277 = vmatprep.subr.bf16.mxu0 %v8702_v60  ;;  %v8724_v27 = vld [vmem:[#allocation11 + $0x680] ss:$16 sps:$4 sm:$0xff]   ;;  %v8727_v60 = vld [vmem:[#allocation11 + $0x688] ss:$16 sps:$4 sm:$0xff]  }
 0x45c   :  { %6449 = vmatprep.subr.bf16.mxu1 %v8705_v61  ;;  %v8732_v61 = vld [vmem:[#allocation11 + $0x6a4] ss:$16 sps:$4 sm:$0xff]  }
 0x470   :  { %v4353_v2 = vpop.f32.mrb[4].mxu0 }
 0x471   :  { %v8290_v3 = vadd.f32 %v4353_v2, %v1265_v63  ;;  %v4525_v5 = vpop.f32.mrb[20].mxu1  ;;  %v4355_v6 = vpop.f32.mrb[5].mxu0  ;;  %v8736_v2 = vld [vmem:[#allocation11 + $0x6c0] ss:$16 sps:$4 sm:$0xff]  }
 0x472   :  { %v8294_v7 = vadd.f32 %v4525_v5, %v1273_v12  ;;  %v8291_v8 = vadd.f32 %v4355_v6, %v1269_v1  ;;  %v4527_v9 = vpop.f32.mrb[21].mxu1  ;;  %v4357_v10 = vpop.f32.mrb[6].mxu0  ;;  %v8744_v5 = vld [vmem:[#allocation11 + $0x6e4] ss:$16 sps:$4 sm:$0xff]   ;;  %v8747_v6 = vld [vmem:[#allocation11 + $0x6ec] ss:$16 sps:$4 sm:$0xff]  }
 0x473   :  { %v4554_v40 = vmul.f32 0.01, %v8290_v3  ;;  %v8295_v11 = vadd.f32 %v4527_v9, %v1277_v22  ;;  %v8292_v36 = vadd.f32 %v4357_v10, %v1265_v63  ;;  %v4529_v18 = vpop.f32.mrb[22].mxu1  ;;  %v4359_v20 = vpop.f32.mrb[7].mxu0  ;;  %vm4538_vm10 = vcmp.ge.f32.partialorder %v8290_v3, 0.0 }
 0x474   :  { %vm4540_vm11 = vcmp.ge.f32.partialorder %v8294_v7, 0.0  ;;  %v4556_v17 = vmul.f32 0.01, %v8294_v7  ;;  %vm4539_vm12 = vcmp.ge.f32.partialorder %v8291_v8, 0.0  ;;  %v4531_v13 = vpop.f32.mrb[23].mxu1  ;;  %v8296_v21 = vadd.f32 %v4529_v18, %v1273_v12 }
 0x475   :  { %vm4546_vm13 = vcmp.ge.f32.partialorder %v8292_v36, 0.0  ;;  %v4555_v43 = vmul.f32 0.01, %v8291_v8  ;;  %v4562_v19 = vmul.f32 0.01, %v8292_v36  ;;  %v8293_v23 = vadd.f32 %v4359_v20, %v1269_v1 }
 0x476   :  { %v4570_v24 = vsel %vm4538_vm10, %v8290_v3, %v4554_v40  ;;  %vm4541_vm14 = vcmp.ge.f32.partialorder %v8295_v11, 0.0  ;;  %v4557_v25 = vmul.f32 0.01, %v8295_v11  ;;  %v8297_v37 = vadd.f32 %v4531_v13, %v1277_v22  ;;  %v8730_v63 = vld [vmem:[#allocation11 + $0x6a0] ss:$16 sps:$4 sm:$0xff]  }
 0x477   :  { %v4578_v28 = vsel %vm4546_vm13, %v8292_v36, %v4562_v19  ;;  %vm4548_vm15 = vcmp.ge.f32.partialorder %v8296_v21, 0.0  ;;  %v4564_v32 = vmul.f32 0.01, %v8296_v21  ;;  %vm4547_vm0 = vcmp.ge.f32.partialorder %v8293_v23, 0.0  ;;  %v8733_v12 = vld [vmem:[#allocation11 + $0x6a8] ss:$16 sps:$4 sm:$0xff]  }
 0x478   :  { %v4586_v33 = vpack.c.bf16 %v4578_v28, %v4570_v24  ;;  %v4563_v34 = vmul.f32 0.01, %v8293_v23  ;;  %vm4549_vm1 = vcmp.ge.f32.partialorder %v8297_v37, 0.0  ;;  %v4565_v42 = vmul.f32 0.01, %v8297_v37 }
 0x479   :  { %v4572_v39 = vsel %vm4540_vm11, %v8294_v7, %v4556_v17  ;;  %v4580_v44 = vsel %vm4548_vm15, %v8296_v21, %v4564_v32  ;;  %v4571_v46 = vsel %vm4539_vm12, %v8291_v8, %v4555_v43  ;;  %v4573_v49 = vsel %vm4541_vm14, %v8295_v11, %v4557_v25  ;;  %v8738_v1 = vld [vmem:[#allocation11 + $0x6c4] ss:$16 sps:$4 sm:$0xff]   ;;  %v8741_v22 = vld [vmem:[#allocation11 + $0x6cc] ss:$16 sps:$4 sm:$0xff]   ;;  %v8739_v3 = vld [vmem:[#allocation11 + $0x6c8] ss:$16 sps:$4 sm:$0xff]  }
 0x47a   :  { %v9727_v47 = vpack.c.bf16 %v4580_v44, %v4572_v39  ;;  %v4579_v48 = vsel %vm4547_vm0, %v8293_v23, %v4563_v34  ;;  %v4581_v50 = vsel %vm4549_vm1, %v8297_v37, %v4565_v42  ;;  %v8742_v7 = vld [vmem:[#allocation11 + $0x6e0] ss:$16 sps:$4 sm:$0xff]   ;;  %v8745_v8 = vld [vmem:[#allocation11 + $0x6e8] ss:$16 sps:$4 sm:$0xff]   ;;  %v8750_v9 = vld [vmem:[#allocation11 + $0x704] ss:$16 sps:$4 sm:$0xff]  }
 0x47b   :  { %v4587_v51 = vpack.c.bf16 %v4579_v48, %v4571_v46  ;;  %v4589_v15 = vpack.c.bf16 %v4581_v50, %v4573_v49  ;;  %v8753_v10 = vld [vmem:[#allocation11 + $0x70c] ss:$16 sps:$4 sm:$0xff]   ;;  %v8748_v40 = vld [vmem:[#allocation11 + $0x700] ss:$16 sps:$4 sm:$0xff]   ;;  %v8751_v11 = vld [vmem:[#allocation11 + $0x708] ss:$16 sps:$4 sm:$0xff]  }
 0x47c   :  { %v8756_v36 = vld [vmem:[#allocation11 + $0x724] ss:$16 sps:$4 sm:$0xff]   ;;  %v8759_v18 = vld [vmem:[#allocation11 + $0x72c] ss:$16 sps:$4 sm:$0xff]   ;;  %v8754_v20 = vld [vmem:[#allocation11 + $0x720] ss:$16 sps:$4 sm:$0xff]  }
 0x47d   :  { %6266 = vmatprep.mubr.bf16.mxu0 %v4587_v51  ;;  %6438 = vmatprep.mubr.bf16.mxu1 %v4587_v51  ;;  %v8757_v17 = vld [vmem:[#allocation11 + $0x728] ss:$16 sps:$4 sm:$0xff]   ;;  %v8762_v13 = vld [vmem:[#allocation11 + $0x744] ss:$16 sps:$4 sm:$0xff]   ;;  %v8765_v43 = vld [vmem:[#allocation11 + $0x74c] ss:$16 sps:$4 sm:$0xff]  }
 0x47e   :  { %6267 = vmatmul.mubr.bf16.vlgmr.msra.gmra.mrb[8].mxu0 %v4586_v33  ;;  %6439 = vmatmul.mubr.bf16.vlgmr.msra.gmra.mrb[24].mxu1 %v4586_v33  ;;  %v8760_v19 = vld [vmem:[#allocation11 + $0x740] ss:$16 sps:$4 sm:$0xff]   ;;  %v8763_v21 = vld [vmem:[#allocation11 + $0x748] ss:$16 sps:$4 sm:$0xff]   ;;  %v8768_v23 = vld [vmem:[#allocation11 + $0x764] ss:$16 sps:$4 sm:$0xff]  }
 0x47f   :  { %6278 = vmatpush1.bf16.msra.mxu0 %v8700_v4  ;;  %6450 = vmatpush1.bf16.msra.mxu1 %v8703_v52  ;;  %v8771_v24 = vld [vmem:[#allocation11 + $0x76c] ss:$16 sps:$4 sm:$0xff]   ;;  %v8766_v25 = vld [vmem:[#allocation11 + $0x760] ss:$16 sps:$4 sm:$0xff]   ;;  %v8769_v37 = vld [vmem:[#allocation11 + $0x768] ss:$16 sps:$4 sm:$0xff]  }
 0x480   :  { %6309 = vmatprep.mubr.bf16.mxu0 %v4589_v15  ;;  %6481 = vmatprep.mubr.bf16.mxu1 %v4589_v15  ;;  %v8774_v28 = vld [vmem:[#allocation11 + $0x784] ss:$16 sps:$4 sm:$0xff]   ;;  %v8777_v32 = vld [vmem:[#allocation11 + $0x78c] ss:$16 sps:$4 sm:$0xff]   ;;  %v8772_v33 = vld [vmem:[#allocation11 + $0x780] ss:$16 sps:$4 sm:$0xff]  }
 0x481   :  { %6279 = vmatprep.subr.bf16.mxu0 %v8708_v53  ;;  %6451 = vmatprep.subr.bf16.mxu1 %v8711_v30  ;;  %v8775_v34 = vld [vmem:[#allocation11 + $0x788] ss:$16 sps:$4 sm:$0xff]   ;;  %v8780_v42 = vld [vmem:[#allocation11 + $0x7a4] ss:$16 sps:$4 sm:$0xff]   ;;  %v8783_v39 = vld [vmem:[#allocation11 + $0x7ac] ss:$16 sps:$4 sm:$0xff]  }
 0x482   :  { %v8778_v44 = vld [vmem:[#allocation11 + $0x7a0] ss:$16 sps:$4 sm:$0xff]   ;;  %v8781_v46 = vld [vmem:[#allocation11 + $0x7a8] ss:$16 sps:$4 sm:$0xff]   ;;  %v8786_v48 = vld [vmem:[#allocation11 + $0x7c4] ss:$16 sps:$4 sm:$0xff]  }
 0x483   :  { %6280 = vmatpush1.bf16.msra.mxu0 %v8706_v26  ;;  %6452 = vmatpush1.bf16.msra.mxu1 %v8709_v38  ;;  %v8789_v49 = vld [vmem:[#allocation11 + $0x7cc] ss:$16 sps:$4 sm:$0xff]   ;;  %v8784_v50 = vld [vmem:[#allocation11 + $0x7c0] ss:$16 sps:$4 sm:$0xff]   ;;  %v8787_v51 = vld [vmem:[#allocation11 + $0x7c8] ss:$16 sps:$4 sm:$0xff]  }
 0x484   :  { %6281 = vmatprep.subr.bf16.mxu0 %v8714_v54  ;;  %6453 = vmatprep.subr.bf16.mxu1 %v8717_v55  ;;  %v8792_v4 = vld [vmem:[#allocation11 + $0x7e4] ss:$16 sps:$4 sm:$0xff]   ;;  %v8795_v52 = vld [vmem:[#allocation11 + $0x7ec] ss:$16 sps:$4 sm:$0xff]   ;;  %v8790_v15 = vld [vmem:[#allocation11 + $0x7e0] ss:$16 sps:$4 sm:$0xff]  }
 0x485   :  { %v8793_v53 = vld [vmem:[#allocation11 + $0x7e8] ss:$16 sps:$4 sm:$0xff]   ;;  %v8796_v26 = vld [vmem:[#allocation14] ss:$8 sps:$4 sm:$0xff]   ;;  %v8799_v54 = vld [vmem:[#allocation14 + $0x10] ss:$8 sps:$4 sm:$0xff]  }
 0x486   :  { %v8798_v30 = vld [vmem:[#allocation14 + $0x4] ss:$8 sps:$4 sm:$0xff]   ;;  %v8801_v38 = vld [vmem:[#allocation14 + $0x14] ss:$8 sps:$4 sm:$0xff]   ;;  %vm9264_vm14 = vmmov 0  }
 0x487   :  { %6282 = vmatpush1.bf16.msra.mxu0 %v8712_v56  ;;  %6454 = vmatpush1.bf16.msra.mxu1 %v8715_v0  ;;  %v8804_v55 = vld [vmem:[#allocation14 + $0x24] ss:$8 sps:$4 sm:$0xff]   ;;  %v8802_v56 = vld [vmem:[#allocation14 + $0x20] ss:$8 sps:$4 sm:$0xff]   ;;  %v8807_v0 = vld [vmem:[#allocation14 + $0x34] ss:$8 sps:$4 sm:$0xff]  }
 0x488   :  { %6283 = vmatprep.subr.bf16.mxu0 %v8720_v57  ;;  %6455 = vmatprep.subr.bf16.mxu1 %v8723_v31  ;;  %v8805_v57 = vld [vmem:[#allocation14 + $0x30] ss:$8 sps:$4 sm:$0xff]   ;;  %v8810_v31 = vld [vmem:[#allocation14 + $0x44] ss:$8 sps:$4 sm:$0xff]  }
 0x48b   :  { %6284 = vmatpush1.bf16.msra.mxu0 %v8718_v16  ;;  %6456 = vmatpush1.bf16.msra.mxu1 %v8721_v59  ;;  %v8808_v16 = vld [vmem:[#allocation14 + $0x40] ss:$8 sps:$4 sm:$0xff]   ;;  %v8813_v59 = vld [vmem:[#allocation14 + $0x54] ss:$8 sps:$4 sm:$0xff]  }
 0x48c   :  { %6285 = vmatprep.subr.bf16.mxu0 %v8726_v35  ;;  %6457 = vmatprep.subr.bf16.mxu1 %v8729_v58  ;;  %v8811_v35 = vld [vmem:[#allocation14 + $0x50] ss:$8 sps:$4 sm:$0xff]   ;;  %v8814_v58 = vld [vmem:[#allocation14 + $0x60] ss:$8 sps:$4 sm:$0xff]  }
 0x48f   :  { %6286 = vmatpush1.bf16.msra.mxu0 %v8724_v27  ;;  %6458 = vmatpush1.bf16.msra.mxu1 %v8727_v60  ;;  %v8819_v27 = vld [vmem:[#allocation14 + $0x74] ss:$8 sps:$4 sm:$0xff]   ;;  %v8817_v60 = vld [vmem:[#allocation14 + $0x70] ss:$8 sps:$4 sm:$0xff]  }
 0x490   :  { %6287 = vmatprep.subr.bf16.mxu0 %v8732_v61  ;;  %6459 = vmatprep.subr.bf16.mxu1 %v8735_v62  ;;  %v8822_v61 = vld [vmem:[#allocation14 + $0x84] ss:$8 sps:$4 sm:$0xff]   ;;  %v8820_v62 = vld [vmem:[#allocation14 + $0x80] ss:$8 sps:$4 sm:$0xff]  }
 0x493   :  { %6288 = vmatpush1.bf16.msra.mxu0 %v8730_v63  ;;  %6460 = vmatpush1.bf16.msra.mxu1 %v8733_v12  ;;  %v8825_v63 = vld [vmem:[#allocation14 + $0x94] ss:$8 sps:$4 sm:$0xff]   ;;  %v8823_v12 = vld [vmem:[#allocation14 + $0x90] ss:$8 sps:$4 sm:$0xff]  }
 0x494   :  { %6289 = vmatprep.subr.bf16.mxu0 %v8738_v1  ;;  %6461 = vmatprep.subr.bf16.mxu1 %v8741_v22  ;;  %v8828_v1 = vld [vmem:[#allocation14 + $0xa4] ss:$8 sps:$4 sm:$0xff]   ;;  %v8826_v22 = vld [vmem:[#allocation14 + $0xa0] ss:$8 sps:$4 sm:$0xff]  }
 0x497   :  { %6290 = vmatpush1.bf16.msra.mxu0 %v8736_v2  ;;  %6462 = vmatpush1.bf16.msra.mxu1 %v8739_v3  ;;  %v8831_v2 = vld [vmem:[#allocation14 + $0xb4] ss:$8 sps:$4 sm:$0xff]   ;;  %v8829_v3 = vld [vmem:[#allocation14 + $0xb0] ss:$8 sps:$4 sm:$0xff]  }
 0x498   :  { %6291 = vmatprep.subr.bf16.mxu0 %v8744_v5  ;;  %6463 = vmatprep.subr.bf16.mxu1 %v8747_v6  ;;  %v8834_v5 = vld [vmem:[#allocation14 + $0xc4] ss:$8 sps:$4 sm:$0xff]   ;;  %v8832_v6 = vld [vmem:[#allocation14 + $0xc0] ss:$8 sps:$4 sm:$0xff]  }
 0x49b   :  { %6292 = vmatpush1.bf16.msra.mxu0 %v8742_v7  ;;  %6464 = vmatpush1.bf16.msra.mxu1 %v8745_v8  ;;  %v8837_v7 = vld [vmem:[#allocation14 + $0xd4] ss:$8 sps:$4 sm:$0xff]   ;;  %v8835_v8 = vld [vmem:[#allocation14 + $0xd0] ss:$8 sps:$4 sm:$0xff]  }
 0x49c   :  { %6293 = vmatprep.subr.bf16.mxu0 %v8750_v9  ;;  %6465 = vmatprep.subr.bf16.mxu1 %v8753_v10  ;;  %v8840_v9 = vld [vmem:[#allocation14 + $0xe4] ss:$8 sps:$4 sm:$0xff]   ;;  %v8838_v10 = vld [vmem:[#allocation14 + $0xe0] ss:$8 sps:$4 sm:$0xff]  }
 0x49f   :  { %6294 = vmatpush1.bf16.msra.mxu0 %v8748_v40  ;;  %6466 = vmatpush1.bf16.msra.mxu1 %v8751_v11  ;;  %v8843_v40 = vld [vmem:[#allocation14 + $0xf4] ss:$8 sps:$4 sm:$0xff]   ;;  %v8841_v11 = vld [vmem:[#allocation14 + $0xf0] ss:$8 sps:$4 sm:$0xff]  }
 0x4a0   :  { %6295 = vmatprep.subr.bf16.mxu0 %v8756_v36  ;;  %6467 = vmatprep.subr.bf16.mxu1 %v8759_v18  ;;  %v8846_v36 = vld [vmem:[#allocation14 + $0x104] ss:$8 sps:$4 sm:$0xff]  }
 0x4a1   :  { %v8892_v18 = vld [vmem:[#allocation17 + $0x40] sm:$0xff]  }
 0x4a3   :  { %6296 = vmatpush1.bf16.msra.mxu0 %v8754_v20  ;;  %6468 = vmatpush1.bf16.msra.mxu1 %v8757_v17  ;;  %v8893_v20 = vld [vmem:[#allocation17] sm:$0xff]   ;;  %v8894_v17 = vld [vmem:[#allocation17 + $0x48] sm:$0xff]  }
 0x4a4   :  { %6297 = vmatprep.subr.bf16.mxu0 %v8762_v13  ;;  %6469 = vmatprep.subr.bf16.mxu1 %v8765_v43  ;;  %v8895_v13 = vld [vmem:[#allocation17 + $0x8] sm:$0xff]   ;;  %v8896_v43 = vld [vmem:[#allocation17 + $0x50] sm:$0xff]  }
 0x4a7   :  { %6298 = vmatpush1.bf16.msra.mxu0 %v8760_v19  ;;  %6470 = vmatpush1.bf16.msra.mxu1 %v8763_v21  ;;  %v8897_v19 = vld [vmem:[#allocation17 + $0x10] sm:$0xff]   ;;  %v8898_v21 = vld [vmem:[#allocation17 + $0x58] sm:$0xff]  }
 0x4a8   :  { %6299 = vmatprep.subr.bf16.mxu0 %v8768_v23  ;;  %6471 = vmatprep.subr.bf16.mxu1 %v8771_v24  ;;  %v8899_v23 = vld [vmem:[#allocation17 + $0x18] sm:$0xff]   ;;  %v8900_v24 = vld [vmem:[#allocation17 + $0x60] sm:$0xff]  }
 0x4ab   :  { %6300 = vmatpush1.bf16.msra.mxu0 %v8766_v25  ;;  %6472 = vmatpush1.bf16.msra.mxu1 %v8769_v37  ;;  %v8901_v25 = vld [vmem:[#allocation17 + $0x20] sm:$0xff]   ;;  %v4846_v37 = vld [vmem:[#allocation13] sm:$0xf] }
 0x4ac   :  { %6301 = vmatprep.subr.bf16.mxu0 %v8774_v28  ;;  %6473 = vmatprep.subr.bf16.mxu1 %v8777_v32  ;;  %v4851_v28 = vrot.slane %v4846_v37, %v9553_v14  ;;  %v4859_v32 = vrot.slane %v4846_v37, %v9569_v41 }
 0x4af   :  { %6302 = vmatpush1.bf16.msra.mxu0 %v8772_v33  ;;  %6474 = vmatpush1.bf16.msra.mxu1 %v8775_v34  ;;  %v4855_v33 = vrot.slane %v4846_v37, %v9558_v29  ;;  %v4863_v34 = vrot.slane %v4846_v37, %v9572_v45  ;;  %v8879_v37 = vld [vmem:[#allocation14 + $0x1b4] ss:$8 sps:$4 sm:$0xff]  }
 0x4b0   :  { %6303 = vmatprep.subr.bf16.mxu0 %v8780_v42  ;;  %6475 = vmatprep.subr.bf16.mxu1 %v8783_v39 }
 0x4b3   :  { %6304 = vmatpush1.bf16.msra.mxu0 %v8778_v44  ;;  %6476 = vmatpush1.bf16.msra.mxu1 %v8781_v46 }
 0x4b4   :  { %6305 = vmatprep.subr.bf16.mxu0 %v8786_v48  ;;  %6477 = vmatprep.subr.bf16.mxu1 %v8789_v49 }
 0x4b7   :  { %6306 = vmatpush1.bf16.msra.mxu0 %v8784_v50  ;;  %6478 = vmatpush1.bf16.msra.mxu1 %v8787_v51 }
 0x4b8   :  { %6307 = vmatprep.subr.bf16.mxu0 %v8792_v4  ;;  %6479 = vmatprep.subr.bf16.mxu1 %v8795_v52 }
 0x4bb   :  { %6308 = vmatpush1.bf16.msra.mxu0 %v8790_v15  ;;  %6480 = vmatpush1.bf16.msra.mxu1 %v8793_v53 }
 0x4bc   :  { %6916 = vmatprep.subr.bf16.mxu0 %v8798_v30  ;;  %8231 = vmatprep.subr.bf16.mxu1 %v8892_v18  ;;  %v8864_v18 = vld [vmem:[#allocation14 + $0x164] ss:$8 sps:$4 sm:$0xff]  }
 0x4be   :  { %6310 = vmatmul.mubr.bf16.vlgmr.msra.gmra.mrb[8].mxu0 %v9727_v47  ;;  %6482 = vmatmul.mubr.bf16.vlgmr.msra.gmra.mrb[24].mxu1 %v9727_v47  ;;  %v8816_v47 = vld [vmem:[#allocation14 + $0x64] ss:$8 sps:$4 sm:$0xff]  }
 0x4bf   :  { %6917 = vmatpush1.bf16.msra.mxu0 %v8796_v26  ;;  %8232 = vmatpush3.bf16.msra.mxu1 %v8893_v20  ;;  %v8862_v20 = vld [vmem:[#allocation14 + $0x160] ss:$8 sps:$4 sm:$0xff]  }
 0x4c0   :  { %6918 = vmatprep.subr.bf16.mxu0 %v8801_v38  ;;  %8233 = vmatprep.subr.bf16.mxu1 %v8894_v17  ;;  %v8867_v17 = vld [vmem:[#allocation14 + $0x174] ss:$8 sps:$4 sm:$0xff]  }
 0x4c3   :  { %6919 = vmatpush1.bf16.msra.mxu0 %v8799_v54  ;;  %8234 = vmatpush3.bf16.msra.mxu1 %v8895_v13  ;;  %v8865_v13 = vld [vmem:[#allocation14 + $0x170] ss:$8 sps:$4 sm:$0xff]  }
 0x4c4   :  { %6920 = vmatprep.subr.bf16.mxu0 %v8804_v55  ;;  %8235 = vmatprep.subr.bf16.mxu1 %v8896_v43  ;;  %v8870_v43 = vld [vmem:[#allocation14 + $0x184] ss:$8 sps:$4 sm:$0xff]  }
 0x4c7   :  { %6921 = vmatpush1.bf16.msra.mxu0 %v8802_v56  ;;  %8236 = vmatpush3.bf16.msra.mxu1 %v8897_v19  ;;  %v8868_v19 = vld [vmem:[#allocation14 + $0x180] ss:$8 sps:$4 sm:$0xff]  }
 0x4c8   :  { %6922 = vmatprep.subr.bf16.mxu0 %v8807_v0  ;;  %8237 = vmatprep.subr.bf16.mxu1 %v8898_v21  ;;  %v8873_v21 = vld [vmem:[#allocation14 + $0x194] ss:$8 sps:$4 sm:$0xff]  }
 0x4cb   :  { %6923 = vmatpush1.bf16.msra.mxu0 %v8805_v57  ;;  %8238 = vmatpush3.bf16.msra.mxu1 %v8899_v23  ;;  %v8871_v23 = vld [vmem:[#allocation14 + $0x190] ss:$8 sps:$4 sm:$0xff]  }
 0x4cc   :  { %6924 = vmatprep.subr.bf16.mxu0 %v8810_v31  ;;  %8239 = vmatprep.subr.bf16.mxu1 %v8900_v24  ;;  %v8876_v24 = vld [vmem:[#allocation14 + $0x1a4] ss:$8 sps:$4 sm:$0xff]  }
 0x4cf   :  { %6925 = vmatpush1.bf16.msra.mxu0 %v8808_v16  ;;  %8240 = vmatpush3.bf16.msra.mxu1 %v8901_v25  ;;  %v8874_v25 = vld [vmem:[#allocation14 + $0x1a0] ss:$8 sps:$4 sm:$0xff]  }
 0x4d0   :  { %6926 = vmatprep.subr.bf16.mxu0 %v8813_v59 }
 0x4d3   :  { %6927 = vmatpush1.bf16.msra.mxu0 %v8811_v35 }
 0x4d4   :  { %6928 = vmatprep.subr.bf16.mxu0 %v8816_v47 }
 0x4d7   :  { %6929 = vmatpush1.bf16.msra.mxu0 %v8814_v58 }
 0x4d8   :  { %6930 = vmatprep.subr.bf16.mxu0 %v8819_v27 }
 0x4db   :  { %6931 = vmatpush1.bf16.msra.mxu0 %v8817_v60 }
 0x4dc   :  { %6932 = vmatprep.subr.bf16.mxu0 %v8822_v61 }
 0x4df   :  { %6933 = vmatpush1.bf16.msra.mxu0 %v8820_v62 }
 0x4e0   :  { %6934 = vmatprep.subr.bf16.mxu0 %v8825_v63 }
 0x4e3   :  { %6935 = vmatpush1.bf16.msra.mxu0 %v8823_v12 }
 0x4e4   :  { %6936 = vmatprep.subr.bf16.mxu0 %v8828_v1 }
 0x4e7   :  { %6937 = vmatpush1.bf16.msra.mxu0 %v8826_v22  ;;  %v8844_v22 = vld [vmem:[#allocation14 + $0x100] ss:$8 sps:$4 sm:$0xff]  }
 0x4e8   :  { %6938 = vmatprep.subr.bf16.mxu0 %v8831_v2 }
 0x4eb   :  { %6939 = vmatpush1.bf16.msra.mxu0 %v8829_v3  ;;  %v8849_v3 = vld [vmem:[#allocation14 + $0x114] ss:$8 sps:$4 sm:$0xff]  }
 0x4ec   :  { %6940 = vmatprep.subr.bf16.mxu0 %v8834_v5  ;;  %v8847_v5 = vld [vmem:[#allocation14 + $0x110] ss:$8 sps:$4 sm:$0xff]  }
 0x4ef   :  { %6941 = vmatpush1.bf16.msra.mxu0 %v8832_v6  ;;  %v8852_v6 = vld [vmem:[#allocation14 + $0x124] ss:$8 sps:$4 sm:$0xff]  }
 0x4f0   :  { %6942 = vmatprep.subr.bf16.mxu0 %v8837_v7  ;;  %v8850_v7 = vld [vmem:[#allocation14 + $0x120] ss:$8 sps:$4 sm:$0xff]  }
 0x4f3   :  { %6943 = vmatpush1.bf16.msra.mxu0 %v8835_v8  ;;  %v8855_v8 = vld [vmem:[#allocation14 + $0x134] ss:$8 sps:$4 sm:$0xff]  }
 0x4f4   :  { %6944 = vmatprep.subr.bf16.mxu0 %v8840_v9  ;;  %v8853_v9 = vld [vmem:[#allocation14 + $0x130] ss:$8 sps:$4 sm:$0xff]  }
 0x4f7   :  { %6945 = vmatpush1.bf16.msra.mxu0 %v8838_v10  ;;  %v8858_v10 = vld [vmem:[#allocation14 + $0x144] ss:$8 sps:$4 sm:$0xff]  }
 0x4f8   :  { %6946 = vmatprep.subr.bf16.mxu0 %v8843_v40  ;;  %v8856_v40 = vld [vmem:[#allocation14 + $0x140] ss:$8 sps:$4 sm:$0xff]  }
 0x4fb   :  { %6947 = vmatpush1.bf16.msra.mxu0 %v8841_v11  ;;  %v8861_v11 = vld [vmem:[#allocation14 + $0x154] ss:$8 sps:$4 sm:$0xff]  }
 0x4fc   :  { %6959 = vmatprep.subr.bf16.mxu0 %v8846_v36  ;;  %v8859_v36 = vld [vmem:[#allocation14 + $0x150] ss:$8 sps:$4 sm:$0xff]  }
 0x591   :  { %v6311_v42 = vpop.f32.mrb[8].mxu0  ;;  %v6483_v39 = vpop.f32.mrb[24].mxu1 }
 0x592   :  { %v8298_v44 = vadd.f32 %v6311_v42, %v4851_v28  ;;  %v8302_v46 = vadd.f32 %v6483_v39, %v4859_v32  ;;  %v6313_v48 = vpop.f32.mrb[9].mxu0  ;;  %v6485_v49 = vpop.f32.mrb[25].mxu1  ;;  %v8883_v42 = vld [vmem:[#allocation14 + $0x1d0] ss:$8 sps:$4 sm:$0xff]   ;;  %v8888_v39 = vld [vmem:[#allocation14 + $0x1e4] ss:$8 sps:$4 sm:$0xff]  }
 0x593   :  { %v8299_v50 = vadd.f32 %v6313_v48, %v4855_v33  ;;  %v8303_v51 = vadd.f32 %v6485_v49, %v4863_v34  ;;  %v6315_v4 = vpop.f32.mrb[10].mxu0  ;;  %v6487_v52 = vpop.f32.mrb[26].mxu1  ;;  %v8889_v48 = vld [vmem:[#allocation14 + $0x1f0] ss:$8 sps:$4 sm:$0xff]  }
 0x594   :  { %vm6492_vm2 = vcmp.ge.f32.partialorder %v8298_v44, 0.0  ;;  %v6500_v15 = vmul.f32 0.01, %v8298_v44  ;;  %vm6494_vm3 = vcmp.ge.f32.partialorder %v8302_v46, 0.0  ;;  %v6502_v53 = vmul.f32 0.01, %v8302_v46 }
 0x595   :  { %vm6493_vm4 = vcmp.ge.f32.partialorder %v8299_v50, 0.0  ;;  %v6501_v41 = vmul.f32 0.01, %v8299_v50  ;;  %vm6495_vm5 = vcmp.ge.f32.partialorder %v8303_v51, 0.0  ;;  %v6503_v30 = vmul.f32 0.01, %v8303_v51 }
 0x596   :  { %v8300_v26 = vadd.f32 %v6315_v4, %v4851_v28  ;;  %v8304_v45 = vadd.f32 %v6487_v52, %v4859_v32  ;;  %v6317_v38 = vpop.f32.mrb[11].mxu0  ;;  %v6489_v54 = vpop.f32.mrb[27].mxu1  ;;  %v6508_v55 = vsel %vm6492_vm2, %v8298_v44, %v6500_v15  ;;  %v9736_v56 = vsel %vm6494_vm3, %v8302_v46, %v6502_v53  ;;  %v8877_v28 = vld [vmem:[#allocation14 + $0x1b0] ss:$8 sps:$4 sm:$0xff]   ;;  %v8882_v32 = vld [vmem:[#allocation14 + $0x1c4] ss:$8 sps:$4 sm:$0xff]  }
 0x597   :  { %v8301_v0 = vadd.f32 %v6317_v38, %v4855_v33  ;;  %v8305_v57 = vadd.f32 %v6489_v54, %v4863_v34  ;;  %v6509_v27 = vsel %vm6493_vm4, %v8299_v50, %v6501_v41  ;;  %v6511_v60 = vsel %vm6495_vm5, %v8303_v51, %v6503_v30  ;;  %v8880_v33 = vld [vmem:[#allocation14 + $0x1c0] ss:$8 sps:$4 sm:$0xff]   ;;  %v8885_v34 = vld [vmem:[#allocation14 + $0x1d4] ss:$8 sps:$4 sm:$0xff]  }
 0x598   :  { %vm6496_vm6 = vcmp.ge.f32.partialorder %v8300_v26, 0.0  ;;  %v6504_v31 = vmul.f32 0.01, %v8300_v26  ;;  %vm6498_vm7 = vcmp.ge.f32.partialorder %v8304_v45, 0.0  ;;  %v6506_v16 = vmul.f32 0.01, %v8304_v45 }
 0x599   :  { %vm6497_vm8 = vcmp.ge.f32.partialorder %v8301_v0, 0.0  ;;  %v6505_v59 = vmul.f32 0.01, %v8301_v0  ;;  %vm6499_vm9 = vcmp.ge.f32.partialorder %v8305_v57, 0.0  ;;  %v6507_v35 = vmul.f32 0.01, %v8305_v57 }
 0x59a   :  { %v6512_v47 = vsel %vm6496_vm6, %v8300_v26, %v6504_v31  ;;  %v9738_v58 = vsel %vm6498_vm7, %v8304_v45, %v6506_v16  ;;  %v8886_v44 = vld [vmem:[#allocation14 + $0x1e0] ss:$8 sps:$4 sm:$0xff]   ;;  %v8891_v46 = vld [vmem:[#allocation14 + $0x1f4] ss:$8 sps:$4 sm:$0xff]   ;;  %v9263_v53 = vmov 0.0  }
 0x59b   :  { %v6516_v61 = vpack.c.bf16 %v6512_v47, %v6508_v55  ;;  %v6518_v62 = vpack.c.bf16 %v9738_v58, %v9736_v56  ;;  %v6513_v63 = vsel %vm6497_vm8, %v8301_v0, %v6505_v59  ;;  %v6515_v12 = vsel %vm6499_vm9, %v8305_v57, %v6507_v35  ;;  %v8902_v49 = vld [vmem:[#allocation17 + $0x68] sm:$0xff]   ;;  %v8904_v51 = vld [vmem:[#allocation17 + $0x70] sm:$0xff]   ;;  %v8906_v52 = vld [vmem:[#allocation17 + $0x78] sm:$0xff]  }
 0x59c   :  { %v6517_v1 = vpack.c.bf16 %v6513_v63, %v6509_v27  ;;  %v6519_v2 = vpack.c.bf16 %v6515_v12, %v6511_v60  ;;  %v8903_v50 = vld [vmem:[#allocation17 + $0x28] sm:$0xff]   ;;  %8241 = vmatprep.subr.bf16.mxu1 %v8902_v49  ;;  %v8905_v4 = vld [vmem:[#allocation17 + $0x30] sm:$0xff]   ;;  %v8907_v15 = vld [vmem:[#allocation17 + $0x38] sm:$0xff]  }
 0x59d   :  { %8242 = vmatpush3.bf16.msra.mxu1 %v8903_v50  ;;  %v6584_v41 = vld [vmem:[#allocation16] sm:$0x3]  ;;  %v8909_v63 = vld [vmem:[#allocation20 + $0x8] sm:$0xff]   ;;  %v8910_v12 = vld [vmem:[#allocation20 + $0x10] sm:$0xff]  }
 0x59e   :  { %6948 = vmatprep.mubr.bf16.mxu0 %v6517_v1  ;;  %8243 = vmatprep.subr.bf16.mxu1 %v8904_v51  ;;  %v6589_v30 = vrot.slane %v6584_v41, %v9553_v14  ;;  %v6593_v26 = vrot.slane %v6584_v41, %v9558_v29  ;;  %v8911_v1 = vld [vmem:[#allocation20 + $0x18] sm:$0xff]  }
 0x59f   :  { %6949 = vmatmul.mubr.bf16.vlgmr.msra.gmra.mrb[12].mxu0 %v6516_v61 }
 0x5a0   :  { %6960 = vmatpush1.bf16.msra.mxu0 %v8844_v22  ;;  %6991 = vmatprep.mubr.bf16.mxu0 %v6519_v2  ;;  %v8912_v22 = vld [vmem:[#allocation20 + $0x20] sm:$0xff]   ;;  %v8913_v2 = vld [vmem:[#allocation20 + $0x28] sm:$0xff]  }
 0x5a1   :  { %6961 = vmatprep.subr.bf16.mxu0 %v8849_v3  ;;  %8244 = vmatpush3.bf16.msra.mxu1 %v8905_v4  ;;  %v8914_v3 = vld [vmem:[#allocation20 + $0x30] sm:$0xff]  }
 0x5a2   :  { %8245 = vmatprep.subr.bf16.mxu1 %v8906_v52 }
 0x5a4   :  { %6962 = vmatpush1.bf16.msra.mxu0 %v8847_v5  ;;  %v8915_v5 = vld [vmem:[#allocation20 + $0x38] sm:$0xff]  }
 0x5a5   :  { %6963 = vmatprep.subr.bf16.mxu0 %v8852_v6  ;;  %8246 = vmatpush3.bf16.msra.mxu1 %v8907_v15 }
 0x5a6   :  { %8262 = vmatprep.subr.bf16.mxu1 %v9263_v53 }
 0x5a8   :  { %6964 = vmatpush1.bf16.msra.mxu0 %v8850_v7  ;;  %v8205_v7 = vld [vmem:[#allocation19] ss:$0 sm:$0xff] }
 0x5a9   :  { %6965 = vmatprep.subr.bf16.mxu0 %v8855_v8 }
 0x5ac   :  { %6966 = vmatpush1.bf16.msra.mxu0 %v8853_v9 }
 0x5ad   :  { %6967 = vmatprep.subr.bf16.mxu0 %v8858_v10 }
 0x5b0   :  { %6968 = vmatpush1.bf16.msra.mxu0 %v8856_v40 }
 0x5b1   :  { %6969 = vmatprep.subr.bf16.mxu0 %v8861_v11 }
 0x5b4   :  { %6970 = vmatpush1.bf16.msra.mxu0 %v8859_v36 }
 0x5b5   :  { %6971 = vmatprep.subr.bf16.mxu0 %v8864_v18 }
 0x5b8   :  { %6972 = vmatpush1.bf16.msra.mxu0 %v8862_v20 }
 0x5b9   :  { %6973 = vmatprep.subr.bf16.mxu0 %v8867_v17 }
 0x5bc   :  { %6974 = vmatpush1.bf16.msra.mxu0 %v8865_v13 }
 0x5bd   :  { %6975 = vmatprep.subr.bf16.mxu0 %v8870_v43 }
 0x5c0   :  { %6976 = vmatpush1.bf16.msra.mxu0 %v8868_v19 }
 0x5c1   :  { %6977 = vmatprep.subr.bf16.mxu0 %v8873_v21  ;;  %v8222_v21 = vld [vmem:[#allocation22] ss:$0 sm:$0xff] }
 0x5c4   :  { %6978 = vmatpush1.bf16.msra.mxu0 %v8871_v23 }
 0x5c5   :  { %6979 = vmatprep.subr.bf16.mxu0 %v8876_v24 }
 0x5c8   :  { %6980 = vmatpush1.bf16.msra.mxu0 %v8874_v25 }
 0x5c9   :  { %6981 = vmatprep.subr.bf16.mxu0 %v8879_v37 }
 0x5cc   :  { %6982 = vmatpush1.bf16.msra.mxu0 %v8877_v28 }
 0x5cd   :  { %6983 = vmatprep.subr.bf16.mxu0 %v8882_v32 }
 0x5d0   :  { %6984 = vmatpush1.bf16.msra.mxu0 %v8880_v33 }
 0x5d1   :  { %6985 = vmatprep.subr.bf16.mxu0 %v8885_v34 }
 0x5d4   :  { %6986 = vmatpush1.bf16.msra.mxu0 %v8883_v42 }
 0x5d5   :  { %6987 = vmatprep.subr.bf16.mxu0 %v8888_v39 }
 0x5d8   :  { %6988 = vmatpush1.bf16.msra.mxu0 %v8886_v44 }
 0x5d9   :  { %6989 = vmatprep.subr.bf16.mxu0 %v8891_v46 }
 0x5dc   :  { %6990 = vmatpush1.bf16.msra.mxu0 %v8889_v48 }
 0x5df   :  { %6992 = vmatmul.mubr.bf16.vlgmr.msra.gmra.mrb[12].mxu0 %v6518_v62  ;;  %v8908_v62 = vld [vmem:[#allocation20] sm:$0xff]  }
 0x6b2   :  { %v6993_v45 = vpop.f32.mrb[12].mxu0 }
 0x6b3   :  { %v8306_v38 = vadd.f32 %v6993_v45, %v6589_v30  ;;  %v6995_v54 = vpop.f32.mrb[13].mxu0 }
 0x6b4   :  { %v8307_v55 = vadd.f32 %v6995_v54, %v6593_v26  ;;  %v6997_v56 = vpop.f32.mrb[14].mxu0 }
 0x6b5   :  { %v7006_v0 = vmul.f32 0.01, %v8306_v38  ;;  %v8308_v57 = vadd.f32 %v6997_v56, %v6589_v30  ;;  %v6999_v31 = vpop.f32.mrb[15].mxu0  ;;  %vm7002_vm10 = vcmp.ge.f32.partialorder %v8306_v38, 0.0 }
 0x6b6   :  { %v7007_v16 = vmul.f32 0.01, %v8307_v55  ;;  %v8309_v59 = vadd.f32 %v6999_v31, %v6593_v26  ;;  %vm7003_vm11 = vcmp.ge.f32.partialorder %v8307_v55, 0.0 }
 0x6b7   :  { %vm7004_vm12 = vcmp.ge.f32.partialorder %v8308_v57, 0.0  ;;  %v7008_v35 = vmul.f32 0.01, %v8308_v57  ;;  %v7010_v58 = vsel %vm7002_vm10, %v8306_v38, %v7006_v0 }
 0x6b8   :  { %vm7005_vm13 = vcmp.ge.f32.partialorder %v8309_v59, 0.0  ;;  %v7009_v47 = vmul.f32 0.01, %v8309_v59  ;;  %v7011_v29 = vsel %vm7003_vm11, %v8307_v55, %v7007_v16 }
 0x6b9   :  { %v7012_v14 = vsel %vm7004_vm12, %v8308_v57, %v7008_v35 }
 0x6ba   :  { %v7014_v27 = vpack.c.bf16 %v7012_v14, %v7010_v58  ;;  %v7013_v60 = vsel %vm7005_vm13, %v8309_v59, %v7009_v47 }
 0x6bb   :  { %v7015_v61 = vpack.c.bf16 %v7013_v60, %v7011_v29 }
 0x6bd   :  { %7183 = vmatprep.mubr.bf16.mxu1 %v7015_v61 }
 0x6be   :  { %7184 = vmatmul.mubr.bf16.vlgmr.msra.gmra.mrb[28].mxu1 %v7014_v27 }
 0x6bf   :  { %8263 = vmatpush3.bf16.msra.mxu1 %v8908_v62  ;;  %8278 = vmatprep.mubr.msk.bf16.mxu1 %vm9264_vm14, %v9263_v53 }
 0x6c0   :  { %8264 = vmatprep.subr.bf16.mxu1 %v9263_v53 }
 0x6c3   :  { %8265 = vmatpush3.bf16.msra.mxu1 %v8909_v63 }
 0x6c4   :  { %8266 = vmatprep.subr.bf16.mxu1 %v9263_v53 }
 0x6c7   :  { %8267 = vmatpush3.bf16.msra.mxu1 %v8910_v12 }
 0x6c8   :  { %8268 = vmatprep.subr.bf16.mxu1 %v9263_v53 }
 0x6cb   :  { %8269 = vmatpush3.bf16.msra.mxu1 %v8911_v1 }
 0x6cc   :  { %8270 = vmatprep.subr.bf16.mxu1 %v9263_v53 }
 0x6cf   :  { %8271 = vmatpush3.bf16.msra.mxu1 %v8912_v22 }
 0x6d0   :  { %8272 = vmatprep.subr.bf16.mxu1 %v9263_v53 }
 0x6d3   :  { %8273 = vmatpush3.bf16.msra.mxu1 %v8913_v2 }
 0x6d4   :  { %8274 = vmatprep.subr.bf16.mxu1 %v9263_v53 }
 0x6d7   :  { %8275 = vmatpush3.bf16.msra.mxu1 %v8914_v3 }
 0x6d8   :  { %8276 = vmatprep.subr.bf16.mxu1 %v9263_v53 }
 0x6db   :  { %8277 = vmatpush3.bf16.msra.mxu1 %v8915_v5 }
 0x791   :  { %v8247_v6 = vpop.f32.mrb[28].mxu1 }
 0x792   :  { %v8248_v8 = vpop.f32.mrb[29].mxu1 }
 0x793   :  { %v8249_v9 = vadd.f32 %v8248_v8, %v8247_v6  ;;  %v8250_v10 = vpop.f32.mrb[30].mxu1 }
 0x794   :  { %v8251_v40 = vpop.f32.mrb[31].mxu1 }
 0x795   :  { %v7186_v11 = vadd.f32 %v8249_v9, %v8205_v7  ;;  %v8252_v36 = vadd.f32 %v8251_v40, %v8250_v10 }
 0x797   :  { %v7194_v18 = vmul.f32 0.01, %v7186_v11  ;;  %v7189_v20 = vadd.f32 %v8252_v36, %v8205_v7  ;;  %vm7192_vm15 = vcmp.ge.f32.partialorder %v7186_v11, 0.0 }
 0x799   :  { %vm7193_vm0 = vcmp.ge.f32.partialorder %v7189_v20, 0.0  ;;  %v7195_v17 = vmul.f32 0.01, %v7189_v20  ;;  %v7196_v13 = vsel %vm7192_vm15, %v7186_v11, %v7194_v18 }
 0x79b   :  { %v7197_v43 = vsel %vm7193_vm0, %v7189_v20, %v7195_v17 }
 0x79c   :  { %v7198_v19 = vpack.c.bf16 %v7197_v43, %v7196_v13 }
 0x79e   :  { %8279 = vmatmul.mubr.bf16.vlgmr.msra.gmra.mrb[32].mxu1 %v7198_v19 }
 0x871   :  { %v7304_v23 = vpop.f32.mrb[32].mxu1 }
 0x872   :  { %v7305_v24 = vadd.f32 %v8222_v21, %v7304_v23  ;;  %v8280_v25 = vpop.f32.mrb[33].mxu1 }
 0x873   :  { %v7307_v37 = vpop.f32.mrb[34].mxu1 }
 0x874   :  { %7311 = vst [vmem:[#allocation23] sm:$0xff] %v7305_v24  ;;  %v7308_v28 = vadd.f32 %v8222_v21, %v7307_v37  ;;  %v8281_v32 = vpop.f32.mrb[35].mxu1 }
 0x876   :  { %7312 = vst [vmem:[#allocation23 + $0x8] sm:$0xff] %v7308_v28 }
 0x877   :  { %9214 = shalt.err (!%p9211_p10)
}
 0x878   :  { %s9215_s23 = scalar_lea.hbm %s9777_s13, 256 }
 0x879   :  { %p9216_p11 = scmp.ne.s32.totalorder %s9777_s13, %s9215_s23  ;;  %p9219_p12 = scmp.lt.u32.totalorder %s9215_s23, %s9777_s13 }
 0x87b   :  { %p9221_p13 = pnand %p9219_p12, %p9216_p11 }
 0x87d   :  { %9224 = shalt.err (!%p9221_p13)
}
 0x87e   :  { %7324 = dma.vmem_to_hbm [thread:$0]  %s7319_s6, 256, %s9777_s13, [#allocation4], %s9249_s5, %s9249_s5, %s9250_s25  }
 0x87f   :  { %9239 = dma.done.wait [#allocation4], 256  }
 0x880   :  { %9240 = vsyncadd [#allocation4], 4294967040 }
 0x881   :  { %7328 = vsyncpa [#allocation3], 1 }
 0x882   :  { %7329 = vsyncpa [#allocation6], 1 }
 0x883   :  { %7330 = vsyncpa [#allocation9], 1 }
 0x884   :  { %7331 = vsyncpa [#allocation12], 1 }
 0x885   :  { %7332 = vsyncpa [#allocation15], 1 }
 0x886   :  { %7333 = vsyncpa [#allocation18], 1 }
 0x887   :  { %7334 = vsyncpa [#allocation21], 1 }
 0x888   :  { %7335 = vsyncpa [#allocation4], 1 }

</bundles_post_ra>
